<compile_context>
chip_gen: v5e
topology: v5e:2x2
jax: 0.10.0
libtpu: 0.0.40
codegen_flags: <defaults>
</compile_context>

<pallas_src>
import math

import numpy as np
import jax
import jax.numpy as jnp
from jax.experimental import pallas as pl
from jax.experimental.pallas import tpu as pltpu

# ----------------------------- model hyper-params ---------------------------
IMG_SIZE = 16          # H == W
PATCH = 4              # patch size -> 4x4 = 16 patches
ENC_D = 32             # encoder hidden size (== decoder d_model, Donut style)
ENC_LAYERS = 2
ENC_MLP = 64
NUM_HEADS = 4
HEAD_DIM = ENC_D // NUM_HEADS
HD = NUM_HEADS * HEAD_DIM          # == ENC_D == DEC_D
DEC_D = 32
DEC_LAYERS = 2
DEC_FFN = 64
VOCAB = 64
MAX_POS = 32
SEQ = 8                # decoder sequence length
EMBED_SCALE = math.sqrt(DEC_D)     # config.scale_embedding = True
LN_EPS = 1e-5
ATTN_SCALE = 1.0 / math.sqrt(HEAD_DIM)

_COMPILER_PARAMS = pltpu.CompilerParams(
    dimension_semantics=("arbitrary",),
    vmem_limit_bytes=32 * 1024 * 1024,
)


def _fb(shape):
    """Full-array BlockSpec (whole tensor resident in VMEM)."""
    n = len(shape)
    return pl.BlockSpec(shape, lambda i, _n=n: (0,) * _n)


# --------------------------- in-kernel building blocks ----------------------
def _matmul(a, b):
    """bf16-in / f32-accumulate 2-D matmul (weights are pre-cast bf16)."""
    return jnp.dot(a.astype(jnp.bfloat16), b.astype(jnp.bfloat16),
                   preferred_element_type=jnp.float32)


def _qkT(a, b):
    """(Tq, Dh) x (Tk, Dh) -> (Tq, Tk), contracting the shared minor dim."""
    return jnp.einsum("qd,kd->qk", a.astype(jnp.bfloat16), b.astype(jnp.bfloat16),
                      preferred_element_type=jnp.float32)


def _layernorm(x, g, b):
    x = x.astype(jnp.float32)
    mean = jnp.mean(x, axis=-1, keepdims=True)
    var = jnp.mean(jnp.square(x - mean), axis=-1, keepdims=True)
    return (x - mean) * jax.lax.rsqrt(var + LN_EPS) * g + b


def _softmax(s):
    # TODO(synk): approximate reciprocal; keep exact path for bit-level checks.
    m = jnp.max(s, axis=-1, keepdims=True)
    p = jnp.exp(s - m)
    return p * pl.reciprocal(jnp.sum(p, axis=-1, keepdims=True), approx=True)


def _mha(q, k, v, wo, bo, bias_fn):
    """Multi-head attention with lane-dense projections.

    q: (Tq, H*Dh), k/v: (Tk, H*Dh) — outputs of a single fused QKV matmul
    (scale already folded into the q weight).  bias_fn(h) -> (Tq, Tk) or None.
    Per-head contexts are concatenated along the lane axis and hit one
    (H*Dh, D) output-projection matmul."""
    outs = []
    for h in range(NUM_HEADS):                 # H is tiny; unrolled
        sl = slice(h * HEAD_DIM, (h + 1) * HEAD_DIM)
        s = _qkT(q[:, sl], k[:, sl])           # (Tq, Tk) f32
        bias = bias_fn(h)
        if bias is not None:
            s = s + bias
        p = _softmax(s)
        outs.append(_matmul(p, v[:, sl]))      # (Tq, Dh) f32
    o = jnp.concatenate(outs, axis=-1)         # (Tq, H*Dh) lane-dense
    return _matmul(o, wo) + bo


# ------------------------------- fused kernels ------------------------------
def _encoder_kernel(patches_ref, patch_w_ref, patch_b_ref, pln_g_ref, pln_b_ref,
                    rel_bias_ref,
                    ln1_g_ref, ln1_b_ref, wqkv_ref, bqkv_ref, wo_ref, bo_ref,
                    ln2_g_ref, ln2_b_ref, fc1_w_ref, fc1_b_ref, fc2_w_ref,
                    fc2_b_ref, fln_g_ref, fln_b_ref, out_ref):
    # patch embedding (Conv2d k=4,s=4 as matmul) + DonutSwinEmbeddings.norm
    x = _matmul(patches_ref[...], patch_w_ref[...]) + patch_b_ref[...]
    x = _layernorm(x, pln_g_ref[...], pln_b_ref[...])

    for l in range(ENC_LAYERS):          # unrolled; weights stay VMEM-resident
        xn = _layernorm(x, ln1_g_ref[l], ln1_b_ref[l])
        qkv = _matmul(xn, wqkv_ref[l]) + bqkv_ref[l]       # (P, 3*H*Dh)
        q = qkv[:, :HD]
        k = qkv[:, HD:2 * HD]
        v = qkv[:, 2 * HD:]
        x = x + _mha(q, k, v, wo_ref[l], bo_ref[l],
                     lambda h: rel_bias_ref[h].astype(jnp.float32))

        xn = _layernorm(x, ln2_g_ref[l], ln2_b_ref[l])
        # TODO(synk): torch nn.GELU defaults to exact erf; tanh approximation
        # used here for robust Mosaic lowering.
        h1 = jax.nn.gelu(_matmul(xn, fc1_w_ref[l]) + fc1_b_ref[l], approximate=True)
        x = x + _matmul(h1, fc2_w_ref[l]) + fc2_b_ref[l]

    # TODO(synk): multi-stage Swin patch merging / shifted windows omitted
    # (single stage, window covers whole feature map -> shift_size == 0).
    out_ref[...] = _layernorm(x, fln_g_ref[...], fln_b_ref[...]).astype(out_ref.dtype)


def _decoder_kernel(x_ref, enc_ref, lne_g_ref, lne_b_ref,
                    sa_ln_g_ref, sa_ln_b_ref, sa_wqkv_ref, sa_bqkv_ref,
                    sa_wo_ref, sa_bo_ref,
                    ca_ln_g_ref, ca_ln_b_ref, ca_wq_ref, ca_bq_ref,
                    ca_wkv_ref, ca_bkv_ref, ca_wo_ref, ca_bo_ref,
                    fi_ln_g_ref, fi_ln_b_ref, fc1_w_ref, fc1_b_ref,
                    fc2_w_ref, fc2_b_ref, fln_g_ref, fln_b_ref, out_ref):
    T = x_ref.shape[0]

    x = _layernorm(x_ref[...], lne_g_ref[...], lne_b_ref[...])  # layernorm_embedding
    enc = enc_ref[...]                                          # (S, D) bf16

    # causal mask generated in vregs (no HBM buffer, shared across layers/heads)
    row = jax.lax.broadcasted_iota(jnp.int32, (T, T), 0)
    col = jax.lax.broadcasted_iota(jnp.int32, (T, T), 1)
    causal = jnp.where(row >= col, 0.0, -1e9).astype(jnp.float32)

    for l in range(DEC_LAYERS):          # unrolled; weights stay VMEM-resident
        # --- causal self-attention (pre-norm) ---
        xn = _layernorm(x, sa_ln_g_ref[l], sa_ln_b_ref[l])
        qkv = _matmul(xn, sa_wqkv_ref[l]) + sa_bqkv_ref[l]      # (T, 3*H*Dh)
        q = qkv[:, :HD]
        k = qkv[:, HD:2 * HD]
        v = qkv[:, 2 * HD:]
        x = x + _mha(q, k, v, sa_wo_ref[l], sa_bo_ref[l], lambda h: causal)

        # --- cross-attention to encoder hidden states ---
        xn = _layernorm(x, ca_ln_g_ref[l], ca_ln_b_ref[l])
        qc = _matmul(xn, ca_wq_ref[l]) + ca_bq_ref[l]           # (T, H*Dh)
        kv = _matmul(enc, ca_wkv_ref[l]) + ca_bkv_ref[l]        # (S, 2*H*Dh)
        kc = kv[:, :HD]
        vc = kv[:, HD:]
        x = x + _mha(qc, kc, vc, ca_wo_ref[l], ca_bo_ref[l], lambda h: None)

        # --- GELU FFN ---
        xn = _layernorm(x, fi_ln_g_ref[l], fi_ln_b_ref[l])
        h1 = jax.nn.gelu(_matmul(xn, fc1_w_ref[l]) + fc1_b_ref[l], approximate=True)
        x = x + _matmul(h1, fc2_w_ref[l]) + fc2_b_ref[l]

    out_ref[...] = _layernorm(x, fln_g_ref[...], fln_b_ref[...]).astype(out_ref.dtype)


# ------------------------------ pallas wrappers ------------------------------
def _call_fused(kernel, args, out_shape):
    return pl.pallas_call(
        kernel,
        grid=(1,),
        in_specs=[_fb(a.shape) for a in args],
        out_specs=_fb(out_shape.shape),
        out_shape=out_shape,
        compiler_params=_COMPILER_PARAMS,
    )(*args)


def run_encoder(enc_weights, pixel_values):
    """pixel_values: (1, 3, H, W) NCHW -> (num_patches, ENC_D) bf16."""
    B, C, H, W = pixel_values.shape
    gh, gw = H // PATCH, W // PATCH
    # im2col with Conv2d-compatible (C, kh, kw) flatten order
    x = pixel_values.reshape(B, C, gh, PATCH, gw, PATCH)
    x = x.transpose(0, 2, 4, 1, 3, 5).reshape(B * gh * gw, C * PATCH * PATCH)
    out_shape = jax.ShapeDtypeStruct((B * gh * gw, ENC_D), jnp.bfloat16)
    return _call_fused(_encoder_kernel, [x] + enc_weights, out_shape)


def run_decoder(dec_weights, x_emb, enc_hidden):
    out_shape = jax.ShapeDtypeStruct(x_emb.shape, jnp.float32)
    return _call_fused(_decoder_kernel, [x_emb, enc_hidden] + dec_weights, out_shape)


@jax.jit
def dolphin_forward(enc_weights, dec_weights, embed_tokens, embed_positions,
                    input_ids, positions, pixel_values):
    """Mirrors DolphinForConditionalGeneration.forward: encode image, flatten
    embeddings, run the MBart decoder, return decoder hidden states."""
    enc_hidden = run_encoder(enc_weights, pixel_values)        # (P, D) bf16
    inputs_embeds = enc_hidden.reshape(-1, ENC_D)              # _flatten_embeddings
    # token / positional embedding gathers stay in plain JAX (tiny XLA gathers)
    x = jnp.take(embed_tokens, input_ids, axis=0) * EMBED_SCALE
    x = x + jnp.take(embed_positions, positions + 2, axis=0)   # MBart +2 offset
    return run_decoder(dec_weights, x, inputs_embeds)


# ----------------------------- parameter packing -----------------------------
# TODO(synk): weights here are (in, out) right-multiply; real PyTorch Linear
# weights are (out, in) and must be transposed when loading a checkpoint.
def _bf16(a):
    return a.astype(jnp.bfloat16)


def _row(v):
    return v.reshape(1, -1)


def _qkv_w(attn):
    """Fused lane-dense QKV weight (D, 3*H*Dh) with attn scale folded into q."""
    return _bf16(jnp.concatenate(
        [attn["q_w"] * ATTN_SCALE, attn["k_w"], attn["v_w"]], axis=1))


def _qkv_b(attn):
    return _bf16(jnp.concatenate(
        [attn["q_b"] * ATTN_SCALE, attn["k_b"], attn["v_b"]]).reshape(1, -1))


def _kv_w(attn):
    return _bf16(jnp.concatenate([attn["k_w"], attn["v_w"]], axis=1))


def _kv_b(attn):
    return _bf16(jnp.concatenate([attn["k_b"], attn["v_b"]]).reshape(1, -1))


def pack_encoder(enc):
    ls = enc["layers"]
    st = lambda f: jnp.stack([f(l) for l in ls], axis=0)
    return [
        _bf16(enc["patch_w"]), _bf16(_row(enc["patch_b"])),
        _row(enc["patch_ln_g"]), _row(enc["patch_ln_b"]),
        enc["rel_bias"],                                        # (H, P, P) f32
        st(lambda l: _row(l["ln1_g"])), st(lambda l: _row(l["ln1_b"])),
        st(lambda l: _qkv_w(l["attn"])), st(lambda l: _qkv_b(l["attn"])),
        st(lambda l: _bf16(l["attn"]["o_w"])),                  # (H*Dh, D)
        st(lambda l: _bf16(_row(l["attn"]["o_b"]))),
        st(lambda l: _row(l["ln2_g"])), st(lambda l: _row(l["ln2_b"])),
        st(lambda l: _bf16(l["fc1_w"])), st(lambda l: _bf16(_row(l["fc1_b"]))),
        st(lambda l: _bf16(l["fc2_w"])), st(lambda l: _bf16(_row(l["fc2_b"]))),
        _row(enc["final_ln_g"]), _row(enc["final_ln_b"]),
    ]


def pack_decoder(dec):
    ls = dec["layers"]
    st = lambda f: jnp.stack([f(l) for l in ls], axis=0)
    return [
        _row(dec["ln_emb_g"]), _row(dec["ln_emb_b"]),
        st(lambda l: _row(l["sa_ln_g"])), st(lambda l: _row(l["sa_ln_b"])),
        st(lambda l: _qkv_w(l["self_attn"])), st(lambda l: _qkv_b(l["self_attn"])),
        st(lambda l: _bf16(l["self_attn"]["o_w"])),
        st(lambda l: _bf16(_row(l["self_attn"]["o_b"]))),
        st(lambda l: _row(l["ca_ln_g"])), st(lambda l: _row(l["ca_ln_b"])),
        st(lambda l: _bf16(l["cross_attn"]["q_w"] * ATTN_SCALE)),
        st(lambda l: _bf16(_row(l["cross_attn"]["q_b"] * ATTN_SCALE))),
        st(lambda l: _kv_w(l["cross_attn"])), st(lambda l: _kv_b(l["cross_attn"])),
        st(lambda l: _bf16(l["cross_attn"]["o_w"])),
        st(lambda l: _bf16(_row(l["cross_attn"]["o_b"]))),
        st(lambda l: _row(l["fi_ln_g"])), st(lambda l: _row(l["fi_ln_b"])),
        st(lambda l: _bf16(l["fc1_w"])), st(lambda l: _bf16(_row(l["fc1_b"]))),
        st(lambda l: _bf16(l["fc2_w"])), st(lambda l: _bf16(_row(l["fc2_b"]))),
        _row(dec["final_ln_g"]), _row(dec["final_ln_b"]),
    ]


# ----------------------------- parameter init -------------------------------
def _swin_relative_position_index(ws):
    coords = np.stack(np.meshgrid(np.arange(ws), np.arange(ws), indexing="ij"))
    coords_flat = coords.reshape(2, -1)
    rel = coords_flat[:, :, None] - coords_flat[:, None, :]
    rel = rel.transpose(1, 2, 0).astype(np.int64)
    rel[:, :, 0] += ws - 1
    rel[:, :, 1] += ws - 1
    rel[:, :, 0] *= 2 * ws - 1
    return rel.sum(-1)   # (ws*ws, ws*ws)


def init_params(key):
    keys = iter(jax.random.split(key, 512))

    def dense(shape, scale=0.02):
        return jax.random.normal(next(keys), shape, jnp.float32) * scale

    def zeros(shape):
        return jnp.zeros(shape, jnp.float32)

    def ones(shape):
        return jnp.ones(shape, jnp.float32)

    def attn_params(d):
        return dict(
            q_w=dense((d, d)), q_b=zeros((d,)),
            k_w=dense((d, d)), k_b=zeros((d,)),
            v_w=dense((d, d)), v_b=zeros((d,)),
            o_w=dense((d, d)), o_b=zeros((d,)),
        )

    # --- encoder ---
    ws = IMG_SIZE // PATCH
    rel_index = _swin_relative_position_index(ws)                 # (P, P)
    rel_table = dense(((2 * ws - 1) ** 2, NUM_HEADS))             # Swin bias table
    rel_bias = jnp.transpose(rel_table[rel_index], (2, 0, 1))     # (H, P, P)

    enc_layers = []
    for _ in range(ENC_LAYERS):
        enc_layers.append(dict(
            ln1_g=ones((ENC_D,)), ln1_b=zeros((ENC_D,)),
            attn=attn_params(ENC_D),
            ln2_g=ones((ENC_D,)), ln2_b=zeros((ENC_D,)),
            fc1_w=dense((ENC_D, ENC_MLP)), fc1_b=zeros((ENC_MLP,)),
            fc2_w=dense((ENC_MLP, ENC_D)), fc2_b=zeros((ENC_D,)),
        ))
    encoder = dict(
        patch_w=dense((3 * PATCH * PATCH, ENC_D)), patch_b=zeros((ENC_D,)),
        patch_ln_g=ones((ENC_D,)), patch_ln_b=zeros((ENC_D,)),
        rel_bias=rel_bias,
        layers=enc_layers,
        final_ln_g=ones((ENC_D,)), final_ln_b=zeros((ENC_D,)),
    )

    # --- decoder ---
    dec_layers = []
    for _ in range(DEC_LAYERS):
        dec_layers.append(dict(
            sa_ln_g=ones((DEC_D,)), sa_ln_b=zeros((DEC_D,)),
            self_attn=attn_params(DEC_D),
            ca_ln_g=ones((DEC_D,)), ca_ln_b=zeros((DEC_D,)),
            cross_attn=attn_params(DEC_D),
            fi_ln_g=ones((DEC_D,)), fi_ln_b=zeros((DEC_D,)),
            fc1_w=dense((DEC_D, DEC_FFN)), fc1_b=zeros((DEC_FFN,)),
            fc2_w=dense((DEC_FFN, DEC_D)), fc2_b=zeros((DEC_D,)),
        ))
    decoder = dict(
        embed_tokens=dense((VOCAB, DEC_D)),
        embed_positions=dense((MAX_POS + 2, DEC_D)),  # MBart learned pos (+2 offset)
        ln_emb_g=ones((DEC_D,)), ln_emb_b=zeros((DEC_D,)),
        layers=dec_layers,
        final_ln_g=ones((DEC_D,)), final_ln_b=zeros((DEC_D,)),
    )
    return dict(encoder=encoder, decoder=decoder)


# ------------------------------------ main -----------------------------------
if __name__ == "__main__":
    key = jax.random.PRNGKey(0)
    k_params, k_pix, k_ids = jax.random.split(key, 3)

    params = init_params(k_params)
    enc_weights = pack_encoder(params["encoder"])
    dec_weights = pack_decoder(params["decoder"])

    # inputs (small shapes consistent with the module's forward signature)
    pixel_values = jax.random.normal(k_pix, (1, 3, IMG_SIZE, IMG_SIZE), jnp.float32)
    input_ids = jax.random.randint(k_ids, (SEQ,), 0, VOCAB, dtype=jnp.int32)
    positions = jnp.arange(SEQ, dtype=jnp.int32)

    hidden_states = dolphin_forward(
        enc_weights, dec_weights,
        params["decoder"]["embed_tokens"], params["decoder"]["embed_positions"],
        input_ids, positions, pixel_values)
    hidden_states = jax.block_until_ready(hidden_states)

    assert hidden_states.shape == (SEQ, DEC_D)
    assert bool(jnp.all(jnp.isfinite(hidden_states)))
    print("KERNEL_OK")
</pallas_src>

<mosaic_0001>
module attributes {stable_mosaic.version = 11 : i64} {
  func.func @_encoder_kernel(%arg0: i32, %arg1: memref<16x48xf32, #tpu.memory_space<vmem>>, %arg2: memref<48x32xbf16, #tpu.memory_space<vmem>>, %arg3: memref<1x32xbf16, #tpu.memory_space<vmem>>, %arg4: memref<1x32xf32, #tpu.memory_space<vmem>>, %arg5: memref<1x32xf32, #tpu.memory_space<vmem>>, %arg6: memref<4x16x16xf32, #tpu.memory_space<vmem>>, %arg7: memref<2x1x32xf32, #tpu.memory_space<vmem>>, %arg8: memref<2x1x32xf32, #tpu.memory_space<vmem>>, %arg9: memref<2x32x96xbf16, #tpu.memory_space<vmem>>, %arg10: memref<2x1x96xbf16, #tpu.memory_space<vmem>>, %arg11: memref<2x32x32xbf16, #tpu.memory_space<vmem>>, %arg12: memref<2x1x32xbf16, #tpu.memory_space<vmem>>, %arg13: memref<2x1x32xf32, #tpu.memory_space<vmem>>, %arg14: memref<2x1x32xf32, #tpu.memory_space<vmem>>, %arg15: memref<2x32x64xbf16, #tpu.memory_space<vmem>>, %arg16: memref<2x1x64xbf16, #tpu.memory_space<vmem>>, %arg17: memref<2x64x32xbf16, #tpu.memory_space<vmem>>, %arg18: memref<2x1x32xbf16, #tpu.memory_space<vmem>>, %arg19: memref<1x32xf32, #tpu.memory_space<vmem>>, %arg20: memref<1x32xf32, #tpu.memory_space<vmem>>, %arg21: memref<16x32xbf16, #tpu.memory_space<vmem>>) attributes {dimension_semantics = [#tpu.dimension_semantics<arbitrary>], iteration_bounds = array<i64: 1>, scalar_prefetch = 0 : i64, scratch_operands = 0 : i64, tpu.core_type = #tpu.core_type<tc>, window_params = [{pipeline_mode = #tpu.pipeline_mode<synchronous>, transform_indices = @transform_0, window_bounds = array<i64: 16, 48>}, {pipeline_mode = #tpu.pipeline_mode<synchronous>, transform_indices = @transform_1, window_bounds = array<i64: 48, 32>}, {pipeline_mode = #tpu.pipeline_mode<synchronous>, transform_indices = @transform_2, window_bounds = array<i64: 1, 32>}, {pipeline_mode = #tpu.pipeline_mode<synchronous>, transform_indices = @transform_3, window_bounds = array<i64: 1, 32>}, {pipeline_mode = #tpu.pipeline_mode<synchronous>, transform_indices = @transform_4, window_bounds = array<i64: 1, 32>}, {pipeline_mode = #tpu.pipeline_mode<synchronous>, transform_indices = @transform_5, window_bounds = array<i64: 4, 16, 16>}, {pipeline_mode = #tpu.pipeline_mode<synchronous>, transform_indices = @transform_6, window_bounds = array<i64: 2, 1, 32>}, {pipeline_mode = #tpu.pipeline_mode<synchronous>, transform_indices = @transform_7, window_bounds = array<i64: 2, 1, 32>}, {pipeline_mode = #tpu.pipeline_mode<synchronous>, transform_indices = @transform_8, window_bounds = array<i64: 2, 32, 96>}, {pipeline_mode = #tpu.pipeline_mode<synchronous>, transform_indices = @transform_9, window_bounds = array<i64: 2, 1, 96>}, {pipeline_mode = #tpu.pipeline_mode<synchronous>, transform_indices = @transform_10, window_bounds = array<i64: 2, 32, 32>}, {pipeline_mode = #tpu.pipeline_mode<synchronous>, transform_indices = @transform_11, window_bounds = array<i64: 2, 1, 32>}, {pipeline_mode = #tpu.pipeline_mode<synchronous>, transform_indices = @transform_12, window_bounds = array<i64: 2, 1, 32>}, {pipeline_mode = #tpu.pipeline_mode<synchronous>, transform_indices = @transform_13, window_bounds = array<i64: 2, 1, 32>}, {pipeline_mode = #tpu.pipeline_mode<synchronous>, transform_indices = @transform_14, window_bounds = array<i64: 2, 32, 64>}, {pipeline_mode = #tpu.pipeline_mode<synchronous>, transform_indices = @transform_15, window_bounds = array<i64: 2, 1, 64>}, {pipeline_mode = #tpu.pipeline_mode<synchronous>, transform_indices = @transform_16, window_bounds = array<i64: 2, 64, 32>}, {pipeline_mode = #tpu.pipeline_mode<synchronous>, transform_indices = @transform_17, window_bounds = array<i64: 2, 1, 32>}, {pipeline_mode = #tpu.pipeline_mode<synchronous>, transform_indices = @transform_18, window_bounds = array<i64: 1, 32>}, {pipeline_mode = #tpu.pipeline_mode<synchronous>, transform_indices = @transform_19, window_bounds = array<i64: 1, 32>}, {pipeline_mode = #tpu.pipeline_mode<synchronous>, transform_indices = @transform_20, window_bounds = array<i64: 16, 32>}]} {
    %c0 = arith.constant 0 : index
    %c0_0 = arith.constant 0 : index
    %0 = vector.load %arg1[%c0, %c0_0] : memref<16x48xf32, #tpu.memory_space<vmem>>, vector<16x48xf32>
    %c0_1 = arith.constant 0 : index
    %c0_2 = arith.constant 0 : index
    %1 = vector.load %arg2[%c0_1, %c0_2] : memref<48x32xbf16, #tpu.memory_space<vmem>>, vector<48x32xbf16>
    %2 = arith.truncf %0 : vector<16x48xf32> to vector<16x48xbf16>
    %cst = arith.constant dense<0.000000e+00> : vector<16x32xf32>
    %3 = tpu.matmul %2, %1, %cst {dimension_numbers = #tpu.dot_dimension_numbers<[1], [0], [0], [1], [0, 0, 1, 1], [], []>} : vector<16x48xbf16>, vector<48x32xbf16>, vector<16x32xf32> -> vector<16x32xf32>
    %c0_3 = arith.constant 0 : index
    %c0_4 = arith.constant 0 : index
    %4 = vector.load %arg3[%c0_3, %c0_4] : memref<1x32xbf16, #tpu.memory_space<vmem>>, vector<1x32xbf16>
    %5 = arith.extf %4 : vector<1x32xbf16> to vector<1x32xf32>
    %6 = vector.broadcast %5 : vector<1x32xf32> to vector<16x32xf32>
    %7 = arith.addf %3, %6 : vector<16x32xf32>
    %c0_5 = arith.constant 0 : index
    %c0_6 = arith.constant 0 : index
    %8 = vector.load %arg4[%c0_5, %c0_6] : memref<1x32xf32, #tpu.memory_space<vmem>>, vector<1x32xf32>
    %c0_7 = arith.constant 0 : index
    %c0_8 = arith.constant 0 : index
    %9 = vector.load %arg5[%c0_7, %c0_8] : memref<1x32xf32, #tpu.memory_space<vmem>>, vector<1x32xf32>
    %cst_9 = arith.constant dense<0.000000e+00> : vector<16xf32>
    %10 = vector.multi_reduction <add>, %7, %cst_9 [1] : vector<16x32xf32> to vector<16xf32>
    %11 = vector.shape_cast %10 : vector<16xf32> to vector<16x1xf32>
    %cst_10 = arith.constant 3.200000e+01 : f32
    %12 = vector.broadcast %cst_10 : f32 to vector<16x1xf32>
    %13 = arith.divf %11, %12 : vector<16x1xf32>
    %14 = vector.broadcast %13 : vector<16x1xf32> to vector<16x32xf32>
    %15 = arith.subf %7, %14 : vector<16x32xf32>
    %16 = arith.mulf %15, %15 : vector<16x32xf32>
    %cst_11 = arith.constant dense<0.000000e+00> : vector<16xf32>
    %17 = vector.multi_reduction <add>, %16, %cst_11 [1] : vector<16x32xf32> to vector<16xf32>
    %18 = vector.shape_cast %17 : vector<16xf32> to vector<16x1xf32>
    %cst_12 = arith.constant 3.200000e+01 : f32
    %19 = vector.broadcast %cst_12 : f32 to vector<16x1xf32>
    %20 = arith.divf %18, %19 : vector<16x1xf32>
    %21 = vector.broadcast %13 : vector<16x1xf32> to vector<16x32xf32>
    %22 = arith.subf %7, %21 : vector<16x32xf32>
    %cst_13 = arith.constant 9.99999974E-6 : f32
    %23 = vector.broadcast %cst_13 : f32 to vector<16x1xf32>
    %24 = arith.addf %20, %23 : vector<16x1xf32>
    %25 = math.rsqrt %24 : vector<16x1xf32>
    %26 = vector.broadcast %25 : vector<16x1xf32> to vector<16x32xf32>
    %27 = arith.mulf %22, %26 : vector<16x32xf32>
    %28 = vector.broadcast %8 : vector<1x32xf32> to vector<16x32xf32>
    %29 = arith.mulf %27, %28 : vector<16x32xf32>
    %30 = vector.broadcast %9 : vector<1x32xf32> to vector<16x32xf32>
    %31 = arith.addf %29, %30 : vector<16x32xf32>
    %c0_14 = arith.constant 0 : index
    %c0_15 = arith.constant 0 : index
    %c0_16 = arith.constant 0 : index
    %32 = vector.load %arg7[%c0_14, %c0_15, %c0_16] : memref<2x1x32xf32, #tpu.memory_space<vmem>>, vector<1x1x32xf32>
    %33 = vector.shape_cast %32 : vector<1x1x32xf32> to vector<1x32xf32>
    %c0_17 = arith.constant 0 : index
    %c0_18 = arith.constant 0 : index
    %c0_19 = arith.constant 0 : index
    %34 = vector.load %arg8[%c0_17, %c0_18, %c0_19] : memref<2x1x32xf32, #tpu.memory_space<vmem>>, vector<1x1x32xf32>
    %35 = vector.shape_cast %34 : vector<1x1x32xf32> to vector<1x32xf32>
    %cst_20 = arith.constant dense<0.000000e+00> : vector<16xf32>
    %36 = vector.multi_reduction <add>, %31, %cst_20 [1] : vector<16x32xf32> to vector<16xf32>
    %37 = vector.shape_cast %36 : vector<16xf32> to vector<16x1xf32>
    %cst_21 = arith.constant 3.200000e+01 : f32
    %38 = vector.broadcast %cst_21 : f32 to vector<16x1xf32>
    %39 = arith.divf %37, %38 : vector<16x1xf32>
    %40 = vector.broadcast %39 : vector<16x1xf32> to vector<16x32xf32>
    %41 = arith.subf %31, %40 : vector<16x32xf32>
    %42 = arith.mulf %41, %41 : vector<16x32xf32>
    %cst_22 = arith.constant dense<0.000000e+00> : vector<16xf32>
    %43 = vector.multi_reduction <add>, %42, %cst_22 [1] : vector<16x32xf32> to vector<16xf32>
    %44 = vector.shape_cast %43 : vector<16xf32> to vector<16x1xf32>
    %cst_23 = arith.constant 3.200000e+01 : f32
    %45 = vector.broadcast %cst_23 : f32 to vector<16x1xf32>
    %46 = arith.divf %44, %45 : vector<16x1xf32>
    %47 = vector.broadcast %39 : vector<16x1xf32> to vector<16x32xf32>
    %48 = arith.subf %31, %47 : vector<16x32xf32>
    %cst_24 = arith.constant 9.99999974E-6 : f32
    %49 = vector.broadcast %cst_24 : f32 to vector<16x1xf32>
    %50 = arith.addf %46, %49 : vector<16x1xf32>
    %51 = math.rsqrt %50 : vector<16x1xf32>
    %52 = vector.broadcast %51 : vector<16x1xf32> to vector<16x32xf32>
    %53 = arith.mulf %48, %52 : vector<16x32xf32>
    %54 = vector.broadcast %33 : vector<1x32xf32> to vector<16x32xf32>
    %55 = arith.mulf %53, %54 : vector<16x32xf32>
    %56 = vector.broadcast %35 : vector<1x32xf32> to vector<16x32xf32>
    %57 = arith.addf %55, %56 : vector<16x32xf32>
    %c0_25 = arith.constant 0 : index
    %c0_26 = arith.constant 0 : index
    %c0_27 = arith.constant 0 : index
    %58 = vector.load %arg9[%c0_25, %c0_26, %c0_27] : memref<2x32x96xbf16, #tpu.memory_space<vmem>>, vector<1x32x96xbf16>
    %59 = vector.shape_cast %58 : vector<1x32x96xbf16> to vector<32x96xbf16>
    %60 = arith.truncf %57 : vector<16x32xf32> to vector<16x32xbf16>
    %cst_28 = arith.constant dense<0.000000e+00> : vector<16x96xf32>
    %61 = tpu.matmul %60, %59, %cst_28 {dimension_numbers = #tpu.dot_dimension_numbers<[1], [0], [0], [1], [0, 0, 1, 1], [], []>} : vector<16x32xbf16>, vector<32x96xbf16>, vector<16x96xf32> -> vector<16x96xf32>
    %c0_29 = arith.constant 0 : index
    %c0_30 = arith.constant 0 : index
    %c0_31 = arith.constant 0 : index
    %62 = vector.load %arg10[%c0_29, %c0_30, %c0_31] : memref<2x1x96xbf16, #tpu.memory_space<vmem>>, vector<1x1x96xbf16>
    %63 = vector.shape_cast %62 : vector<1x1x96xbf16> to vector<1x96xbf16>
    %64 = arith.extf %63 : vector<1x96xbf16> to vector<1x96xf32>
    %65 = vector.broadcast %64 : vector<1x96xf32> to vector<16x96xf32>
    %66 = arith.addf %61, %65 : vector<16x96xf32>
    %67 = vector.extract_strided_slice %66 {offsets = [0, 0], sizes = [16, 32], strides = [1, 1]} : vector<16x96xf32> to vector<16x32xf32>
    %68 = vector.extract_strided_slice %66 {offsets = [0, 32], sizes = [16, 32], strides = [1, 1]} : vector<16x96xf32> to vector<16x32xf32>
    %69 = vector.extract_strided_slice %66 {offsets = [0, 64], sizes = [16, 32], strides = [1, 1]} : vector<16x96xf32> to vector<16x32xf32>
    %c0_32 = arith.constant 0 : index
    %c0_33 = arith.constant 0 : index
    %c0_34 = arith.constant 0 : index
    %70 = vector.load %arg11[%c0_32, %c0_33, %c0_34] : memref<2x32x32xbf16, #tpu.memory_space<vmem>>, vector<1x32x32xbf16>
    %71 = vector.shape_cast %70 : vector<1x32x32xbf16> to vector<32x32xbf16>
    %c0_35 = arith.constant 0 : index
    %c0_36 = arith.constant 0 : index
    %c0_37 = arith.constant 0 : index
    %72 = vector.load %arg12[%c0_35, %c0_36, %c0_37] : memref<2x1x32xbf16, #tpu.memory_space<vmem>>, vector<1x1x32xbf16>
    %73 = vector.shape_cast %72 : vector<1x1x32xbf16> to vector<1x32xbf16>
    %74 = vector.extract_strided_slice %67 {offsets = [0, 0], sizes = [16, 8], strides = [1, 1]} : vector<16x32xf32> to vector<16x8xf32>
    %75 = vector.extract_strided_slice %68 {offsets = [0, 0], sizes = [16, 8], strides = [1, 1]} : vector<16x32xf32> to vector<16x8xf32>
    %76 = arith.truncf %74 : vector<16x8xf32> to vector<16x8xbf16>
    %77 = arith.truncf %75 : vector<16x8xf32> to vector<16x8xbf16>
    "tpu.trace_start"() <{level = 10 : i32, message = "qd,kd->qk"}> : () -> ()
    %cst_38 = arith.constant dense<0.000000e+00> : vector<16x16xf32>
    %78 = tpu.matmul %76, %77, %cst_38 {dimension_numbers = #tpu.dot_dimension_numbers<[1], [1], [0], [0], [0, 0, 1, 0], [], []>} : vector<16x8xbf16>, vector<16x8xbf16>, vector<16x16xf32> -> vector<16x16xf32>
    "tpu.trace_stop"() : () -> ()
    %c0_39 = arith.constant 0 : index
    %c0_40 = arith.constant 0 : index
    %c0_41 = arith.constant 0 : index
    %79 = vector.load %arg6[%c0_39, %c0_40, %c0_41] : memref<4x16x16xf32, #tpu.memory_space<vmem>>, vector<1x16x16xf32>
    %80 = vector.shape_cast %79 : vector<1x16x16xf32> to vector<16x16xf32>
    %81 = arith.addf %78, %80 : vector<16x16xf32>
    %cst_42 = arith.constant dense<0xFF800000> : vector<16xf32>
    %82 = vector.multi_reduction <maximumf>, %81, %cst_42 [1] : vector<16x16xf32> to vector<16xf32>
    %83 = vector.shape_cast %82 : vector<16xf32> to vector<16x1xf32>
    %84 = vector.broadcast %83 : vector<16x1xf32> to vector<16x16xf32>
    %85 = arith.subf %81, %84 : vector<16x16xf32>
    %86 = math.exp %85 : vector<16x16xf32>
    %cst_43 = arith.constant dense<0.000000e+00> : vector<16xf32>
    %87 = vector.multi_reduction <add>, %86, %cst_43 [1] : vector<16x16xf32> to vector<16xf32>
    %88 = vector.shape_cast %87 : vector<16xf32> to vector<16x1xf32>
    %89 = tpu.reciprocal %88 {approx = true} : vector<16x1xf32> -> vector<16x1xf32>
    %90 = vector.broadcast %89 : vector<16x1xf32> to vector<16x16xf32>
    %91 = arith.mulf %86, %90 : vector<16x16xf32>
    %92 = vector.extract_strided_slice %69 {offsets = [0, 0], sizes = [16, 8], strides = [1, 1]} : vector<16x32xf32> to vector<16x8xf32>
    %93 = arith.truncf %91 : vector<16x16xf32> to vector<16x16xbf16>
    %94 = arith.truncf %92 : vector<16x8xf32> to vector<16x8xbf16>
    %cst_44 = arith.constant dense<0.000000e+00> : vector<16x8xf32>
    %95 = tpu.matmul %93, %94, %cst_44 {dimension_numbers = #tpu.dot_dimension_numbers<[1], [0], [0], [1], [0, 0, 1, 1], [], []>} : vector<16x16xbf16>, vector<16x8xbf16>, vector<16x8xf32> -> vector<16x8xf32>
    %96 = vector.extract_strided_slice %67 {offsets = [0, 8], sizes = [16, 8], strides = [1, 1]} : vector<16x32xf32> to vector<16x8xf32>
    %97 = vector.extract_strided_slice %68 {offsets = [0, 8], sizes = [16, 8], strides = [1, 1]} : vector<16x32xf32> to vector<16x8xf32>
    %98 = arith.truncf %96 : vector<16x8xf32> to vector<16x8xbf16>
    %99 = arith.truncf %97 : vector<16x8xf32> to vector<16x8xbf16>
    "tpu.trace_start"() <{level = 10 : i32, message = "qd,kd->qk"}> : () -> ()
    %cst_45 = arith.constant dense<0.000000e+00> : vector<16x16xf32>
    %100 = tpu.matmul %98, %99, %cst_45 {dimension_numbers = #tpu.dot_dimension_numbers<[1], [1], [0], [0], [0, 0, 1, 0], [], []>} : vector<16x8xbf16>, vector<16x8xbf16>, vector<16x16xf32> -> vector<16x16xf32>
    "tpu.trace_stop"() : () -> ()
    %c1 = arith.constant 1 : index
    %c0_46 = arith.constant 0 : index
    %c0_47 = arith.constant 0 : index
    %101 = vector.load %arg6[%c1, %c0_46, %c0_47] : memref<4x16x16xf32, #tpu.memory_space<vmem>>, vector<1x16x16xf32>
    %102 = vector.shape_cast %101 : vector<1x16x16xf32> to vector<16x16xf32>
    %103 = arith.addf %100, %102 : vector<16x16xf32>
    %cst_48 = arith.constant dense<0xFF800000> : vector<16xf32>
    %104 = vector.multi_reduction <maximumf>, %103, %cst_48 [1] : vector<16x16xf32> to vector<16xf32>
    %105 = vector.shape_cast %104 : vector<16xf32> to vector<16x1xf32>
    %106 = vector.broadcast %105 : vector<16x1xf32> to vector<16x16xf32>
    %107 = arith.subf %103, %106 : vector<16x16xf32>
    %108 = math.exp %107 : vector<16x16xf32>
    %cst_49 = arith.constant dense<0.000000e+00> : vector<16xf32>
    %109 = vector.multi_reduction <add>, %108, %cst_49 [1] : vector<16x16xf32> to vector<16xf32>
    %110 = vector.shape_cast %109 : vector<16xf32> to vector<16x1xf32>
    %111 = tpu.reciprocal %110 {approx = true} : vector<16x1xf32> -> vector<16x1xf32>
    %112 = vector.broadcast %111 : vector<16x1xf32> to vector<16x16xf32>
    %113 = arith.mulf %108, %112 : vector<16x16xf32>
    %114 = vector.extract_strided_slice %69 {offsets = [0, 8], sizes = [16, 8], strides = [1, 1]} : vector<16x32xf32> to vector<16x8xf32>
    %115 = arith.truncf %113 : vector<16x16xf32> to vector<16x16xbf16>
    %116 = arith.truncf %114 : vector<16x8xf32> to vector<16x8xbf16>
    %cst_50 = arith.constant dense<0.000000e+00> : vector<16x8xf32>
    %117 = tpu.matmul %115, %116, %cst_50 {dimension_numbers = #tpu.dot_dimension_numbers<[1], [0], [0], [1], [0, 0, 1, 1], [], []>} : vector<16x16xbf16>, vector<16x8xbf16>, vector<16x8xf32> -> vector<16x8xf32>
    %118 = vector.extract_strided_slice %67 {offsets = [0, 16], sizes = [16, 8], strides = [1, 1]} : vector<16x32xf32> to vector<16x8xf32>
    %119 = vector.extract_strided_slice %68 {offsets = [0, 16], sizes = [16, 8], strides = [1, 1]} : vector<16x32xf32> to vector<16x8xf32>
    %120 = arith.truncf %118 : vector<16x8xf32> to vector<16x8xbf16>
    %121 = arith.truncf %119 : vector<16x8xf32> to vector<16x8xbf16>
    "tpu.trace_start"() <{level = 10 : i32, message = "qd,kd->qk"}> : () -> ()
    %cst_51 = arith.constant dense<0.000000e+00> : vector<16x16xf32>
    %122 = tpu.matmul %120, %121, %cst_51 {dimension_numbers = #tpu.dot_dimension_numbers<[1], [1], [0], [0], [0, 0, 1, 0], [], []>} : vector<16x8xbf16>, vector<16x8xbf16>, vector<16x16xf32> -> vector<16x16xf32>
    "tpu.trace_stop"() : () -> ()
    %c2 = arith.constant 2 : index
    %c0_52 = arith.constant 0 : index
    %c0_53 = arith.constant 0 : index
    %123 = vector.load %arg6[%c2, %c0_52, %c0_53] : memref<4x16x16xf32, #tpu.memory_space<vmem>>, vector<1x16x16xf32>
    %124 = vector.shape_cast %123 : vector<1x16x16xf32> to vector<16x16xf32>
    %125 = arith.addf %122, %124 : vector<16x16xf32>
    %cst_54 = arith.constant dense<0xFF800000> : vector<16xf32>
    %126 = vector.multi_reduction <maximumf>, %125, %cst_54 [1] : vector<16x16xf32> to vector<16xf32>
    %127 = vector.shape_cast %126 : vector<16xf32> to vector<16x1xf32>
    %128 = vector.broadcast %127 : vector<16x1xf32> to vector<16x16xf32>
    %129 = arith.subf %125, %128 : vector<16x16xf32>
    %130 = math.exp %129 : vector<16x16xf32>
    %cst_55 = arith.constant dense<0.000000e+00> : vector<16xf32>
    %131 = vector.multi_reduction <add>, %130, %cst_55 [1] : vector<16x16xf32> to vector<16xf32>
    %132 = vector.shape_cast %131 : vector<16xf32> to vector<16x1xf32>
    %133 = tpu.reciprocal %132 {approx = true} : vector<16x1xf32> -> vector<16x1xf32>
    %134 = vector.broadcast %133 : vector<16x1xf32> to vector<16x16xf32>
    %135 = arith.mulf %130, %134 : vector<16x16xf32>
    %136 = vector.extract_strided_slice %69 {offsets = [0, 16], sizes = [16, 8], strides = [1, 1]} : vector<16x32xf32> to vector<16x8xf32>
    %137 = arith.truncf %135 : vector<16x16xf32> to vector<16x16xbf16>
    %138 = arith.truncf %136 : vector<16x8xf32> to vector<16x8xbf16>
    %cst_56 = arith.constant dense<0.000000e+00> : vector<16x8xf32>
    %139 = tpu.matmul %137, %138, %cst_56 {dimension_numbers = #tpu.dot_dimension_numbers<[1], [0], [0], [1], [0, 0, 1, 1], [], []>} : vector<16x16xbf16>, vector<16x8xbf16>, vector<16x8xf32> -> vector<16x8xf32>
    %140 = vector.extract_strided_slice %67 {offsets = [0, 24], sizes = [16, 8], strides = [1, 1]} : vector<16x32xf32> to vector<16x8xf32>
    %141 = vector.extract_strided_slice %68 {offsets = [0, 24], sizes = [16, 8], strides = [1, 1]} : vector<16x32xf32> to vector<16x8xf32>
    %142 = arith.truncf %140 : vector<16x8xf32> to vector<16x8xbf16>
    %143 = arith.truncf %141 : vector<16x8xf32> to vector<16x8xbf16>
    "tpu.trace_start"() <{level = 10 : i32, message = "qd,kd->qk"}> : () -> ()
    %cst_57 = arith.constant dense<0.000000e+00> : vector<16x16xf32>
    %144 = tpu.matmul %142, %143, %cst_57 {dimension_numbers = #tpu.dot_dimension_numbers<[1], [1], [0], [0], [0, 0, 1, 0], [], []>} : vector<16x8xbf16>, vector<16x8xbf16>, vector<16x16xf32> -> vector<16x16xf32>
    "tpu.trace_stop"() : () -> ()
    %c3 = arith.constant 3 : index
    %c0_58 = arith.constant 0 : index
    %c0_59 = arith.constant 0 : index
    %145 = vector.load %arg6[%c3, %c0_58, %c0_59] : memref<4x16x16xf32, #tpu.memory_space<vmem>>, vector<1x16x16xf32>
    %146 = vector.shape_cast %145 : vector<1x16x16xf32> to vector<16x16xf32>
    %147 = arith.addf %144, %146 : vector<16x16xf32>
    %cst_60 = arith.constant dense<0xFF800000> : vector<16xf32>
    %148 = vector.multi_reduction <maximumf>, %147, %cst_60 [1] : vector<16x16xf32> to vector<16xf32>
    %149 = vector.shape_cast %148 : vector<16xf32> to vector<16x1xf32>
    %150 = vector.broadcast %149 : vector<16x1xf32> to vector<16x16xf32>
    %151 = arith.subf %147, %150 : vector<16x16xf32>
    %152 = math.exp %151 : vector<16x16xf32>
    %cst_61 = arith.constant dense<0.000000e+00> : vector<16xf32>
    %153 = vector.multi_reduction <add>, %152, %cst_61 [1] : vector<16x16xf32> to vector<16xf32>
    %154 = vector.shape_cast %153 : vector<16xf32> to vector<16x1xf32>
    %155 = tpu.reciprocal %154 {approx = true} : vector<16x1xf32> -> vector<16x1xf32>
    %156 = vector.broadcast %155 : vector<16x1xf32> to vector<16x16xf32>
    %157 = arith.mulf %152, %156 : vector<16x16xf32>
    %158 = vector.extract_strided_slice %69 {offsets = [0, 24], sizes = [16, 8], strides = [1, 1]} : vector<16x32xf32> to vector<16x8xf32>
    %159 = arith.truncf %157 : vector<16x16xf32> to vector<16x16xbf16>
    %160 = arith.truncf %158 : vector<16x8xf32> to vector<16x8xbf16>
    %cst_62 = arith.constant dense<0.000000e+00> : vector<16x8xf32>
    %161 = tpu.matmul %159, %160, %cst_62 {dimension_numbers = #tpu.dot_dimension_numbers<[1], [0], [0], [1], [0, 0, 1, 1], [], []>} : vector<16x16xbf16>, vector<16x8xbf16>, vector<16x8xf32> -> vector<16x8xf32>
    %162 = tpu.concatenate %95, %117, %139, %161 in 1 : vector<16x8xf32>, vector<16x8xf32>, vector<16x8xf32>, vector<16x8xf32> -> vector<16x32xf32>
    %163 = arith.truncf %162 : vector<16x32xf32> to vector<16x32xbf16>
    %cst_63 = arith.constant dense<0.000000e+00> : vector<16x32xf32>
    %164 = tpu.matmul %163, %71, %cst_63 {dimension_numbers = #tpu.dot_dimension_numbers<[1], [0], [0], [1], [0, 0, 1, 1], [], []>} : vector<16x32xbf16>, vector<32x32xbf16>, vector<16x32xf32> -> vector<16x32xf32>
    %165 = arith.extf %73 : vector<1x32xbf16> to vector<1x32xf32>
    %166 = vector.broadcast %165 : vector<1x32xf32> to vector<16x32xf32>
    %167 = arith.addf %164, %166 : vector<16x32xf32>
    %168 = arith.addf %31, %167 : vector<16x32xf32>
    %c0_64 = arith.constant 0 : index
    %c0_65 = arith.constant 0 : index
    %c0_66 = arith.constant 0 : index
    %169 = vector.load %arg13[%c0_64, %c0_65, %c0_66] : memref<2x1x32xf32, #tpu.memory_space<vmem>>, vector<1x1x32xf32>
    %170 = vector.shape_cast %169 : vector<1x1x32xf32> to vector<1x32xf32>
    %c0_67 = arith.constant 0 : index
    %c0_68 = arith.constant 0 : index
    %c0_69 = arith.constant 0 : index
    %171 = vector.load %arg14[%c0_67, %c0_68, %c0_69] : memref<2x1x32xf32, #tpu.memory_space<vmem>>, vector<1x1x32xf32>
    %172 = vector.shape_cast %171 : vector<1x1x32xf32> to vector<1x32xf32>
    %cst_70 = arith.constant dense<0.000000e+00> : vector<16xf32>
    %173 = vector.multi_reduction <add>, %168, %cst_70 [1] : vector<16x32xf32> to vector<16xf32>
    %174 = vector.shape_cast %173 : vector<16xf32> to vector<16x1xf32>
    %cst_71 = arith.constant 3.200000e+01 : f32
    %175 = vector.broadcast %cst_71 : f32 to vector<16x1xf32>
    %176 = arith.divf %174, %175 : vector<16x1xf32>
    %177 = vector.broadcast %176 : vector<16x1xf32> to vector<16x32xf32>
    %178 = arith.subf %168, %177 : vector<16x32xf32>
    %179 = arith.mulf %178, %178 : vector<16x32xf32>
    %cst_72 = arith.constant dense<0.000000e+00> : vector<16xf32>
    %180 = vector.multi_reduction <add>, %179, %cst_72 [1] : vector<16x32xf32> to vector<16xf32>
    %181 = vector.shape_cast %180 : vector<16xf32> to vector<16x1xf32>
    %cst_73 = arith.constant 3.200000e+01 : f32
    %182 = vector.broadcast %cst_73 : f32 to vector<16x1xf32>
    %183 = arith.divf %181, %182 : vector<16x1xf32>
    %184 = vector.broadcast %176 : vector<16x1xf32> to vector<16x32xf32>
    %185 = arith.subf %168, %184 : vector<16x32xf32>
    %cst_74 = arith.constant 9.99999974E-6 : f32
    %186 = vector.broadcast %cst_74 : f32 to vector<16x1xf32>
    %187 = arith.addf %183, %186 : vector<16x1xf32>
    %188 = math.rsqrt %187 : vector<16x1xf32>
    %189 = vector.broadcast %188 : vector<16x1xf32> to vector<16x32xf32>
    %190 = arith.mulf %185, %189 : vector<16x32xf32>
    %191 = vector.broadcast %170 : vector<1x32xf32> to vector<16x32xf32>
    %192 = arith.mulf %190, %191 : vector<16x32xf32>
    %193 = vector.broadcast %172 : vector<1x32xf32> to vector<16x32xf32>
    %194 = arith.addf %192, %193 : vector<16x32xf32>
    %c0_75 = arith.constant 0 : index
    %c0_76 = arith.constant 0 : index
    %c0_77 = arith.constant 0 : index
    %195 = vector.load %arg15[%c0_75, %c0_76, %c0_77] : memref<2x32x64xbf16, #tpu.memory_space<vmem>>, vector<1x32x64xbf16>
    %196 = vector.shape_cast %195 : vector<1x32x64xbf16> to vector<32x64xbf16>
    %197 = arith.truncf %194 : vector<16x32xf32> to vector<16x32xbf16>
    %cst_78 = arith.constant dense<0.000000e+00> : vector<16x64xf32>
    %198 = tpu.matmul %197, %196, %cst_78 {dimension_numbers = #tpu.dot_dimension_numbers<[1], [0], [0], [1], [0, 0, 1, 1], [], []>} : vector<16x32xbf16>, vector<32x64xbf16>, vector<16x64xf32> -> vector<16x64xf32>
    %c0_79 = arith.constant 0 : index
    %c0_80 = arith.constant 0 : index
    %c0_81 = arith.constant 0 : index
    %199 = vector.load %arg16[%c0_79, %c0_80, %c0_81] : memref<2x1x64xbf16, #tpu.memory_space<vmem>>, vector<1x1x64xbf16>
    %200 = vector.shape_cast %199 : vector<1x1x64xbf16> to vector<1x64xbf16>
    %201 = arith.extf %200 : vector<1x64xbf16> to vector<1x64xf32>
    %202 = vector.broadcast %201 : vector<1x64xf32> to vector<16x64xf32>
    %203 = arith.addf %198, %202 : vector<16x64xf32>
    %204 = arith.mulf %203, %203 : vector<16x64xf32>
    %205 = arith.mulf %203, %204 : vector<16x64xf32>
    %cst_82 = arith.constant 4.471500e-02 : f32
    %206 = vector.broadcast %cst_82 : f32 to vector<16x64xf32>
    %207 = arith.mulf %206, %205 : vector<16x64xf32>
    %208 = arith.addf %203, %207 : vector<16x64xf32>
    %cst_83 = arith.constant 0.797884583 : f32
    %209 = vector.broadcast %cst_83 : f32 to vector<16x64xf32>
    %210 = arith.mulf %209, %208 : vector<16x64xf32>
    %211 = math.tanh %210 : vector<16x64xf32>
    %cst_84 = arith.constant 1.000000e+00 : f32
    %212 = vector.broadcast %cst_84 : f32 to vector<16x64xf32>
    %213 = arith.addf %212, %211 : vector<16x64xf32>
    %cst_85 = arith.constant 5.000000e-01 : f32
    %214 = vector.broadcast %cst_85 : f32 to vector<16x64xf32>
    %215 = arith.mulf %214, %213 : vector<16x64xf32>
    %216 = arith.mulf %203, %215 : vector<16x64xf32>
    %c0_86 = arith.constant 0 : index
    %c0_87 = arith.constant 0 : index
    %c0_88 = arith.constant 0 : index
    %217 = vector.load %arg17[%c0_86, %c0_87, %c0_88] : memref<2x64x32xbf16, #tpu.memory_space<vmem>>, vector<1x64x32xbf16>
    %218 = vector.shape_cast %217 : vector<1x64x32xbf16> to vector<64x32xbf16>
    %219 = arith.truncf %216 : vector<16x64xf32> to vector<16x64xbf16>
    %cst_89 = arith.constant dense<0.000000e+00> : vector<16x32xf32>
    %220 = tpu.matmul %219, %218, %cst_89 {dimension_numbers = #tpu.dot_dimension_numbers<[1], [0], [0], [1], [0, 0, 1, 1], [], []>} : vector<16x64xbf16>, vector<64x32xbf16>, vector<16x32xf32> -> vector<16x32xf32>
    %221 = arith.addf %168, %220 : vector<16x32xf32>
    %c0_90 = arith.constant 0 : index
    %c0_91 = arith.constant 0 : index
    %c0_92 = arith.constant 0 : index
    %222 = vector.load %arg18[%c0_90, %c0_91, %c0_92] : memref<2x1x32xbf16, #tpu.memory_space<vmem>>, vector<1x1x32xbf16>
    %223 = vector.shape_cast %222 : vector<1x1x32xbf16> to vector<1x32xbf16>
    %224 = arith.extf %223 : vector<1x32xbf16> to vector<1x32xf32>
    %225 = vector.broadcast %224 : vector<1x32xf32> to vector<16x32xf32>
    %226 = arith.addf %221, %225 : vector<16x32xf32>
    %c1_93 = arith.constant 1 : index
    %c0_94 = arith.constant 0 : index
    %c0_95 = arith.constant 0 : index
    %227 = vector.load %arg7[%c1_93, %c0_94, %c0_95] : memref<2x1x32xf32, #tpu.memory_space<vmem>>, vector<1x1x32xf32>
    %228 = vector.shape_cast %227 : vector<1x1x32xf32> to vector<1x32xf32>
    %c1_96 = arith.constant 1 : index
    %c0_97 = arith.constant 0 : index
    %c0_98 = arith.constant 0 : index
    %229 = vector.load %arg8[%c1_96, %c0_97, %c0_98] : memref<2x1x32xf32, #tpu.memory_space<vmem>>, vector<1x1x32xf32>
    %230 = vector.shape_cast %229 : vector<1x1x32xf32> to vector<1x32xf32>
    %cst_99 = arith.constant dense<0.000000e+00> : vector<16xf32>
    %231 = vector.multi_reduction <add>, %226, %cst_99 [1] : vector<16x32xf32> to vector<16xf32>
    %232 = vector.shape_cast %231 : vector<16xf32> to vector<16x1xf32>
    %cst_100 = arith.constant 3.200000e+01 : f32
    %233 = vector.broadcast %cst_100 : f32 to vector<16x1xf32>
    %234 = arith.divf %232, %233 : vector<16x1xf32>
    %235 = vector.broadcast %234 : vector<16x1xf32> to vector<16x32xf32>
    %236 = arith.subf %226, %235 : vector<16x32xf32>
    %237 = arith.mulf %236, %236 : vector<16x32xf32>
    %cst_101 = arith.constant dense<0.000000e+00> : vector<16xf32>
    %238 = vector.multi_reduction <add>, %237, %cst_101 [1] : vector<16x32xf32> to vector<16xf32>
    %239 = vector.shape_cast %238 : vector<16xf32> to vector<16x1xf32>
    %cst_102 = arith.constant 3.200000e+01 : f32
    %240 = vector.broadcast %cst_102 : f32 to vector<16x1xf32>
    %241 = arith.divf %239, %240 : vector<16x1xf32>
    %242 = vector.broadcast %234 : vector<16x1xf32> to vector<16x32xf32>
    %243 = arith.subf %226, %242 : vector<16x32xf32>
    %cst_103 = arith.constant 9.99999974E-6 : f32
    %244 = vector.broadcast %cst_103 : f32 to vector<16x1xf32>
    %245 = arith.addf %241, %244 : vector<16x1xf32>
    %246 = math.rsqrt %245 : vector<16x1xf32>
    %247 = vector.broadcast %246 : vector<16x1xf32> to vector<16x32xf32>
    %248 = arith.mulf %243, %247 : vector<16x32xf32>
    %249 = vector.broadcast %228 : vector<1x32xf32> to vector<16x32xf32>
    %250 = arith.mulf %248, %249 : vector<16x32xf32>
    %251 = vector.broadcast %230 : vector<1x32xf32> to vector<16x32xf32>
    %252 = arith.addf %250, %251 : vector<16x32xf32>
    %c1_104 = arith.constant 1 : index
    %c0_105 = arith.constant 0 : index
    %c0_106 = arith.constant 0 : index
    %253 = vector.load %arg9[%c1_104, %c0_105, %c0_106] : memref<2x32x96xbf16, #tpu.memory_space<vmem>>, vector<1x32x96xbf16>
    %254 = vector.shape_cast %253 : vector<1x32x96xbf16> to vector<32x96xbf16>
    %255 = arith.truncf %252 : vector<16x32xf32> to vector<16x32xbf16>
    %cst_107 = arith.constant dense<0.000000e+00> : vector<16x96xf32>
    %256 = tpu.matmul %255, %254, %cst_107 {dimension_numbers = #tpu.dot_dimension_numbers<[1], [0], [0], [1], [0, 0, 1, 1], [], []>} : vector<16x32xbf16>, vector<32x96xbf16>, vector<16x96xf32> -> vector<16x96xf32>
    %c1_108 = arith.constant 1 : index
    %c0_109 = arith.constant 0 : index
    %c0_110 = arith.constant 0 : index
    %257 = vector.load %arg10[%c1_108, %c0_109, %c0_110] : memref<2x1x96xbf16, #tpu.memory_space<vmem>>, vector<1x1x96xbf16>
    %258 = vector.shape_cast %257 : vector<1x1x96xbf16> to vector<1x96xbf16>
    %259 = arith.extf %258 : vector<1x96xbf16> to vector<1x96xf32>
    %260 = vector.broadcast %259 : vector<1x96xf32> to vector<16x96xf32>
    %261 = arith.addf %256, %260 : vector<16x96xf32>
    %262 = vector.extract_strided_slice %261 {offsets = [0, 0], sizes = [16, 32], strides = [1, 1]} : vector<16x96xf32> to vector<16x32xf32>
    %263 = vector.extract_strided_slice %261 {offsets = [0, 32], sizes = [16, 32], strides = [1, 1]} : vector<16x96xf32> to vector<16x32xf32>
    %264 = vector.extract_strided_slice %261 {offsets = [0, 64], sizes = [16, 32], strides = [1, 1]} : vector<16x96xf32> to vector<16x32xf32>
    %c1_111 = arith.constant 1 : index
    %c0_112 = arith.constant 0 : index
    %c0_113 = arith.constant 0 : index
    %265 = vector.load %arg11[%c1_111, %c0_112, %c0_113] : memref<2x32x32xbf16, #tpu.memory_space<vmem>>, vector<1x32x32xbf16>
    %266 = vector.shape_cast %265 : vector<1x32x32xbf16> to vector<32x32xbf16>
    %c1_114 = arith.constant 1 : index
    %c0_115 = arith.constant 0 : index
    %c0_116 = arith.constant 0 : index
    %267 = vector.load %arg12[%c1_114, %c0_115, %c0_116] : memref<2x1x32xbf16, #tpu.memory_space<vmem>>, vector<1x1x32xbf16>
    %268 = vector.shape_cast %267 : vector<1x1x32xbf16> to vector<1x32xbf16>
    %269 = vector.extract_strided_slice %262 {offsets = [0, 0], sizes = [16, 8], strides = [1, 1]} : vector<16x32xf32> to vector<16x8xf32>
    %270 = vector.extract_strided_slice %263 {offsets = [0, 0], sizes = [16, 8], strides = [1, 1]} : vector<16x32xf32> to vector<16x8xf32>
    %271 = arith.truncf %269 : vector<16x8xf32> to vector<16x8xbf16>
    %272 = arith.truncf %270 : vector<16x8xf32> to vector<16x8xbf16>
    "tpu.trace_start"() <{level = 10 : i32, message = "qd,kd->qk"}> : () -> ()
    %cst_117 = arith.constant dense<0.000000e+00> : vector<16x16xf32>
    %273 = tpu.matmul %271, %272, %cst_117 {dimension_numbers = #tpu.dot_dimension_numbers<[1], [1], [0], [0], [0, 0, 1, 0], [], []>} : vector<16x8xbf16>, vector<16x8xbf16>, vector<16x16xf32> -> vector<16x16xf32>
    "tpu.trace_stop"() : () -> ()
    %c0_118 = arith.constant 0 : index
    %c0_119 = arith.constant 0 : index
    %c0_120 = arith.constant 0 : index
    %274 = vector.load %arg6[%c0_118, %c0_119, %c0_120] : memref<4x16x16xf32, #tpu.memory_space<vmem>>, vector<1x16x16xf32>
    %275 = vector.shape_cast %274 : vector<1x16x16xf32> to vector<16x16xf32>
    %276 = arith.addf %273, %275 : vector<16x16xf32>
    %cst_121 = arith.constant dense<0xFF800000> : vector<16xf32>
    %277 = vector.multi_reduction <maximumf>, %276, %cst_121 [1] : vector<16x16xf32> to vector<16xf32>
    %278 = vector.shape_cast %277 : vector<16xf32> to vector<16x1xf32>
    %279 = vector.broadcast %278 : vector<16x1xf32> to vector<16x16xf32>
    %280 = arith.subf %276, %279 : vector<16x16xf32>
    %281 = math.exp %280 : vector<16x16xf32>
    %cst_122 = arith.constant dense<0.000000e+00> : vector<16xf32>
    %282 = vector.multi_reduction <add>, %281, %cst_122 [1] : vector<16x16xf32> to vector<16xf32>
    %283 = vector.shape_cast %282 : vector<16xf32> to vector<16x1xf32>
    %284 = tpu.reciprocal %283 {approx = true} : vector<16x1xf32> -> vector<16x1xf32>
    %285 = vector.broadcast %284 : vector<16x1xf32> to vector<16x16xf32>
    %286 = arith.mulf %281, %285 : vector<16x16xf32>
    %287 = vector.extract_strided_slice %264 {offsets = [0, 0], sizes = [16, 8], strides = [1, 1]} : vector<16x32xf32> to vector<16x8xf32>
    %288 = arith.truncf %286 : vector<16x16xf32> to vector<16x16xbf16>
    %289 = arith.truncf %287 : vector<16x8xf32> to vector<16x8xbf16>
    %cst_123 = arith.constant dense<0.000000e+00> : vector<16x8xf32>
    %290 = tpu.matmul %288, %289, %cst_123 {dimension_numbers = #tpu.dot_dimension_numbers<[1], [0], [0], [1], [0, 0, 1, 1], [], []>} : vector<16x16xbf16>, vector<16x8xbf16>, vector<16x8xf32> -> vector<16x8xf32>
    %291 = vector.extract_strided_slice %262 {offsets = [0, 8], sizes = [16, 8], strides = [1, 1]} : vector<16x32xf32> to vector<16x8xf32>
    %292 = vector.extract_strided_slice %263 {offsets = [0, 8], sizes = [16, 8], strides = [1, 1]} : vector<16x32xf32> to vector<16x8xf32>
    %293 = arith.truncf %291 : vector<16x8xf32> to vector<16x8xbf16>
    %294 = arith.truncf %292 : vector<16x8xf32> to vector<16x8xbf16>
    "tpu.trace_start"() <{level = 10 : i32, message = "qd,kd->qk"}> : () -> ()
    %cst_124 = arith.constant dense<0.000000e+00> : vector<16x16xf32>
    %295 = tpu.matmul %293, %294, %cst_124 {dimension_numbers = #tpu.dot_dimension_numbers<[1], [1], [0], [0], [0, 0, 1, 0], [], []>} : vector<16x8xbf16>, vector<16x8xbf16>, vector<16x16xf32> -> vector<16x16xf32>
    "tpu.trace_stop"() : () -> ()
    %c1_125 = arith.constant 1 : index
    %c0_126 = arith.constant 0 : index
    %c0_127 = arith.constant 0 : index
    %296 = vector.load %arg6[%c1_125, %c0_126, %c0_127] : memref<4x16x16xf32, #tpu.memory_space<vmem>>, vector<1x16x16xf32>
    %297 = vector.shape_cast %296 : vector<1x16x16xf32> to vector<16x16xf32>
    %298 = arith.addf %295, %297 : vector<16x16xf32>
    %cst_128 = arith.constant dense<0xFF800000> : vector<16xf32>
    %299 = vector.multi_reduction <maximumf>, %298, %cst_128 [1] : vector<16x16xf32> to vector<16xf32>
    %300 = vector.shape_cast %299 : vector<16xf32> to vector<16x1xf32>
    %301 = vector.broadcast %300 : vector<16x1xf32> to vector<16x16xf32>
    %302 = arith.subf %298, %301 : vector<16x16xf32>
    %303 = math.exp %302 : vector<16x16xf32>
    %cst_129 = arith.constant dense<0.000000e+00> : vector<16xf32>
    %304 = vector.multi_reduction <add>, %303, %cst_129 [1] : vector<16x16xf32> to vector<16xf32>
    %305 = vector.shape_cast %304 : vector<16xf32> to vector<16x1xf32>
    %306 = tpu.reciprocal %305 {approx = true} : vector<16x1xf32> -> vector<16x1xf32>
    %307 = vector.broadcast %306 : vector<16x1xf32> to vector<16x16xf32>
    %308 = arith.mulf %303, %307 : vector<16x16xf32>
    %309 = vector.extract_strided_slice %264 {offsets = [0, 8], sizes = [16, 8], strides = [1, 1]} : vector<16x32xf32> to vector<16x8xf32>
    %310 = arith.truncf %308 : vector<16x16xf32> to vector<16x16xbf16>
    %311 = arith.truncf %309 : vector<16x8xf32> to vector<16x8xbf16>
    %cst_130 = arith.constant dense<0.000000e+00> : vector<16x8xf32>
    %312 = tpu.matmul %310, %311, %cst_130 {dimension_numbers = #tpu.dot_dimension_numbers<[1], [0], [0], [1], [0, 0, 1, 1], [], []>} : vector<16x16xbf16>, vector<16x8xbf16>, vector<16x8xf32> -> vector<16x8xf32>
    %313 = vector.extract_strided_slice %262 {offsets = [0, 16], sizes = [16, 8], strides = [1, 1]} : vector<16x32xf32> to vector<16x8xf32>
    %314 = vector.extract_strided_slice %263 {offsets = [0, 16], sizes = [16, 8], strides = [1, 1]} : vector<16x32xf32> to vector<16x8xf32>
    %315 = arith.truncf %313 : vector<16x8xf32> to vector<16x8xbf16>
    %316 = arith.truncf %314 : vector<16x8xf32> to vector<16x8xbf16>
    "tpu.trace_start"() <{level = 10 : i32, message = "qd,kd->qk"}> : () -> ()
    %cst_131 = arith.constant dense<0.000000e+00> : vector<16x16xf32>
    %317 = tpu.matmul %315, %316, %cst_131 {dimension_numbers = #tpu.dot_dimension_numbers<[1], [1], [0], [0], [0, 0, 1, 0], [], []>} : vector<16x8xbf16>, vector<16x8xbf16>, vector<16x16xf32> -> vector<16x16xf32>
    "tpu.trace_stop"() : () -> ()
    %c2_132 = arith.constant 2 : index
    %c0_133 = arith.constant 0 : index
    %c0_134 = arith.constant 0 : index
    %318 = vector.load %arg6[%c2_132, %c0_133, %c0_134] : memref<4x16x16xf32, #tpu.memory_space<vmem>>, vector<1x16x16xf32>
    %319 = vector.shape_cast %318 : vector<1x16x16xf32> to vector<16x16xf32>
    %320 = arith.addf %317, %319 : vector<16x16xf32>
    %cst_135 = arith.constant dense<0xFF800000> : vector<16xf32>
    %321 = vector.multi_reduction <maximumf>, %320, %cst_135 [1] : vector<16x16xf32> to vector<16xf32>
    %322 = vector.shape_cast %321 : vector<16xf32> to vector<16x1xf32>
    %323 = vector.broadcast %322 : vector<16x1xf32> to vector<16x16xf32>
    %324 = arith.subf %320, %323 : vector<16x16xf32>
    %325 = math.exp %324 : vector<16x16xf32>
    %cst_136 = arith.constant dense<0.000000e+00> : vector<16xf32>
    %326 = vector.multi_reduction <add>, %325, %cst_136 [1] : vector<16x16xf32> to vector<16xf32>
    %327 = vector.shape_cast %326 : vector<16xf32> to vector<16x1xf32>
    %328 = tpu.reciprocal %327 {approx = true} : vector<16x1xf32> -> vector<16x1xf32>
    %329 = vector.broadcast %328 : vector<16x1xf32> to vector<16x16xf32>
    %330 = arith.mulf %325, %329 : vector<16x16xf32>
    %331 = vector.extract_strided_slice %264 {offsets = [0, 16], sizes = [16, 8], strides = [1, 1]} : vector<16x32xf32> to vector<16x8xf32>
    %332 = arith.truncf %330 : vector<16x16xf32> to vector<16x16xbf16>
    %333 = arith.truncf %331 : vector<16x8xf32> to vector<16x8xbf16>
    %cst_137 = arith.constant dense<0.000000e+00> : vector<16x8xf32>
    %334 = tpu.matmul %332, %333, %cst_137 {dimension_numbers = #tpu.dot_dimension_numbers<[1], [0], [0], [1], [0, 0, 1, 1], [], []>} : vector<16x16xbf16>, vector<16x8xbf16>, vector<16x8xf32> -> vector<16x8xf32>
    %335 = vector.extract_strided_slice %262 {offsets = [0, 24], sizes = [16, 8], strides = [1, 1]} : vector<16x32xf32> to vector<16x8xf32>
    %336 = vector.extract_strided_slice %263 {offsets = [0, 24], sizes = [16, 8], strides = [1, 1]} : vector<16x32xf32> to vector<16x8xf32>
    %337 = arith.truncf %335 : vector<16x8xf32> to vector<16x8xbf16>
    %338 = arith.truncf %336 : vector<16x8xf32> to vector<16x8xbf16>
    "tpu.trace_start"() <{level = 10 : i32, message = "qd,kd->qk"}> : () -> ()
    %cst_138 = arith.constant dense<0.000000e+00> : vector<16x16xf32>
    %339 = tpu.matmul %337, %338, %cst_138 {dimension_numbers = #tpu.dot_dimension_numbers<[1], [1], [0], [0], [0, 0, 1, 0], [], []>} : vector<16x8xbf16>, vector<16x8xbf16>, vector<16x16xf32> -> vector<16x16xf32>
    "tpu.trace_stop"() : () -> ()
    %c3_139 = arith.constant 3 : index
    %c0_140 = arith.constant 0 : index
    %c0_141 = arith.constant 0 : index
    %340 = vector.load %arg6[%c3_139, %c0_140, %c0_141] : memref<4x16x16xf32, #tpu.memory_space<vmem>>, vector<1x16x16xf32>
    %341 = vector.shape_cast %340 : vector<1x16x16xf32> to vector<16x16xf32>
    %342 = arith.addf %339, %341 : vector<16x16xf32>
    %cst_142 = arith.constant dense<0xFF800000> : vector<16xf32>
    %343 = vector.multi_reduction <maximumf>, %342, %cst_142 [1] : vector<16x16xf32> to vector<16xf32>
    %344 = vector.shape_cast %343 : vector<16xf32> to vector<16x1xf32>
    %345 = vector.broadcast %344 : vector<16x1xf32> to vector<16x16xf32>
    %346 = arith.subf %342, %345 : vector<16x16xf32>
    %347 = math.exp %346 : vector<16x16xf32>
    %cst_143 = arith.constant dense<0.000000e+00> : vector<16xf32>
    %348 = vector.multi_reduction <add>, %347, %cst_143 [1] : vector<16x16xf32> to vector<16xf32>
    %349 = vector.shape_cast %348 : vector<16xf32> to vector<16x1xf32>
    %350 = tpu.reciprocal %349 {approx = true} : vector<16x1xf32> -> vector<16x1xf32>
    %351 = vector.broadcast %350 : vector<16x1xf32> to vector<16x16xf32>
    %352 = arith.mulf %347, %351 : vector<16x16xf32>
    %353 = vector.extract_strided_slice %264 {offsets = [0, 24], sizes = [16, 8], strides = [1, 1]} : vector<16x32xf32> to vector<16x8xf32>
    %354 = arith.truncf %352 : vector<16x16xf32> to vector<16x16xbf16>
    %355 = arith.truncf %353 : vector<16x8xf32> to vector<16x8xbf16>
    %cst_144 = arith.constant dense<0.000000e+00> : vector<16x8xf32>
    %356 = tpu.matmul %354, %355, %cst_144 {dimension_numbers = #tpu.dot_dimension_numbers<[1], [0], [0], [1], [0, 0, 1, 1], [], []>} : vector<16x16xbf16>, vector<16x8xbf16>, vector<16x8xf32> -> vector<16x8xf32>
    %357 = tpu.concatenate %290, %312, %334, %356 in 1 : vector<16x8xf32>, vector<16x8xf32>, vector<16x8xf32>, vector<16x8xf32> -> vector<16x32xf32>
    %358 = arith.truncf %357 : vector<16x32xf32> to vector<16x32xbf16>
    %cst_145 = arith.constant dense<0.000000e+00> : vector<16x32xf32>
    %359 = tpu.matmul %358, %266, %cst_145 {dimension_numbers = #tpu.dot_dimension_numbers<[1], [0], [0], [1], [0, 0, 1, 1], [], []>} : vector<16x32xbf16>, vector<32x32xbf16>, vector<16x32xf32> -> vector<16x32xf32>
    %360 = arith.extf %268 : vector<1x32xbf16> to vector<1x32xf32>
    %361 = vector.broadcast %360 : vector<1x32xf32> to vector<16x32xf32>
    %362 = arith.addf %359, %361 : vector<16x32xf32>
    %363 = arith.addf %226, %362 : vector<16x32xf32>
    %c1_146 = arith.constant 1 : index
    %c0_147 = arith.constant 0 : index
    %c0_148 = arith.constant 0 : index
    %364 = vector.load %arg13[%c1_146, %c0_147, %c0_148] : memref<2x1x32xf32, #tpu.memory_space<vmem>>, vector<1x1x32xf32>
    %365 = vector.shape_cast %364 : vector<1x1x32xf32> to vector<1x32xf32>
    %c1_149 = arith.constant 1 : index
    %c0_150 = arith.constant 0 : index
    %c0_151 = arith.constant 0 : index
    %366 = vector.load %arg14[%c1_149, %c0_150, %c0_151] : memref<2x1x32xf32, #tpu.memory_space<vmem>>, vector<1x1x32xf32>
    %367 = vector.shape_cast %366 : vector<1x1x32xf32> to vector<1x32xf32>
    %cst_152 = arith.constant dense<0.000000e+00> : vector<16xf32>
    %368 = vector.multi_reduction <add>, %363, %cst_152 [1] : vector<16x32xf32> to vector<16xf32>
    %369 = vector.shape_cast %368 : vector<16xf32> to vector<16x1xf32>
    %cst_153 = arith.constant 3.200000e+01 : f32
    %370 = vector.broadcast %cst_153 : f32 to vector<16x1xf32>
    %371 = arith.divf %369, %370 : vector<16x1xf32>
    %372 = vector.broadcast %371 : vector<16x1xf32> to vector<16x32xf32>
    %373 = arith.subf %363, %372 : vector<16x32xf32>
    %374 = arith.mulf %373, %373 : vector<16x32xf32>
    %cst_154 = arith.constant dense<0.000000e+00> : vector<16xf32>
    %375 = vector.multi_reduction <add>, %374, %cst_154 [1] : vector<16x32xf32> to vector<16xf32>
    %376 = vector.shape_cast %375 : vector<16xf32> to vector<16x1xf32>
    %cst_155 = arith.constant 3.200000e+01 : f32
    %377 = vector.broadcast %cst_155 : f32 to vector<16x1xf32>
    %378 = arith.divf %376, %377 : vector<16x1xf32>
    %379 = vector.broadcast %371 : vector<16x1xf32> to vector<16x32xf32>
    %380 = arith.subf %363, %379 : vector<16x32xf32>
    %cst_156 = arith.constant 9.99999974E-6 : f32
    %381 = vector.broadcast %cst_156 : f32 to vector<16x1xf32>
    %382 = arith.addf %378, %381 : vector<16x1xf32>
    %383 = math.rsqrt %382 : vector<16x1xf32>
    %384 = vector.broadcast %383 : vector<16x1xf32> to vector<16x32xf32>
    %385 = arith.mulf %380, %384 : vector<16x32xf32>
    %386 = vector.broadcast %365 : vector<1x32xf32> to vector<16x32xf32>
    %387 = arith.mulf %385, %386 : vector<16x32xf32>
    %388 = vector.broadcast %367 : vector<1x32xf32> to vector<16x32xf32>
    %389 = arith.addf %387, %388 : vector<16x32xf32>
    %c1_157 = arith.constant 1 : index
    %c0_158 = arith.constant 0 : index
    %c0_159 = arith.constant 0 : index
    %390 = vector.load %arg15[%c1_157, %c0_158, %c0_159] : memref<2x32x64xbf16, #tpu.memory_space<vmem>>, vector<1x32x64xbf16>
    %391 = vector.shape_cast %390 : vector<1x32x64xbf16> to vector<32x64xbf16>
    %392 = arith.truncf %389 : vector<16x32xf32> to vector<16x32xbf16>
    %cst_160 = arith.constant dense<0.000000e+00> : vector<16x64xf32>
    %393 = tpu.matmul %392, %391, %cst_160 {dimension_numbers = #tpu.dot_dimension_numbers<[1], [0], [0], [1], [0, 0, 1, 1], [], []>} : vector<16x32xbf16>, vector<32x64xbf16>, vector<16x64xf32> -> vector<16x64xf32>
    %c1_161 = arith.constant 1 : index
    %c0_162 = arith.constant 0 : index
    %c0_163 = arith.constant 0 : index
    %394 = vector.load %arg16[%c1_161, %c0_162, %c0_163] : memref<2x1x64xbf16, #tpu.memory_space<vmem>>, vector<1x1x64xbf16>
    %395 = vector.shape_cast %394 : vector<1x1x64xbf16> to vector<1x64xbf16>
    %396 = arith.extf %395 : vector<1x64xbf16> to vector<1x64xf32>
    %397 = vector.broadcast %396 : vector<1x64xf32> to vector<16x64xf32>
    %398 = arith.addf %393, %397 : vector<16x64xf32>
    %399 = arith.mulf %398, %398 : vector<16x64xf32>
    %400 = arith.mulf %398, %399 : vector<16x64xf32>
    %cst_164 = arith.constant 4.471500e-02 : f32
    %401 = vector.broadcast %cst_164 : f32 to vector<16x64xf32>
    %402 = arith.mulf %401, %400 : vector<16x64xf32>
    %403 = arith.addf %398, %402 : vector<16x64xf32>
    %cst_165 = arith.constant 0.797884583 : f32
    %404 = vector.broadcast %cst_165 : f32 to vector<16x64xf32>
    %405 = arith.mulf %404, %403 : vector<16x64xf32>
    %406 = math.tanh %405 : vector<16x64xf32>
    %cst_166 = arith.constant 1.000000e+00 : f32
    %407 = vector.broadcast %cst_166 : f32 to vector<16x64xf32>
    %408 = arith.addf %407, %406 : vector<16x64xf32>
    %cst_167 = arith.constant 5.000000e-01 : f32
    %409 = vector.broadcast %cst_167 : f32 to vector<16x64xf32>
    %410 = arith.mulf %409, %408 : vector<16x64xf32>
    %411 = arith.mulf %398, %410 : vector<16x64xf32>
    %c1_168 = arith.constant 1 : index
    %c0_169 = arith.constant 0 : index
    %c0_170 = arith.constant 0 : index
    %412 = vector.load %arg17[%c1_168, %c0_169, %c0_170] : memref<2x64x32xbf16, #tpu.memory_space<vmem>>, vector<1x64x32xbf16>
    %413 = vector.shape_cast %412 : vector<1x64x32xbf16> to vector<64x32xbf16>
    %414 = arith.truncf %411 : vector<16x64xf32> to vector<16x64xbf16>
    %cst_171 = arith.constant dense<0.000000e+00> : vector<16x32xf32>
    %415 = tpu.matmul %414, %413, %cst_171 {dimension_numbers = #tpu.dot_dimension_numbers<[1], [0], [0], [1], [0, 0, 1, 1], [], []>} : vector<16x64xbf16>, vector<64x32xbf16>, vector<16x32xf32> -> vector<16x32xf32>
    %416 = arith.addf %363, %415 : vector<16x32xf32>
    %c1_172 = arith.constant 1 : index
    %c0_173 = arith.constant 0 : index
    %c0_174 = arith.constant 0 : index
    %417 = vector.load %arg18[%c1_172, %c0_173, %c0_174] : memref<2x1x32xbf16, #tpu.memory_space<vmem>>, vector<1x1x32xbf16>
    %418 = vector.shape_cast %417 : vector<1x1x32xbf16> to vector<1x32xbf16>
    %419 = arith.extf %418 : vector<1x32xbf16> to vector<1x32xf32>
    %420 = vector.broadcast %419 : vector<1x32xf32> to vector<16x32xf32>
    %421 = arith.addf %416, %420 : vector<16x32xf32>
    %c0_175 = arith.constant 0 : index
    %c0_176 = arith.constant 0 : index
    %422 = vector.load %arg19[%c0_175, %c0_176] : memref<1x32xf32, #tpu.memory_space<vmem>>, vector<1x32xf32>
    %c0_177 = arith.constant 0 : index
    %c0_178 = arith.constant 0 : index
    %423 = vector.load %arg20[%c0_177, %c0_178] : memref<1x32xf32, #tpu.memory_space<vmem>>, vector<1x32xf32>
    %cst_179 = arith.constant dense<0.000000e+00> : vector<16xf32>
    %424 = vector.multi_reduction <add>, %421, %cst_179 [1] : vector<16x32xf32> to vector<16xf32>
    %425 = vector.shape_cast %424 : vector<16xf32> to vector<16x1xf32>
    %cst_180 = arith.constant 3.200000e+01 : f32
    %426 = vector.broadcast %cst_180 : f32 to vector<16x1xf32>
    %427 = arith.divf %425, %426 : vector<16x1xf32>
    %428 = vector.broadcast %427 : vector<16x1xf32> to vector<16x32xf32>
    %429 = arith.subf %421, %428 : vector<16x32xf32>
    %430 = arith.mulf %429, %429 : vector<16x32xf32>
    %cst_181 = arith.constant dense<0.000000e+00> : vector<16xf32>
    %431 = vector.multi_reduction <add>, %430, %cst_181 [1] : vector<16x32xf32> to vector<16xf32>
    %432 = vector.shape_cast %431 : vector<16xf32> to vector<16x1xf32>
    %cst_182 = arith.constant 3.200000e+01 : f32
    %433 = vector.broadcast %cst_182 : f32 to vector<16x1xf32>
    %434 = arith.divf %432, %433 : vector<16x1xf32>
    %435 = vector.broadcast %427 : vector<16x1xf32> to vector<16x32xf32>
    %436 = arith.subf %421, %435 : vector<16x32xf32>
    %cst_183 = arith.constant 9.99999974E-6 : f32
    %437 = vector.broadcast %cst_183 : f32 to vector<16x1xf32>
    %438 = arith.addf %434, %437 : vector<16x1xf32>
    %439 = math.rsqrt %438 : vector<16x1xf32>
    %440 = vector.broadcast %439 : vector<16x1xf32> to vector<16x32xf32>
    %441 = arith.mulf %436, %440 : vector<16x32xf32>
    %442 = vector.broadcast %422 : vector<1x32xf32> to vector<16x32xf32>
    %443 = arith.mulf %441, %442 : vector<16x32xf32>
    %444 = vector.broadcast %423 : vector<1x32xf32> to vector<16x32xf32>
    %445 = arith.addf %443, %444 : vector<16x32xf32>
    %446 = arith.truncf %445 : vector<16x32xf32> to vector<16x32xbf16>
    %c0_184 = arith.constant 0 : index
    %c0_185 = arith.constant 0 : index
    %447 = vector.load %arg21[%c0_184, %c0_185] : memref<16x32xbf16, #tpu.memory_space<vmem>>, vector<16x32xbf16>
    tpu.vector_store %arg21[%c0_184, %c0_185], %446 {strides = array<i32>} : memref<16x32xbf16, #tpu.memory_space<vmem>>, vector<16x32xbf16>,
    return
  }
  func.func @transform_0(%arg0: i32) -> (i32, i32) {
    %c0_i32 = arith.constant 0 : i32
    %c0_i32_0 = arith.constant 0 : i32
    %c0_i32_1 = arith.constant 0 : i32
    return %c0_i32, %c0_i32_0 : i32, i32
  }
  func.func @transform_1(%arg0: i32) -> (i32, i32) {
    %c0_i32 = arith.constant 0 : i32
    %c0_i32_0 = arith.constant 0 : i32
    %c0_i32_1 = arith.constant 0 : i32
    return %c0_i32, %c0_i32_0 : i32, i32
  }
  func.func @transform_2(%arg0: i32) -> (i32, i32) {
    %c0_i32 = arith.constant 0 : i32
    %c0_i32_0 = arith.constant 0 : i32
    %c0_i32_1 = arith.constant 0 : i32
    return %c0_i32, %c0_i32_0 : i32, i32
  }
  func.func @transform_3(%arg0: i32) -> (i32, i32) {
    %c0_i32 = arith.constant 0 : i32
    %c0_i32_0 = arith.constant 0 : i32
    %c0_i32_1 = arith.constant 0 : i32
    return %c0_i32, %c0_i32_0 : i32, i32
  }
  func.func @transform_4(%arg0: i32) -> (i32, i32) {
    %c0_i32 = arith.constant 0 : i32
    %c0_i32_0 = arith.constant 0 : i32
    %c0_i32_1 = arith.constant 0 : i32
    return %c0_i32, %c0_i32_0 : i32, i32
  }
  func.func @transform_5(%arg0: i32) -> (i32, i32, i32) {
    %c0_i32 = arith.constant 0 : i32
    %c0_i32_0 = arith.constant 0 : i32
    %c0_i32_1 = arith.constant 0 : i32
    %c0_i32_2 = arith.constant 0 : i32
    return %c0_i32, %c0_i32_0, %c0_i32_1 : i32, i32, i32
  }
  func.func @transform_6(%arg0: i32) -> (i32, i32, i32) {
    %c0_i32 = arith.constant 0 : i32
    %c0_i32_0 = arith.constant 0 : i32
    %c0_i32_1 = arith.constant 0 : i32
    %c0_i32_2 = arith.constant 0 : i32
    return %c0_i32, %c0_i32_0, %c0_i32_1 : i32, i32, i32
  }
  func.func @transform_7(%arg0: i32) -> (i32, i32, i32) {
    %c0_i32 = arith.constant 0 : i32
    %c0_i32_0 = arith.constant 0 : i32
    %c0_i32_1 = arith.constant 0 : i32
    %c0_i32_2 = arith.constant 0 : i32
    return %c0_i32, %c0_i32_0, %c0_i32_1 : i32, i32, i32
  }
  func.func @transform_8(%arg0: i32) -> (i32, i32, i32) {
    %c0_i32 = arith.constant 0 : i32
    %c0_i32_0 = arith.constant 0 : i32
    %c0_i32_1 = arith.constant 0 : i32
    %c0_i32_2 = arith.constant 0 : i32
    return %c0_i32, %c0_i32_0, %c0_i32_1 : i32, i32, i32
  }
  func.func @transform_9(%arg0: i32) -> (i32, i32, i32) {
    %c0_i32 = arith.constant 0 : i32
    %c0_i32_0 = arith.constant 0 : i32
    %c0_i32_1 = arith.constant 0 : i32
    %c0_i32_2 = arith.constant 0 : i32
    return %c0_i32, %c0_i32_0, %c0_i32_1 : i32, i32, i32
  }
  func.func @transform_10(%arg0: i32) -> (i32, i32, i32) {
    %c0_i32 = arith.constant 0 : i32
    %c0_i32_0 = arith.constant 0 : i32
    %c0_i32_1 = arith.constant 0 : i32
    %c0_i32_2 = arith.constant 0 : i32
    return %c0_i32, %c0_i32_0, %c0_i32_1 : i32, i32, i32
  }
  func.func @transform_11(%arg0: i32) -> (i32, i32, i32) {
    %c0_i32 = arith.constant 0 : i32
    %c0_i32_0 = arith.constant 0 : i32
    %c0_i32_1 = arith.constant 0 : i32
    %c0_i32_2 = arith.constant 0 : i32
    return %c0_i32, %c0_i32_0, %c0_i32_1 : i32, i32, i32
  }
  func.func @transform_12(%arg0: i32) -> (i32, i32, i32) {
    %c0_i32 = arith.constant 0 : i32
    %c0_i32_0 = arith.constant 0 : i32
    %c0_i32_1 = arith.constant 0 : i32
    %c0_i32_2 = arith.constant 0 : i32
    return %c0_i32, %c0_i32_0, %c0_i32_1 : i32, i32, i32
  }
  func.func @transform_13(%arg0: i32) -> (i32, i32, i32) {
    %c0_i32 = arith.constant 0 : i32
    %c0_i32_0 = arith.constant 0 : i32
    %c0_i32_1 = arith.constant 0 : i32
    %c0_i32_2 = arith.constant 0 : i32
    return %c0_i32, %c0_i32_0, %c0_i32_1 : i32, i32, i32
  }
  func.func @transform_14(%arg0: i32) -> (i32, i32, i32) {
    %c0_i32 = arith.constant 0 : i32
    %c0_i32_0 = arith.constant 0 : i32
    %c0_i32_1 = arith.constant 0 : i32
    %c0_i32_2 = arith.constant 0 : i32
    return %c0_i32, %c0_i32_0, %c0_i32_1 : i32, i32, i32
  }
  func.func @transform_15(%arg0: i32) -> (i32, i32, i32) {
    %c0_i32 = arith.constant 0 : i32
    %c0_i32_0 = arith.constant 0 : i32
    %c0_i32_1 = arith.constant 0 : i32
    %c0_i32_2 = arith.constant 0 : i32
    return %c0_i32, %c0_i32_0, %c0_i32_1 : i32, i32, i32
  }
  func.func @transform_16(%arg0: i32) -> (i32, i32, i32) {
    %c0_i32 = arith.constant 0 : i32
    %c0_i32_0 = arith.constant 0 : i32
    %c0_i32_1 = arith.constant 0 : i32
    %c0_i32_2 = arith.constant 0 : i32
    return %c0_i32, %c0_i32_0, %c0_i32_1 : i32, i32, i32
  }
  func.func @transform_17(%arg0: i32) -> (i32, i32, i32) {
    %c0_i32 = arith.constant 0 : i32
    %c0_i32_0 = arith.constant 0 : i32
    %c0_i32_1 = arith.constant 0 : i32
    %c0_i32_2 = arith.constant 0 : i32
    return %c0_i32, %c0_i32_0, %c0_i32_1 : i32, i32, i32
  }
  func.func @transform_18(%arg0: i32) -> (i32, i32) {
    %c0_i32 = arith.constant 0 : i32
    %c0_i32_0 = arith.constant 0 : i32
    %c0_i32_1 = arith.constant 0 : i32
    return %c0_i32, %c0_i32_0 : i32, i32
  }
  func.func @transform_19(%arg0: i32) -> (i32, i32) {
    %c0_i32 = arith.constant 0 : i32
    %c0_i32_0 = arith.constant 0 : i32
    %c0_i32_1 = arith.constant 0 : i32
    return %c0_i32, %c0_i32_0 : i32, i32
  }
  func.func @transform_20(%arg0: i32) -> (i32, i32) {
    %c0_i32 = arith.constant 0 : i32
    %c0_i32_0 = arith.constant 0 : i32
    %c0_i32_1 = arith.constant 0 : i32
    return %c0_i32, %c0_i32_0 : i32, i32
  }
}

module attributes {stable_mosaic.version = 11 : i64} {
  func.func @_decoder_kernel(%arg0: i32, %arg1: memref<8x32xf32, #tpu.memory_space<vmem>>, %arg2: memref<16x32xbf16, #tpu.memory_space<vmem>>, %arg3: memref<1x32xf32, #tpu.memory_space<vmem>>, %arg4: memref<1x32xf32, #tpu.memory_space<vmem>>, %arg5: memref<2x1x32xf32, #tpu.memory_space<vmem>>, %arg6: memref<2x1x32xf32, #tpu.memory_space<vmem>>, %arg7: memref<2x32x96xbf16, #tpu.memory_space<vmem>>, %arg8: memref<2x1x96xbf16, #tpu.memory_space<vmem>>, %arg9: memref<2x32x32xbf16, #tpu.memory_space<vmem>>, %arg10: memref<2x1x32xbf16, #tpu.memory_space<vmem>>, %arg11: memref<2x1x32xf32, #tpu.memory_space<vmem>>, %arg12: memref<2x1x32xf32, #tpu.memory_space<vmem>>, %arg13: memref<2x32x32xbf16, #tpu.memory_space<vmem>>, %arg14: memref<2x1x32xbf16, #tpu.memory_space<vmem>>, %arg15: memref<2x32x64xbf16, #tpu.memory_space<vmem>>, %arg16: memref<2x1x64xbf16, #tpu.memory_space<vmem>>, %arg17: memref<2x32x32xbf16, #tpu.memory_space<vmem>>, %arg18: memref<2x1x32xbf16, #tpu.memory_space<vmem>>, %arg19: memref<2x1x32xf32, #tpu.memory_space<vmem>>, %arg20: memref<2x1x32xf32, #tpu.memory_space<vmem>>, %arg21: memref<2x32x64xbf16, #tpu.memory_space<vmem>>, %arg22: memref<2x1x64xbf16, #tpu.memory_space<vmem>>, %arg23: memref<2x64x32xbf16, #tpu.memory_space<vmem>>, %arg24: memref<2x1x32xbf16, #tpu.memory_space<vmem>>, %arg25: memref<1x32xf32, #tpu.memory_space<vmem>>, %arg26: memref<1x32xf32, #tpu.memory_space<vmem>>, %arg27: memref<8x32xf32, #tpu.memory_space<vmem>>) attributes {dimension_semantics = [#tpu.dimension_semantics<arbitrary>], iteration_bounds = array<i64: 1>, scalar_prefetch = 0 : i64, scratch_operands = 0 : i64, tpu.core_type = #tpu.core_type<tc>, window_params = [{pipeline_mode = #tpu.pipeline_mode<synchronous>, transform_indices = @transform_0, window_bounds = array<i64: 8, 32>}, {pipeline_mode = #tpu.pipeline_mode<synchronous>, transform_indices = @transform_1, window_bounds = array<i64: 16, 32>}, {pipeline_mode = #tpu.pipeline_mode<synchronous>, transform_indices = @transform_2, window_bounds = array<i64: 1, 32>}, {pipeline_mode = #tpu.pipeline_mode<synchronous>, transform_indices = @transform_3, window_bounds = array<i64: 1, 32>}, {pipeline_mode = #tpu.pipeline_mode<synchronous>, transform_indices = @transform_4, window_bounds = array<i64: 2, 1, 32>}, {pipeline_mode = #tpu.pipeline_mode<synchronous>, transform_indices = @transform_5, window_bounds = array<i64: 2, 1, 32>}, {pipeline_mode = #tpu.pipeline_mode<synchronous>, transform_indices = @transform_6, window_bounds = array<i64: 2, 32, 96>}, {pipeline_mode = #tpu.pipeline_mode<synchronous>, transform_indices = @transform_7, window_bounds = array<i64: 2, 1, 96>}, {pipeline_mode = #tpu.pipeline_mode<synchronous>, transform_indices = @transform_8, window_bounds = array<i64: 2, 32, 32>}, {pipeline_mode = #tpu.pipeline_mode<synchronous>, transform_indices = @transform_9, window_bounds = array<i64: 2, 1, 32>}, {pipeline_mode = #tpu.pipeline_mode<synchronous>, transform_indices = @transform_10, window_bounds = array<i64: 2, 1, 32>}, {pipeline_mode = #tpu.pipeline_mode<synchronous>, transform_indices = @transform_11, window_bounds = array<i64: 2, 1, 32>}, {pipeline_mode = #tpu.pipeline_mode<synchronous>, transform_indices = @transform_12, window_bounds = array<i64: 2, 32, 32>}, {pipeline_mode = #tpu.pipeline_mode<synchronous>, transform_indices = @transform_13, window_bounds = array<i64: 2, 1, 32>}, {pipeline_mode = #tpu.pipeline_mode<synchronous>, transform_indices = @transform_14, window_bounds = array<i64: 2, 32, 64>}, {pipeline_mode = #tpu.pipeline_mode<synchronous>, transform_indices = @transform_15, window_bounds = array<i64: 2, 1, 64>}, {pipeline_mode = #tpu.pipeline_mode<synchronous>, transform_indices = @transform_16, window_bounds = array<i64: 2, 32, 32>}, {pipeline_mode = #tpu.pipeline_mode<synchronous>, transform_indices = @transform_17, window_bounds = array<i64: 2, 1, 32>}, {pipeline_mode = #tpu.pipeline_mode<synchronous>, transform_indices = @transform_18, window_bounds = array<i64: 2, 1, 32>}, {pipeline_mode = #tpu.pipeline_mode<synchronous>, transform_indices = @transform_19, window_bounds = array<i64: 2, 1, 32>}, {pipeline_mode = #tpu.pipeline_mode<synchronous>, transform_indices = @transform_20, window_bounds = array<i64: 2, 32, 64>}, {pipeline_mode = #tpu.pipeline_mode<synchronous>, transform_indices = @transform_21, window_bounds = array<i64: 2, 1, 64>}, {pipeline_mode = #tpu.pipeline_mode<synchronous>, transform_indices = @transform_22, window_bounds = array<i64: 2, 64, 32>}, {pipeline_mode = #tpu.pipeline_mode<synchronous>, transform_indices = @transform_23, window_bounds = array<i64: 2, 1, 32>}, {pipeline_mode = #tpu.pipeline_mode<synchronous>, transform_indices = @transform_24, window_bounds = array<i64: 1, 32>}, {pipeline_mode = #tpu.pipeline_mode<synchronous>, transform_indices = @transform_25, window_bounds = array<i64: 1, 32>}, {pipeline_mode = #tpu.pipeline_mode<synchronous>, transform_indices = @transform_26, window_bounds = array<i64: 8, 32>}]} {
    %c0 = arith.constant 0 : index
    %c0_0 = arith.constant 0 : index
    %0 = vector.load %arg1[%c0, %c0_0] : memref<8x32xf32, #tpu.memory_space<vmem>>, vector<8x32xf32>
    %c0_1 = arith.constant 0 : index
    %c0_2 = arith.constant 0 : index
    %1 = vector.load %arg3[%c0_1, %c0_2] : memref<1x32xf32, #tpu.memory_space<vmem>>, vector<1x32xf32>
    %c0_3 = arith.constant 0 : index
    %c0_4 = arith.constant 0 : index
    %2 = vector.load %arg4[%c0_3, %c0_4] : memref<1x32xf32, #tpu.memory_space<vmem>>, vector<1x32xf32>
    %cst = arith.constant dense<0.000000e+00> : vector<8xf32>
    %3 = vector.multi_reduction <add>, %0, %cst [1] : vector<8x32xf32> to vector<8xf32>
    %4 = vector.shape_cast %3 : vector<8xf32> to vector<8x1xf32>
    %cst_5 = arith.constant 3.200000e+01 : f32
    %5 = vector.broadcast %cst_5 : f32 to vector<8x1xf32>
    %6 = arith.divf %4, %5 : vector<8x1xf32>
    %7 = vector.broadcast %6 : vector<8x1xf32> to vector<8x32xf32>
    %8 = arith.subf %0, %7 : vector<8x32xf32>
    %9 = arith.mulf %8, %8 : vector<8x32xf32>
    %cst_6 = arith.constant dense<0.000000e+00> : vector<8xf32>
    %10 = vector.multi_reduction <add>, %9, %cst_6 [1] : vector<8x32xf32> to vector<8xf32>
    %11 = vector.shape_cast %10 : vector<8xf32> to vector<8x1xf32>
    %cst_7 = arith.constant 3.200000e+01 : f32
    %12 = vector.broadcast %cst_7 : f32 to vector<8x1xf32>
    %13 = arith.divf %11, %12 : vector<8x1xf32>
    %14 = vector.broadcast %6 : vector<8x1xf32> to vector<8x32xf32>
    %15 = arith.subf %0, %14 : vector<8x32xf32>
    %cst_8 = arith.constant 9.99999974E-6 : f32
    %16 = vector.broadcast %cst_8 : f32 to vector<8x1xf32>
    %17 = arith.addf %13, %16 : vector<8x1xf32>
    %18 = math.rsqrt %17 : vector<8x1xf32>
    %19 = vector.broadcast %18 : vector<8x1xf32> to vector<8x32xf32>
    %20 = arith.mulf %15, %19 : vector<8x32xf32>
    %21 = vector.broadcast %1 : vector<1x32xf32> to vector<8x32xf32>
    %22 = arith.mulf %20, %21 : vector<8x32xf32>
    %23 = vector.broadcast %2 : vector<1x32xf32> to vector<8x32xf32>
    %24 = arith.addf %22, %23 : vector<8x32xf32>
    %c0_9 = arith.constant 0 : index
    %c0_10 = arith.constant 0 : index
    %25 = vector.load %arg2[%c0_9, %c0_10] : memref<16x32xbf16, #tpu.memory_space<vmem>>, vector<16x32xbf16>
    %26 = tpu.iota {dimensions = array<i32: 0>} : vector<8x8xi32>
    %27 = tpu.iota {dimensions = array<i32: 1>} : vector<8x8xi32>
    %28 = arith.cmpi sge, %26, %27 : vector<8x8xi32>
    %cst_11 = arith.constant 0.000000e+00 : f32
    %cst_12 = arith.constant -1.000000e+09 : f32
    %29 = vector.broadcast %cst_11 : f32 to vector<8x8xf32>
    %30 = vector.broadcast %cst_12 : f32 to vector<8x8xf32>
    %31 = arith.select %28, %29, %30 : vector<8x8xi1>, vector<8x8xf32>
    %c0_13 = arith.constant 0 : index
    %c0_14 = arith.constant 0 : index
    %c0_15 = arith.constant 0 : index
    %32 = vector.load %arg5[%c0_13, %c0_14, %c0_15] : memref<2x1x32xf32, #tpu.memory_space<vmem>>, vector<1x1x32xf32>
    %33 = vector.shape_cast %32 : vector<1x1x32xf32> to vector<1x32xf32>
    %c0_16 = arith.constant 0 : index
    %c0_17 = arith.constant 0 : index
    %c0_18 = arith.constant 0 : index
    %34 = vector.load %arg6[%c0_16, %c0_17, %c0_18] : memref<2x1x32xf32, #tpu.memory_space<vmem>>, vector<1x1x32xf32>
    %35 = vector.shape_cast %34 : vector<1x1x32xf32> to vector<1x32xf32>
    %cst_19 = arith.constant dense<0.000000e+00> : vector<8xf32>
    %36 = vector.multi_reduction <add>, %24, %cst_19 [1] : vector<8x32xf32> to vector<8xf32>
    %37 = vector.shape_cast %36 : vector<8xf32> to vector<8x1xf32>
    %cst_20 = arith.constant 3.200000e+01 : f32
    %38 = vector.broadcast %cst_20 : f32 to vector<8x1xf32>
    %39 = arith.divf %37, %38 : vector<8x1xf32>
    %40 = vector.broadcast %39 : vector<8x1xf32> to vector<8x32xf32>
    %41 = arith.subf %24, %40 : vector<8x32xf32>
    %42 = arith.mulf %41, %41 : vector<8x32xf32>
    %cst_21 = arith.constant dense<0.000000e+00> : vector<8xf32>
    %43 = vector.multi_reduction <add>, %42, %cst_21 [1] : vector<8x32xf32> to vector<8xf32>
    %44 = vector.shape_cast %43 : vector<8xf32> to vector<8x1xf32>
    %cst_22 = arith.constant 3.200000e+01 : f32
    %45 = vector.broadcast %cst_22 : f32 to vector<8x1xf32>
    %46 = arith.divf %44, %45 : vector<8x1xf32>
    %47 = vector.broadcast %39 : vector<8x1xf32> to vector<8x32xf32>
    %48 = arith.subf %24, %47 : vector<8x32xf32>
    %cst_23 = arith.constant 9.99999974E-6 : f32
    %49 = vector.broadcast %cst_23 : f32 to vector<8x1xf32>
    %50 = arith.addf %46, %49 : vector<8x1xf32>
    %51 = math.rsqrt %50 : vector<8x1xf32>
    %52 = vector.broadcast %51 : vector<8x1xf32> to vector<8x32xf32>
    %53 = arith.mulf %48, %52 : vector<8x32xf32>
    %54 = vector.broadcast %33 : vector<1x32xf32> to vector<8x32xf32>
    %55 = arith.mulf %53, %54 : vector<8x32xf32>
    %56 = vector.broadcast %35 : vector<1x32xf32> to vector<8x32xf32>
    %57 = arith.addf %55, %56 : vector<8x32xf32>
    %c0_24 = arith.constant 0 : index
    %c0_25 = arith.constant 0 : index
    %c0_26 = arith.constant 0 : index
    %58 = vector.load %arg7[%c0_24, %c0_25, %c0_26] : memref<2x32x96xbf16, #tpu.memory_space<vmem>>, vector<1x32x96xbf16>
    %59 = vector.shape_cast %58 : vector<1x32x96xbf16> to vector<32x96xbf16>
    %60 = arith.truncf %57 : vector<8x32xf32> to vector<8x32xbf16>
    %cst_27 = arith.constant dense<0.000000e+00> : vector<8x96xf32>
    %61 = tpu.matmul %60, %59, %cst_27 {dimension_numbers = #tpu.dot_dimension_numbers<[1], [0], [0], [1], [0, 0, 1, 1], [], []>} : vector<8x32xbf16>, vector<32x96xbf16>, vector<8x96xf32> -> vector<8x96xf32>
    %c0_28 = arith.constant 0 : index
    %c0_29 = arith.constant 0 : index
    %c0_30 = arith.constant 0 : index
    %62 = vector.load %arg8[%c0_28, %c0_29, %c0_30] : memref<2x1x96xbf16, #tpu.memory_space<vmem>>, vector<1x1x96xbf16>
    %63 = vector.shape_cast %62 : vector<1x1x96xbf16> to vector<1x96xbf16>
    %64 = arith.extf %63 : vector<1x96xbf16> to vector<1x96xf32>
    %65 = vector.broadcast %64 : vector<1x96xf32> to vector<8x96xf32>
    %66 = arith.addf %61, %65 : vector<8x96xf32>
    %67 = vector.extract_strided_slice %66 {offsets = [0, 0], sizes = [8, 32], strides = [1, 1]} : vector<8x96xf32> to vector<8x32xf32>
    %68 = vector.extract_strided_slice %66 {offsets = [0, 32], sizes = [8, 32], strides = [1, 1]} : vector<8x96xf32> to vector<8x32xf32>
    %69 = vector.extract_strided_slice %66 {offsets = [0, 64], sizes = [8, 32], strides = [1, 1]} : vector<8x96xf32> to vector<8x32xf32>
    %c0_31 = arith.constant 0 : index
    %c0_32 = arith.constant 0 : index
    %c0_33 = arith.constant 0 : index
    %70 = vector.load %arg9[%c0_31, %c0_32, %c0_33] : memref<2x32x32xbf16, #tpu.memory_space<vmem>>, vector<1x32x32xbf16>
    %71 = vector.shape_cast %70 : vector<1x32x32xbf16> to vector<32x32xbf16>
    %c0_34 = arith.constant 0 : index
    %c0_35 = arith.constant 0 : index
    %c0_36 = arith.constant 0 : index
    %72 = vector.load %arg10[%c0_34, %c0_35, %c0_36] : memref<2x1x32xbf16, #tpu.memory_space<vmem>>, vector<1x1x32xbf16>
    %73 = vector.shape_cast %72 : vector<1x1x32xbf16> to vector<1x32xbf16>
    %74 = vector.extract_strided_slice %67 {offsets = [0, 0], sizes = [8, 8], strides = [1, 1]} : vector<8x32xf32> to vector<8x8xf32>
    %75 = vector.extract_strided_slice %68 {offsets = [0, 0], sizes = [8, 8], strides = [1, 1]} : vector<8x32xf32> to vector<8x8xf32>
    %76 = arith.truncf %74 : vector<8x8xf32> to vector<8x8xbf16>
    %77 = arith.truncf %75 : vector<8x8xf32> to vector<8x8xbf16>
    "tpu.trace_start"() <{level = 10 : i32, message = "qd,kd->qk"}> : () -> ()
    %cst_37 = arith.constant dense<0.000000e+00> : vector<8x8xf32>
    %78 = tpu.matmul %76, %77, %cst_37 {dimension_numbers = #tpu.dot_dimension_numbers<[1], [1], [0], [0], [0, 0, 1, 0], [], []>} : vector<8x8xbf16>, vector<8x8xbf16>, vector<8x8xf32> -> vector<8x8xf32>
    "tpu.trace_stop"() : () -> ()
    %79 = arith.addf %78, %31 : vector<8x8xf32>
    %cst_38 = arith.constant dense<0xFF800000> : vector<8xf32>
    %80 = vector.multi_reduction <maximumf>, %79, %cst_38 [1] : vector<8x8xf32> to vector<8xf32>
    %81 = vector.shape_cast %80 : vector<8xf32> to vector<8x1xf32>
    %82 = vector.broadcast %81 : vector<8x1xf32> to vector<8x8xf32>
    %83 = arith.subf %79, %82 : vector<8x8xf32>
    %84 = math.exp %83 : vector<8x8xf32>
    %cst_39 = arith.constant dense<0.000000e+00> : vector<8xf32>
    %85 = vector.multi_reduction <add>, %84, %cst_39 [1] : vector<8x8xf32> to vector<8xf32>
    %86 = vector.shape_cast %85 : vector<8xf32> to vector<8x1xf32>
    %87 = tpu.reciprocal %86 {approx = true} : vector<8x1xf32> -> vector<8x1xf32>
    %88 = vector.broadcast %87 : vector<8x1xf32> to vector<8x8xf32>
    %89 = arith.mulf %84, %88 : vector<8x8xf32>
    %90 = vector.extract_strided_slice %69 {offsets = [0, 0], sizes = [8, 8], strides = [1, 1]} : vector<8x32xf32> to vector<8x8xf32>
    %91 = arith.truncf %89 : vector<8x8xf32> to vector<8x8xbf16>
    %92 = arith.truncf %90 : vector<8x8xf32> to vector<8x8xbf16>
    %cst_40 = arith.constant dense<0.000000e+00> : vector<8x8xf32>
    %93 = tpu.matmul %91, %92, %cst_40 {dimension_numbers = #tpu.dot_dimension_numbers<[1], [0], [0], [1], [0, 0, 1, 1], [], []>} : vector<8x8xbf16>, vector<8x8xbf16>, vector<8x8xf32> -> vector<8x8xf32>
    %94 = vector.extract_strided_slice %67 {offsets = [0, 8], sizes = [8, 8], strides = [1, 1]} : vector<8x32xf32> to vector<8x8xf32>
    %95 = vector.extract_strided_slice %68 {offsets = [0, 8], sizes = [8, 8], strides = [1, 1]} : vector<8x32xf32> to vector<8x8xf32>
    %96 = arith.truncf %94 : vector<8x8xf32> to vector<8x8xbf16>
    %97 = arith.truncf %95 : vector<8x8xf32> to vector<8x8xbf16>
    "tpu.trace_start"() <{level = 10 : i32, message = "qd,kd->qk"}> : () -> ()
    %cst_41 = arith.constant dense<0.000000e+00> : vector<8x8xf32>
    %98 = tpu.matmul %96, %97, %cst_41 {dimension_numbers = #tpu.dot_dimension_numbers<[1], [1], [0], [0], [0, 0, 1, 0], [], []>} : vector<8x8xbf16>, vector<8x8xbf16>, vector<8x8xf32> -> vector<8x8xf32>
    "tpu.trace_stop"() : () -> ()
    %99 = arith.addf %98, %31 : vector<8x8xf32>
    %cst_42 = arith.constant dense<0xFF800000> : vector<8xf32>
    %100 = vector.multi_reduction <maximumf>, %99, %cst_42 [1] : vector<8x8xf32> to vector<8xf32>
    %101 = vector.shape_cast %100 : vector<8xf32> to vector<8x1xf32>
    %102 = vector.broadcast %101 : vector<8x1xf32> to vector<8x8xf32>
    %103 = arith.subf %99, %102 : vector<8x8xf32>
    %104 = math.exp %103 : vector<8x8xf32>
    %cst_43 = arith.constant dense<0.000000e+00> : vector<8xf32>
    %105 = vector.multi_reduction <add>, %104, %cst_43 [1] : vector<8x8xf32> to vector<8xf32>
    %106 = vector.shape_cast %105 : vector<8xf32> to vector<8x1xf32>
    %107 = tpu.reciprocal %106 {approx = true} : vector<8x1xf32> -> vector<8x1xf32>
    %108 = vector.broadcast %107 : vector<8x1xf32> to vector<8x8xf32>
    %109 = arith.mulf %104, %108 : vector<8x8xf32>
    %110 = vector.extract_strided_slice %69 {offsets = [0, 8], sizes = [8, 8], strides = [1, 1]} : vector<8x32xf32> to vector<8x8xf32>
    %111 = arith.truncf %109 : vector<8x8xf32> to vector<8x8xbf16>
    %112 = arith.truncf %110 : vector<8x8xf32> to vector<8x8xbf16>
    %cst_44 = arith.constant dense<0.000000e+00> : vector<8x8xf32>
    %113 = tpu.matmul %111, %112, %cst_44 {dimension_numbers = #tpu.dot_dimension_numbers<[1], [0], [0], [1], [0, 0, 1, 1], [], []>} : vector<8x8xbf16>, vector<8x8xbf16>, vector<8x8xf32> -> vector<8x8xf32>
    %114 = vector.extract_strided_slice %67 {offsets = [0, 16], sizes = [8, 8], strides = [1, 1]} : vector<8x32xf32> to vector<8x8xf32>
    %115 = vector.extract_strided_slice %68 {offsets = [0, 16], sizes = [8, 8], strides = [1, 1]} : vector<8x32xf32> to vector<8x8xf32>
    %116 = arith.truncf %114 : vector<8x8xf32> to vector<8x8xbf16>
    %117 = arith.truncf %115 : vector<8x8xf32> to vector<8x8xbf16>
    "tpu.trace_start"() <{level = 10 : i32, message = "qd,kd->qk"}> : () -> ()
    %cst_45 = arith.constant dense<0.000000e+00> : vector<8x8xf32>
    %118 = tpu.matmul %116, %117, %cst_45 {dimension_numbers = #tpu.dot_dimension_numbers<[1], [1], [0], [0], [0, 0, 1, 0], [], []>} : vector<8x8xbf16>, vector<8x8xbf16>, vector<8x8xf32> -> vector<8x8xf32>
    "tpu.trace_stop"() : () -> ()
    %119 = arith.addf %118, %31 : vector<8x8xf32>
    %cst_46 = arith.constant dense<0xFF800000> : vector<8xf32>
    %120 = vector.multi_reduction <maximumf>, %119, %cst_46 [1] : vector<8x8xf32> to vector<8xf32>
    %121 = vector.shape_cast %120 : vector<8xf32> to vector<8x1xf32>
    %122 = vector.broadcast %121 : vector<8x1xf32> to vector<8x8xf32>
    %123 = arith.subf %119, %122 : vector<8x8xf32>
    %124 = math.exp %123 : vector<8x8xf32>
    %cst_47 = arith.constant dense<0.000000e+00> : vector<8xf32>
    %125 = vector.multi_reduction <add>, %124, %cst_47 [1] : vector<8x8xf32> to vector<8xf32>
    %126 = vector.shape_cast %125 : vector<8xf32> to vector<8x1xf32>
    %127 = tpu.reciprocal %126 {approx = true} : vector<8x1xf32> -> vector<8x1xf32>
    %128 = vector.broadcast %127 : vector<8x1xf32> to vector<8x8xf32>
    %129 = arith.mulf %124, %128 : vector<8x8xf32>
    %130 = vector.extract_strided_slice %69 {offsets = [0, 16], sizes = [8, 8], strides = [1, 1]} : vector<8x32xf32> to vector<8x8xf32>
    %131 = arith.truncf %129 : vector<8x8xf32> to vector<8x8xbf16>
    %132 = arith.truncf %130 : vector<8x8xf32> to vector<8x8xbf16>
    %cst_48 = arith.constant dense<0.000000e+00> : vector<8x8xf32>
    %133 = tpu.matmul %131, %132, %cst_48 {dimension_numbers = #tpu.dot_dimension_numbers<[1], [0], [0], [1], [0, 0, 1, 1], [], []>} : vector<8x8xbf16>, vector<8x8xbf16>, vector<8x8xf32> -> vector<8x8xf32>
    %134 = vector.extract_strided_slice %67 {offsets = [0, 24], sizes = [8, 8], strides = [1, 1]} : vector<8x32xf32> to vector<8x8xf32>
    %135 = vector.extract_strided_slice %68 {offsets = [0, 24], sizes = [8, 8], strides = [1, 1]} : vector<8x32xf32> to vector<8x8xf32>
    %136 = arith.truncf %134 : vector<8x8xf32> to vector<8x8xbf16>
    %137 = arith.truncf %135 : vector<8x8xf32> to vector<8x8xbf16>
    "tpu.trace_start"() <{level = 10 : i32, message = "qd,kd->qk"}> : () -> ()
    %cst_49 = arith.constant dense<0.000000e+00> : vector<8x8xf32>
    %138 = tpu.matmul %136, %137, %cst_49 {dimension_numbers = #tpu.dot_dimension_numbers<[1], [1], [0], [0], [0, 0, 1, 0], [], []>} : vector<8x8xbf16>, vector<8x8xbf16>, vector<8x8xf32> -> vector<8x8xf32>
    "tpu.trace_stop"() : () -> ()
    %139 = arith.addf %138, %31 : vector<8x8xf32>
    %cst_50 = arith.constant dense<0xFF800000> : vector<8xf32>
    %140 = vector.multi_reduction <maximumf>, %139, %cst_50 [1] : vector<8x8xf32> to vector<8xf32>
    %141 = vector.shape_cast %140 : vector<8xf32> to vector<8x1xf32>
    %142 = vector.broadcast %141 : vector<8x1xf32> to vector<8x8xf32>
    %143 = arith.subf %139, %142 : vector<8x8xf32>
    %144 = math.exp %143 : vector<8x8xf32>
    %cst_51 = arith.constant dense<0.000000e+00> : vector<8xf32>
    %145 = vector.multi_reduction <add>, %144, %cst_51 [1] : vector<8x8xf32> to vector<8xf32>
    %146 = vector.shape_cast %145 : vector<8xf32> to vector<8x1xf32>
    %147 = tpu.reciprocal %146 {approx = true} : vector<8x1xf32> -> vector<8x1xf32>
    %148 = vector.broadcast %147 : vector<8x1xf32> to vector<8x8xf32>
    %149 = arith.mulf %144, %148 : vector<8x8xf32>
    %150 = vector.extract_strided_slice %69 {offsets = [0, 24], sizes = [8, 8], strides = [1, 1]} : vector<8x32xf32> to vector<8x8xf32>
    %151 = arith.truncf %149 : vector<8x8xf32> to vector<8x8xbf16>
    %152 = arith.truncf %150 : vector<8x8xf32> to vector<8x8xbf16>
    %cst_52 = arith.constant dense<0.000000e+00> : vector<8x8xf32>
    %153 = tpu.matmul %151, %152, %cst_52 {dimension_numbers = #tpu.dot_dimension_numbers<[1], [0], [0], [1], [0, 0, 1, 1], [], []>} : vector<8x8xbf16>, vector<8x8xbf16>, vector<8x8xf32> -> vector<8x8xf32>
    %154 = tpu.concatenate %93, %113, %133, %153 in 1 : vector<8x8xf32>, vector<8x8xf32>, vector<8x8xf32>, vector<8x8xf32> -> vector<8x32xf32>
    %155 = arith.truncf %154 : vector<8x32xf32> to vector<8x32xbf16>
    %cst_53 = arith.constant dense<0.000000e+00> : vector<8x32xf32>
    %156 = tpu.matmul %155, %71, %cst_53 {dimension_numbers = #tpu.dot_dimension_numbers<[1], [0], [0], [1], [0, 0, 1, 1], [], []>} : vector<8x32xbf16>, vector<32x32xbf16>, vector<8x32xf32> -> vector<8x32xf32>
    %157 = arith.extf %73 : vector<1x32xbf16> to vector<1x32xf32>
    %158 = vector.broadcast %157 : vector<1x32xf32> to vector<8x32xf32>
    %159 = arith.addf %156, %158 : vector<8x32xf32>
    %160 = arith.addf %24, %159 : vector<8x32xf32>
    %c0_54 = arith.constant 0 : index
    %c0_55 = arith.constant 0 : index
    %c0_56 = arith.constant 0 : index
    %161 = vector.load %arg11[%c0_54, %c0_55, %c0_56] : memref<2x1x32xf32, #tpu.memory_space<vmem>>, vector<1x1x32xf32>
    %162 = vector.shape_cast %161 : vector<1x1x32xf32> to vector<1x32xf32>
    %c0_57 = arith.constant 0 : index
    %c0_58 = arith.constant 0 : index
    %c0_59 = arith.constant 0 : index
    %163 = vector.load %arg12[%c0_57, %c0_58, %c0_59] : memref<2x1x32xf32, #tpu.memory_space<vmem>>, vector<1x1x32xf32>
    %164 = vector.shape_cast %163 : vector<1x1x32xf32> to vector<1x32xf32>
    %cst_60 = arith.constant dense<0.000000e+00> : vector<8xf32>
    %165 = vector.multi_reduction <add>, %160, %cst_60 [1] : vector<8x32xf32> to vector<8xf32>
    %166 = vector.shape_cast %165 : vector<8xf32> to vector<8x1xf32>
    %cst_61 = arith.constant 3.200000e+01 : f32
    %167 = vector.broadcast %cst_61 : f32 to vector<8x1xf32>
    %168 = arith.divf %166, %167 : vector<8x1xf32>
    %169 = vector.broadcast %168 : vector<8x1xf32> to vector<8x32xf32>
    %170 = arith.subf %160, %169 : vector<8x32xf32>
    %171 = arith.mulf %170, %170 : vector<8x32xf32>
    %cst_62 = arith.constant dense<0.000000e+00> : vector<8xf32>
    %172 = vector.multi_reduction <add>, %171, %cst_62 [1] : vector<8x32xf32> to vector<8xf32>
    %173 = vector.shape_cast %172 : vector<8xf32> to vector<8x1xf32>
    %cst_63 = arith.constant 3.200000e+01 : f32
    %174 = vector.broadcast %cst_63 : f32 to vector<8x1xf32>
    %175 = arith.divf %173, %174 : vector<8x1xf32>
    %176 = vector.broadcast %168 : vector<8x1xf32> to vector<8x32xf32>
    %177 = arith.subf %160, %176 : vector<8x32xf32>
    %cst_64 = arith.constant 9.99999974E-6 : f32
    %178 = vector.broadcast %cst_64 : f32 to vector<8x1xf32>
    %179 = arith.addf %175, %178 : vector<8x1xf32>
    %180 = math.rsqrt %179 : vector<8x1xf32>
    %181 = vector.broadcast %180 : vector<8x1xf32> to vector<8x32xf32>
    %182 = arith.mulf %177, %181 : vector<8x32xf32>
    %183 = vector.broadcast %162 : vector<1x32xf32> to vector<8x32xf32>
    %184 = arith.mulf %182, %183 : vector<8x32xf32>
    %185 = vector.broadcast %164 : vector<1x32xf32> to vector<8x32xf32>
    %186 = arith.addf %184, %185 : vector<8x32xf32>
    %c0_65 = arith.constant 0 : index
    %c0_66 = arith.constant 0 : index
    %c0_67 = arith.constant 0 : index
    %187 = vector.load %arg13[%c0_65, %c0_66, %c0_67] : memref<2x32x32xbf16, #tpu.memory_space<vmem>>, vector<1x32x32xbf16>
    %188 = vector.shape_cast %187 : vector<1x32x32xbf16> to vector<32x32xbf16>
    %189 = arith.truncf %186 : vector<8x32xf32> to vector<8x32xbf16>
    %cst_68 = arith.constant dense<0.000000e+00> : vector<8x32xf32>
    %190 = tpu.matmul %189, %188, %cst_68 {dimension_numbers = #tpu.dot_dimension_numbers<[1], [0], [0], [1], [0, 0, 1, 1], [], []>} : vector<8x32xbf16>, vector<32x32xbf16>, vector<8x32xf32> -> vector<8x32xf32>
    %c0_69 = arith.constant 0 : index
    %c0_70 = arith.constant 0 : index
    %c0_71 = arith.constant 0 : index
    %191 = vector.load %arg14[%c0_69, %c0_70, %c0_71] : memref<2x1x32xbf16, #tpu.memory_space<vmem>>, vector<1x1x32xbf16>
    %192 = vector.shape_cast %191 : vector<1x1x32xbf16> to vector<1x32xbf16>
    %193 = arith.extf %192 : vector<1x32xbf16> to vector<1x32xf32>
    %194 = vector.broadcast %193 : vector<1x32xf32> to vector<8x32xf32>
    %195 = arith.addf %190, %194 : vector<8x32xf32>
    %c0_72 = arith.constant 0 : index
    %c0_73 = arith.constant 0 : index
    %c0_74 = arith.constant 0 : index
    %196 = vector.load %arg15[%c0_72, %c0_73, %c0_74] : memref<2x32x64xbf16, #tpu.memory_space<vmem>>, vector<1x32x64xbf16>
    %197 = vector.shape_cast %196 : vector<1x32x64xbf16> to vector<32x64xbf16>
    %cst_75 = arith.constant dense<0.000000e+00> : vector<16x64xf32>
    %198 = tpu.matmul %25, %197, %cst_75 {dimension_numbers = #tpu.dot_dimension_numbers<[1], [0], [0], [1], [0, 0, 1, 1], [], []>} : vector<16x32xbf16>, vector<32x64xbf16>, vector<16x64xf32> -> vector<16x64xf32>
    %c0_76 = arith.constant 0 : index
    %c0_77 = arith.constant 0 : index
    %c0_78 = arith.constant 0 : index
    %199 = vector.load %arg16[%c0_76, %c0_77, %c0_78] : memref<2x1x64xbf16, #tpu.memory_space<vmem>>, vector<1x1x64xbf16>
    %200 = vector.shape_cast %199 : vector<1x1x64xbf16> to vector<1x64xbf16>
    %201 = arith.extf %200 : vector<1x64xbf16> to vector<1x64xf32>
    %202 = vector.broadcast %201 : vector<1x64xf32> to vector<16x64xf32>
    %203 = arith.addf %198, %202 : vector<16x64xf32>
    %204 = vector.extract_strided_slice %203 {offsets = [0, 0], sizes = [16, 32], strides = [1, 1]} : vector<16x64xf32> to vector<16x32xf32>
    %205 = vector.extract_strided_slice %203 {offsets = [0, 32], sizes = [16, 32], strides = [1, 1]} : vector<16x64xf32> to vector<16x32xf32>
    %c0_79 = arith.constant 0 : index
    %c0_80 = arith.constant 0 : index
    %c0_81 = arith.constant 0 : index
    %206 = vector.load %arg17[%c0_79, %c0_80, %c0_81] : memref<2x32x32xbf16, #tpu.memory_space<vmem>>, vector<1x32x32xbf16>
    %207 = vector.shape_cast %206 : vector<1x32x32xbf16> to vector<32x32xbf16>
    %c0_82 = arith.constant 0 : index
    %c0_83 = arith.constant 0 : index
    %c0_84 = arith.constant 0 : index
    %208 = vector.load %arg18[%c0_82, %c0_83, %c0_84] : memref<2x1x32xbf16, #tpu.memory_space<vmem>>, vector<1x1x32xbf16>
    %209 = vector.shape_cast %208 : vector<1x1x32xbf16> to vector<1x32xbf16>
    %210 = vector.extract_strided_slice %195 {offsets = [0, 0], sizes = [8, 8], strides = [1, 1]} : vector<8x32xf32> to vector<8x8xf32>
    %211 = vector.extract_strided_slice %204 {offsets = [0, 0], sizes = [16, 8], strides = [1, 1]} : vector<16x32xf32> to vector<16x8xf32>
    %212 = arith.truncf %210 : vector<8x8xf32> to vector<8x8xbf16>
    %213 = arith.truncf %211 : vector<16x8xf32> to vector<16x8xbf16>
    "tpu.trace_start"() <{level = 10 : i32, message = "qd,kd->qk"}> : () -> ()
    %cst_85 = arith.constant dense<0.000000e+00> : vector<8x16xf32>
    %214 = tpu.matmul %212, %213, %cst_85 {dimension_numbers = #tpu.dot_dimension_numbers<[1], [1], [0], [0], [0, 0, 1, 0], [], []>} : vector<8x8xbf16>, vector<16x8xbf16>, vector<8x16xf32> -> vector<8x16xf32>
    "tpu.trace_stop"() : () -> ()
    %cst_86 = arith.constant dense<0xFF800000> : vector<8xf32>
    %215 = vector.multi_reduction <maximumf>, %214, %cst_86 [1] : vector<8x16xf32> to vector<8xf32>
    %216 = vector.shape_cast %215 : vector<8xf32> to vector<8x1xf32>
    %217 = vector.broadcast %216 : vector<8x1xf32> to vector<8x16xf32>
    %218 = arith.subf %214, %217 : vector<8x16xf32>
    %219 = math.exp %218 : vector<8x16xf32>
    %cst_87 = arith.constant dense<0.000000e+00> : vector<8xf32>
    %220 = vector.multi_reduction <add>, %219, %cst_87 [1] : vector<8x16xf32> to vector<8xf32>
    %221 = vector.shape_cast %220 : vector<8xf32> to vector<8x1xf32>
    %222 = tpu.reciprocal %221 {approx = true} : vector<8x1xf32> -> vector<8x1xf32>
    %223 = vector.broadcast %222 : vector<8x1xf32> to vector<8x16xf32>
    %224 = arith.mulf %219, %223 : vector<8x16xf32>
    %225 = vector.extract_strided_slice %205 {offsets = [0, 0], sizes = [16, 8], strides = [1, 1]} : vector<16x32xf32> to vector<16x8xf32>
    %226 = arith.truncf %224 : vector<8x16xf32> to vector<8x16xbf16>
    %227 = arith.truncf %225 : vector<16x8xf32> to vector<16x8xbf16>
    %cst_88 = arith.constant dense<0.000000e+00> : vector<8x8xf32>
    %228 = tpu.matmul %226, %227, %cst_88 {dimension_numbers = #tpu.dot_dimension_numbers<[1], [0], [0], [1], [0, 0, 1, 1], [], []>} : vector<8x16xbf16>, vector<16x8xbf16>, vector<8x8xf32> -> vector<8x8xf32>
    %229 = vector.extract_strided_slice %195 {offsets = [0, 8], sizes = [8, 8], strides = [1, 1]} : vector<8x32xf32> to vector<8x8xf32>
    %230 = vector.extract_strided_slice %204 {offsets = [0, 8], sizes = [16, 8], strides = [1, 1]} : vector<16x32xf32> to vector<16x8xf32>
    %231 = arith.truncf %229 : vector<8x8xf32> to vector<8x8xbf16>
    %232 = arith.truncf %230 : vector<16x8xf32> to vector<16x8xbf16>
    "tpu.trace_start"() <{level = 10 : i32, message = "qd,kd->qk"}> : () -> ()
    %cst_89 = arith.constant dense<0.000000e+00> : vector<8x16xf32>
    %233 = tpu.matmul %231, %232, %cst_89 {dimension_numbers = #tpu.dot_dimension_numbers<[1], [1], [0], [0], [0, 0, 1, 0], [], []>} : vector<8x8xbf16>, vector<16x8xbf16>, vector<8x16xf32> -> vector<8x16xf32>
    "tpu.trace_stop"() : () -> ()
    %cst_90 = arith.constant dense<0xFF800000> : vector<8xf32>
    %234 = vector.multi_reduction <maximumf>, %233, %cst_90 [1] : vector<8x16xf32> to vector<8xf32>
    %235 = vector.shape_cast %234 : vector<8xf32> to vector<8x1xf32>
    %236 = vector.broadcast %235 : vector<8x1xf32> to vector<8x16xf32>
    %237 = arith.subf %233, %236 : vector<8x16xf32>
    %238 = math.exp %237 : vector<8x16xf32>
    %cst_91 = arith.constant dense<0.000000e+00> : vector<8xf32>
    %239 = vector.multi_reduction <add>, %238, %cst_91 [1] : vector<8x16xf32> to vector<8xf32>
    %240 = vector.shape_cast %239 : vector<8xf32> to vector<8x1xf32>
    %241 = tpu.reciprocal %240 {approx = true} : vector<8x1xf32> -> vector<8x1xf32>
    %242 = vector.broadcast %241 : vector<8x1xf32> to vector<8x16xf32>
    %243 = arith.mulf %238, %242 : vector<8x16xf32>
    %244 = vector.extract_strided_slice %205 {offsets = [0, 8], sizes = [16, 8], strides = [1, 1]} : vector<16x32xf32> to vector<16x8xf32>
    %245 = arith.truncf %243 : vector<8x16xf32> to vector<8x16xbf16>
    %246 = arith.truncf %244 : vector<16x8xf32> to vector<16x8xbf16>
    %cst_92 = arith.constant dense<0.000000e+00> : vector<8x8xf32>
    %247 = tpu.matmul %245, %246, %cst_92 {dimension_numbers = #tpu.dot_dimension_numbers<[1], [0], [0], [1], [0, 0, 1, 1], [], []>} : vector<8x16xbf16>, vector<16x8xbf16>, vector<8x8xf32> -> vector<8x8xf32>
    %248 = vector.extract_strided_slice %195 {offsets = [0, 16], sizes = [8, 8], strides = [1, 1]} : vector<8x32xf32> to vector<8x8xf32>
    %249 = vector.extract_strided_slice %204 {offsets = [0, 16], sizes = [16, 8], strides = [1, 1]} : vector<16x32xf32> to vector<16x8xf32>
    %250 = arith.truncf %248 : vector<8x8xf32> to vector<8x8xbf16>
    %251 = arith.truncf %249 : vector<16x8xf32> to vector<16x8xbf16>
    "tpu.trace_start"() <{level = 10 : i32, message = "qd,kd->qk"}> : () -> ()
    %cst_93 = arith.constant dense<0.000000e+00> : vector<8x16xf32>
    %252 = tpu.matmul %250, %251, %cst_93 {dimension_numbers = #tpu.dot_dimension_numbers<[1], [1], [0], [0], [0, 0, 1, 0], [], []>} : vector<8x8xbf16>, vector<16x8xbf16>, vector<8x16xf32> -> vector<8x16xf32>
    "tpu.trace_stop"() : () -> ()
    %cst_94 = arith.constant dense<0xFF800000> : vector<8xf32>
    %253 = vector.multi_reduction <maximumf>, %252, %cst_94 [1] : vector<8x16xf32> to vector<8xf32>
    %254 = vector.shape_cast %253 : vector<8xf32> to vector<8x1xf32>
    %255 = vector.broadcast %254 : vector<8x1xf32> to vector<8x16xf32>
    %256 = arith.subf %252, %255 : vector<8x16xf32>
    %257 = math.exp %256 : vector<8x16xf32>
    %cst_95 = arith.constant dense<0.000000e+00> : vector<8xf32>
    %258 = vector.multi_reduction <add>, %257, %cst_95 [1] : vector<8x16xf32> to vector<8xf32>
    %259 = vector.shape_cast %258 : vector<8xf32> to vector<8x1xf32>
    %260 = tpu.reciprocal %259 {approx = true} : vector<8x1xf32> -> vector<8x1xf32>
    %261 = vector.broadcast %260 : vector<8x1xf32> to vector<8x16xf32>
    %262 = arith.mulf %257, %261 : vector<8x16xf32>
    %263 = vector.extract_strided_slice %205 {offsets = [0, 16], sizes = [16, 8], strides = [1, 1]} : vector<16x32xf32> to vector<16x8xf32>
    %264 = arith.truncf %262 : vector<8x16xf32> to vector<8x16xbf16>
    %265 = arith.truncf %263 : vector<16x8xf32> to vector<16x8xbf16>
    %cst_96 = arith.constant dense<0.000000e+00> : vector<8x8xf32>
    %266 = tpu.matmul %264, %265, %cst_96 {dimension_numbers = #tpu.dot_dimension_numbers<[1], [0], [0], [1], [0, 0, 1, 1], [], []>} : vector<8x16xbf16>, vector<16x8xbf16>, vector<8x8xf32> -> vector<8x8xf32>
    %267 = vector.extract_strided_slice %195 {offsets = [0, 24], sizes = [8, 8], strides = [1, 1]} : vector<8x32xf32> to vector<8x8xf32>
    %268 = vector.extract_strided_slice %204 {offsets = [0, 24], sizes = [16, 8], strides = [1, 1]} : vector<16x32xf32> to vector<16x8xf32>
    %269 = arith.truncf %267 : vector<8x8xf32> to vector<8x8xbf16>
    %270 = arith.truncf %268 : vector<16x8xf32> to vector<16x8xbf16>
    "tpu.trace_start"() <{level = 10 : i32, message = "qd,kd->qk"}> : () -> ()
    %cst_97 = arith.constant dense<0.000000e+00> : vector<8x16xf32>
    %271 = tpu.matmul %269, %270, %cst_97 {dimension_numbers = #tpu.dot_dimension_numbers<[1], [1], [0], [0], [0, 0, 1, 0], [], []>} : vector<8x8xbf16>, vector<16x8xbf16>, vector<8x16xf32> -> vector<8x16xf32>
    "tpu.trace_stop"() : () -> ()
    %cst_98 = arith.constant dense<0xFF800000> : vector<8xf32>
    %272 = vector.multi_reduction <maximumf>, %271, %cst_98 [1] : vector<8x16xf32> to vector<8xf32>
    %273 = vector.shape_cast %272 : vector<8xf32> to vector<8x1xf32>
    %274 = vector.broadcast %273 : vector<8x1xf32> to vector<8x16xf32>
    %275 = arith.subf %271, %274 : vector<8x16xf32>
    %276 = math.exp %275 : vector<8x16xf32>
    %cst_99 = arith.constant dense<0.000000e+00> : vector<8xf32>
    %277 = vector.multi_reduction <add>, %276, %cst_99 [1] : vector<8x16xf32> to vector<8xf32>
    %278 = vector.shape_cast %277 : vector<8xf32> to vector<8x1xf32>
    %279 = tpu.reciprocal %278 {approx = true} : vector<8x1xf32> -> vector<8x1xf32>
    %280 = vector.broadcast %279 : vector<8x1xf32> to vector<8x16xf32>
    %281 = arith.mulf %276, %280 : vector<8x16xf32>
    %282 = vector.extract_strided_slice %205 {offsets = [0, 24], sizes = [16, 8], strides = [1, 1]} : vector<16x32xf32> to vector<16x8xf32>
    %283 = arith.truncf %281 : vector<8x16xf32> to vector<8x16xbf16>
    %284 = arith.truncf %282 : vector<16x8xf32> to vector<16x8xbf16>
    %cst_100 = arith.constant dense<0.000000e+00> : vector<8x8xf32>
    %285 = tpu.matmul %283, %284, %cst_100 {dimension_numbers = #tpu.dot_dimension_numbers<[1], [0], [0], [1], [0, 0, 1, 1], [], []>} : vector<8x16xbf16>, vector<16x8xbf16>, vector<8x8xf32> -> vector<8x8xf32>
    %286 = tpu.concatenate %228, %247, %266, %285 in 1 : vector<8x8xf32>, vector<8x8xf32>, vector<8x8xf32>, vector<8x8xf32> -> vector<8x32xf32>
    %287 = arith.truncf %286 : vector<8x32xf32> to vector<8x32xbf16>
    %cst_101 = arith.constant dense<0.000000e+00> : vector<8x32xf32>
    %288 = tpu.matmul %287, %207, %cst_101 {dimension_numbers = #tpu.dot_dimension_numbers<[1], [0], [0], [1], [0, 0, 1, 1], [], []>} : vector<8x32xbf16>, vector<32x32xbf16>, vector<8x32xf32> -> vector<8x32xf32>
    %289 = arith.extf %209 : vector<1x32xbf16> to vector<1x32xf32>
    %290 = vector.broadcast %289 : vector<1x32xf32> to vector<8x32xf32>
    %291 = arith.addf %288, %290 : vector<8x32xf32>
    %292 = arith.addf %160, %291 : vector<8x32xf32>
    %c0_102 = arith.constant 0 : index
    %c0_103 = arith.constant 0 : index
    %c0_104 = arith.constant 0 : index
    %293 = vector.load %arg19[%c0_102, %c0_103, %c0_104] : memref<2x1x32xf32, #tpu.memory_space<vmem>>, vector<1x1x32xf32>
    %294 = vector.shape_cast %293 : vector<1x1x32xf32> to vector<1x32xf32>
    %c0_105 = arith.constant 0 : index
    %c0_106 = arith.constant 0 : index
    %c0_107 = arith.constant 0 : index
    %295 = vector.load %arg20[%c0_105, %c0_106, %c0_107] : memref<2x1x32xf32, #tpu.memory_space<vmem>>, vector<1x1x32xf32>
    %296 = vector.shape_cast %295 : vector<1x1x32xf32> to vector<1x32xf32>
    %cst_108 = arith.constant dense<0.000000e+00> : vector<8xf32>
    %297 = vector.multi_reduction <add>, %292, %cst_108 [1] : vector<8x32xf32> to vector<8xf32>
    %298 = vector.shape_cast %297 : vector<8xf32> to vector<8x1xf32>
    %cst_109 = arith.constant 3.200000e+01 : f32
    %299 = vector.broadcast %cst_109 : f32 to vector<8x1xf32>
    %300 = arith.divf %298, %299 : vector<8x1xf32>
    %301 = vector.broadcast %300 : vector<8x1xf32> to vector<8x32xf32>
    %302 = arith.subf %292, %301 : vector<8x32xf32>
    %303 = arith.mulf %302, %302 : vector<8x32xf32>
    %cst_110 = arith.constant dense<0.000000e+00> : vector<8xf32>
    %304 = vector.multi_reduction <add>, %303, %cst_110 [1] : vector<8x32xf32> to vector<8xf32>
    %305 = vector.shape_cast %304 : vector<8xf32> to vector<8x1xf32>
    %cst_111 = arith.constant 3.200000e+01 : f32
    %306 = vector.broadcast %cst_111 : f32 to vector<8x1xf32>
    %307 = arith.divf %305, %306 : vector<8x1xf32>
    %308 = vector.broadcast %300 : vector<8x1xf32> to vector<8x32xf32>
    %309 = arith.subf %292, %308 : vector<8x32xf32>
    %cst_112 = arith.constant 9.99999974E-6 : f32
    %310 = vector.broadcast %cst_112 : f32 to vector<8x1xf32>
    %311 = arith.addf %307, %310 : vector<8x1xf32>
    %312 = math.rsqrt %311 : vector<8x1xf32>
    %313 = vector.broadcast %312 : vector<8x1xf32> to vector<8x32xf32>
    %314 = arith.mulf %309, %313 : vector<8x32xf32>
    %315 = vector.broadcast %294 : vector<1x32xf32> to vector<8x32xf32>
    %316 = arith.mulf %314, %315 : vector<8x32xf32>
    %317 = vector.broadcast %296 : vector<1x32xf32> to vector<8x32xf32>
    %318 = arith.addf %316, %317 : vector<8x32xf32>
    %c0_113 = arith.constant 0 : index
    %c0_114 = arith.constant 0 : index
    %c0_115 = arith.constant 0 : index
    %319 = vector.load %arg21[%c0_113, %c0_114, %c0_115] : memref<2x32x64xbf16, #tpu.memory_space<vmem>>, vector<1x32x64xbf16>
    %320 = vector.shape_cast %319 : vector<1x32x64xbf16> to vector<32x64xbf16>
    %321 = arith.truncf %318 : vector<8x32xf32> to vector<8x32xbf16>
    %cst_116 = arith.constant dense<0.000000e+00> : vector<8x64xf32>
    %322 = tpu.matmul %321, %320, %cst_116 {dimension_numbers = #tpu.dot_dimension_numbers<[1], [0], [0], [1], [0, 0, 1, 1], [], []>} : vector<8x32xbf16>, vector<32x64xbf16>, vector<8x64xf32> -> vector<8x64xf32>
    %c0_117 = arith.constant 0 : index
    %c0_118 = arith.constant 0 : index
    %c0_119 = arith.constant 0 : index
    %323 = vector.load %arg22[%c0_117, %c0_118, %c0_119] : memref<2x1x64xbf16, #tpu.memory_space<vmem>>, vector<1x1x64xbf16>
    %324 = vector.shape_cast %323 : vector<1x1x64xbf16> to vector<1x64xbf16>
    %325 = arith.extf %324 : vector<1x64xbf16> to vector<1x64xf32>
    %326 = vector.broadcast %325 : vector<1x64xf32> to vector<8x64xf32>
    %327 = arith.addf %322, %326 : vector<8x64xf32>
    %328 = arith.mulf %327, %327 : vector<8x64xf32>
    %329 = arith.mulf %327, %328 : vector<8x64xf32>
    %cst_120 = arith.constant 4.471500e-02 : f32
    %330 = vector.broadcast %cst_120 : f32 to vector<8x64xf32>
    %331 = arith.mulf %330, %329 : vector<8x64xf32>
    %332 = arith.addf %327, %331 : vector<8x64xf32>
    %cst_121 = arith.constant 0.797884583 : f32
    %333 = vector.broadcast %cst_121 : f32 to vector<8x64xf32>
    %334 = arith.mulf %333, %332 : vector<8x64xf32>
    %335 = math.tanh %334 : vector<8x64xf32>
    %cst_122 = arith.constant 1.000000e+00 : f32
    %336 = vector.broadcast %cst_122 : f32 to vector<8x64xf32>
    %337 = arith.addf %336, %335 : vector<8x64xf32>
    %cst_123 = arith.constant 5.000000e-01 : f32
    %338 = vector.broadcast %cst_123 : f32 to vector<8x64xf32>
    %339 = arith.mulf %338, %337 : vector<8x64xf32>
    %340 = arith.mulf %327, %339 : vector<8x64xf32>
    %c0_124 = arith.constant 0 : index
    %c0_125 = arith.constant 0 : index
    %c0_126 = arith.constant 0 : index
    %341 = vector.load %arg23[%c0_124, %c0_125, %c0_126] : memref<2x64x32xbf16, #tpu.memory_space<vmem>>, vector<1x64x32xbf16>
    %342 = vector.shape_cast %341 : vector<1x64x32xbf16> to vector<64x32xbf16>
    %343 = arith.truncf %340 : vector<8x64xf32> to vector<8x64xbf16>
    %cst_127 = arith.constant dense<0.000000e+00> : vector<8x32xf32>
    %344 = tpu.matmul %343, %342, %cst_127 {dimension_numbers = #tpu.dot_dimension_numbers<[1], [0], [0], [1], [0, 0, 1, 1], [], []>} : vector<8x64xbf16>, vector<64x32xbf16>, vector<8x32xf32> -> vector<8x32xf32>
    %345 = arith.addf %292, %344 : vector<8x32xf32>
    %c0_128 = arith.constant 0 : index
    %c0_129 = arith.constant 0 : index
    %c0_130 = arith.constant 0 : index
    %346 = vector.load %arg24[%c0_128, %c0_129, %c0_130] : memref<2x1x32xbf16, #tpu.memory_space<vmem>>, vector<1x1x32xbf16>
    %347 = vector.shape_cast %346 : vector<1x1x32xbf16> to vector<1x32xbf16>
    %348 = arith.extf %347 : vector<1x32xbf16> to vector<1x32xf32>
    %349 = vector.broadcast %348 : vector<1x32xf32> to vector<8x32xf32>
    %350 = arith.addf %345, %349 : vector<8x32xf32>
    %c1 = arith.constant 1 : index
    %c0_131 = arith.constant 0 : index
    %c0_132 = arith.constant 0 : index
    %351 = vector.load %arg5[%c1, %c0_131, %c0_132] : memref<2x1x32xf32, #tpu.memory_space<vmem>>, vector<1x1x32xf32>
    %352 = vector.shape_cast %351 : vector<1x1x32xf32> to vector<1x32xf32>
    %c1_133 = arith.constant 1 : index
    %c0_134 = arith.constant 0 : index
    %c0_135 = arith.constant 0 : index
    %353 = vector.load %arg6[%c1_133, %c0_134, %c0_135] : memref<2x1x32xf32, #tpu.memory_space<vmem>>, vector<1x1x32xf32>
    %354 = vector.shape_cast %353 : vector<1x1x32xf32> to vector<1x32xf32>
    %cst_136 = arith.constant dense<0.000000e+00> : vector<8xf32>
    %355 = vector.multi_reduction <add>, %350, %cst_136 [1] : vector<8x32xf32> to vector<8xf32>
    %356 = vector.shape_cast %355 : vector<8xf32> to vector<8x1xf32>
    %cst_137 = arith.constant 3.200000e+01 : f32
    %357 = vector.broadcast %cst_137 : f32 to vector<8x1xf32>
    %358 = arith.divf %356, %357 : vector<8x1xf32>
    %359 = vector.broadcast %358 : vector<8x1xf32> to vector<8x32xf32>
    %360 = arith.subf %350, %359 : vector<8x32xf32>
    %361 = arith.mulf %360, %360 : vector<8x32xf32>
    %cst_138 = arith.constant dense<0.000000e+00> : vector<8xf32>
    %362 = vector.multi_reduction <add>, %361, %cst_138 [1] : vector<8x32xf32> to vector<8xf32>
    %363 = vector.shape_cast %362 : vector<8xf32> to vector<8x1xf32>
    %cst_139 = arith.constant 3.200000e+01 : f32
    %364 = vector.broadcast %cst_139 : f32 to vector<8x1xf32>
    %365 = arith.divf %363, %364 : vector<8x1xf32>
    %366 = vector.broadcast %358 : vector<8x1xf32> to vector<8x32xf32>
    %367 = arith.subf %350, %366 : vector<8x32xf32>
    %cst_140 = arith.constant 9.99999974E-6 : f32
    %368 = vector.broadcast %cst_140 : f32 to vector<8x1xf32>
    %369 = arith.addf %365, %368 : vector<8x1xf32>
    %370 = math.rsqrt %369 : vector<8x1xf32>
    %371 = vector.broadcast %370 : vector<8x1xf32> to vector<8x32xf32>
    %372 = arith.mulf %367, %371 : vector<8x32xf32>
    %373 = vector.broadcast %352 : vector<1x32xf32> to vector<8x32xf32>
    %374 = arith.mulf %372, %373 : vector<8x32xf32>
    %375 = vector.broadcast %354 : vector<1x32xf32> to vector<8x32xf32>
    %376 = arith.addf %374, %375 : vector<8x32xf32>
    %c1_141 = arith.constant 1 : index
    %c0_142 = arith.constant 0 : index
    %c0_143 = arith.constant 0 : index
    %377 = vector.load %arg7[%c1_141, %c0_142, %c0_143] : memref<2x32x96xbf16, #tpu.memory_space<vmem>>, vector<1x32x96xbf16>
    %378 = vector.shape_cast %377 : vector<1x32x96xbf16> to vector<32x96xbf16>
    %379 = arith.truncf %376 : vector<8x32xf32> to vector<8x32xbf16>
    %cst_144 = arith.constant dense<0.000000e+00> : vector<8x96xf32>
    %380 = tpu.matmul %379, %378, %cst_144 {dimension_numbers = #tpu.dot_dimension_numbers<[1], [0], [0], [1], [0, 0, 1, 1], [], []>} : vector<8x32xbf16>, vector<32x96xbf16>, vector<8x96xf32> -> vector<8x96xf32>
    %c1_145 = arith.constant 1 : index
    %c0_146 = arith.constant 0 : index
    %c0_147 = arith.constant 0 : index
    %381 = vector.load %arg8[%c1_145, %c0_146, %c0_147] : memref<2x1x96xbf16, #tpu.memory_space<vmem>>, vector<1x1x96xbf16>
    %382 = vector.shape_cast %381 : vector<1x1x96xbf16> to vector<1x96xbf16>
    %383 = arith.extf %382 : vector<1x96xbf16> to vector<1x96xf32>
    %384 = vector.broadcast %383 : vector<1x96xf32> to vector<8x96xf32>
    %385 = arith.addf %380, %384 : vector<8x96xf32>
    %386 = vector.extract_strided_slice %385 {offsets = [0, 0], sizes = [8, 32], strides = [1, 1]} : vector<8x96xf32> to vector<8x32xf32>
    %387 = vector.extract_strided_slice %385 {offsets = [0, 32], sizes = [8, 32], strides = [1, 1]} : vector<8x96xf32> to vector<8x32xf32>
    %388 = vector.extract_strided_slice %385 {offsets = [0, 64], sizes = [8, 32], strides = [1, 1]} : vector<8x96xf32> to vector<8x32xf32>
    %c1_148 = arith.constant 1 : index
    %c0_149 = arith.constant 0 : index
    %c0_150 = arith.constant 0 : index
    %389 = vector.load %arg9[%c1_148, %c0_149, %c0_150] : memref<2x32x32xbf16, #tpu.memory_space<vmem>>, vector<1x32x32xbf16>
    %390 = vector.shape_cast %389 : vector<1x32x32xbf16> to vector<32x32xbf16>
    %c1_151 = arith.constant 1 : index
    %c0_152 = arith.constant 0 : index
    %c0_153 = arith.constant 0 : index
    %391 = vector.load %arg10[%c1_151, %c0_152, %c0_153] : memref<2x1x32xbf16, #tpu.memory_space<vmem>>, vector<1x1x32xbf16>
    %392 = vector.shape_cast %391 : vector<1x1x32xbf16> to vector<1x32xbf16>
    %393 = vector.extract_strided_slice %386 {offsets = [0, 0], sizes = [8, 8], strides = [1, 1]} : vector<8x32xf32> to vector<8x8xf32>
    %394 = vector.extract_strided_slice %387 {offsets = [0, 0], sizes = [8, 8], strides = [1, 1]} : vector<8x32xf32> to vector<8x8xf32>
    %395 = arith.truncf %393 : vector<8x8xf32> to vector<8x8xbf16>
    %396 = arith.truncf %394 : vector<8x8xf32> to vector<8x8xbf16>
    "tpu.trace_start"() <{level = 10 : i32, message = "qd,kd->qk"}> : () -> ()
    %cst_154 = arith.constant dense<0.000000e+00> : vector<8x8xf32>
    %397 = tpu.matmul %395, %396, %cst_154 {dimension_numbers = #tpu.dot_dimension_numbers<[1], [1], [0], [0], [0, 0, 1, 0], [], []>} : vector<8x8xbf16>, vector<8x8xbf16>, vector<8x8xf32> -> vector<8x8xf32>
    "tpu.trace_stop"() : () -> ()
    %398 = arith.addf %397, %31 : vector<8x8xf32>
    %cst_155 = arith.constant dense<0xFF800000> : vector<8xf32>
    %399 = vector.multi_reduction <maximumf>, %398, %cst_155 [1] : vector<8x8xf32> to vector<8xf32>
    %400 = vector.shape_cast %399 : vector<8xf32> to vector<8x1xf32>
    %401 = vector.broadcast %400 : vector<8x1xf32> to vector<8x8xf32>
    %402 = arith.subf %398, %401 : vector<8x8xf32>
    %403 = math.exp %402 : vector<8x8xf32>
    %cst_156 = arith.constant dense<0.000000e+00> : vector<8xf32>
    %404 = vector.multi_reduction <add>, %403, %cst_156 [1] : vector<8x8xf32> to vector<8xf32>
    %405 = vector.shape_cast %404 : vector<8xf32> to vector<8x1xf32>
    %406 = tpu.reciprocal %405 {approx = true} : vector<8x1xf32> -> vector<8x1xf32>
    %407 = vector.broadcast %406 : vector<8x1xf32> to vector<8x8xf32>
    %408 = arith.mulf %403, %407 : vector<8x8xf32>
    %409 = vector.extract_strided_slice %388 {offsets = [0, 0], sizes = [8, 8], strides = [1, 1]} : vector<8x32xf32> to vector<8x8xf32>
    %410 = arith.truncf %408 : vector<8x8xf32> to vector<8x8xbf16>
    %411 = arith.truncf %409 : vector<8x8xf32> to vector<8x8xbf16>
    %cst_157 = arith.constant dense<0.000000e+00> : vector<8x8xf32>
    %412 = tpu.matmul %410, %411, %cst_157 {dimension_numbers = #tpu.dot_dimension_numbers<[1], [0], [0], [1], [0, 0, 1, 1], [], []>} : vector<8x8xbf16>, vector<8x8xbf16>, vector<8x8xf32> -> vector<8x8xf32>
    %413 = vector.extract_strided_slice %386 {offsets = [0, 8], sizes = [8, 8], strides = [1, 1]} : vector<8x32xf32> to vector<8x8xf32>
    %414 = vector.extract_strided_slice %387 {offsets = [0, 8], sizes = [8, 8], strides = [1, 1]} : vector<8x32xf32> to vector<8x8xf32>
    %415 = arith.truncf %413 : vector<8x8xf32> to vector<8x8xbf16>
    %416 = arith.truncf %414 : vector<8x8xf32> to vector<8x8xbf16>
    "tpu.trace_start"() <{level = 10 : i32, message = "qd,kd->qk"}> : () -> ()
    %cst_158 = arith.constant dense<0.000000e+00> : vector<8x8xf32>
    %417 = tpu.matmul %415, %416, %cst_158 {dimension_numbers = #tpu.dot_dimension_numbers<[1], [1], [0], [0], [0, 0, 1, 0], [], []>} : vector<8x8xbf16>, vector<8x8xbf16>, vector<8x8xf32> -> vector<8x8xf32>
    "tpu.trace_stop"() : () -> ()
    %418 = arith.addf %417, %31 : vector<8x8xf32>
    %cst_159 = arith.constant dense<0xFF800000> : vector<8xf32>
    %419 = vector.multi_reduction <maximumf>, %418, %cst_159 [1] : vector<8x8xf32> to vector<8xf32>
    %420 = vector.shape_cast %419 : vector<8xf32> to vector<8x1xf32>
    %421 = vector.broadcast %420 : vector<8x1xf32> to vector<8x8xf32>
    %422 = arith.subf %418, %421 : vector<8x8xf32>
    %423 = math.exp %422 : vector<8x8xf32>
    %cst_160 = arith.constant dense<0.000000e+00> : vector<8xf32>
    %424 = vector.multi_reduction <add>, %423, %cst_160 [1] : vector<8x8xf32> to vector<8xf32>
    %425 = vector.shape_cast %424 : vector<8xf32> to vector<8x1xf32>
    %426 = tpu.reciprocal %425 {approx = true} : vector<8x1xf32> -> vector<8x1xf32>
    %427 = vector.broadcast %426 : vector<8x1xf32> to vector<8x8xf32>
    %428 = arith.mulf %423, %427 : vector<8x8xf32>
    %429 = vector.extract_strided_slice %388 {offsets = [0, 8], sizes = [8, 8], strides = [1, 1]} : vector<8x32xf32> to vector<8x8xf32>
    %430 = arith.truncf %428 : vector<8x8xf32> to vector<8x8xbf16>
    %431 = arith.truncf %429 : vector<8x8xf32> to vector<8x8xbf16>
    %cst_161 = arith.constant dense<0.000000e+00> : vector<8x8xf32>
    %432 = tpu.matmul %430, %431, %cst_161 {dimension_numbers = #tpu.dot_dimension_numbers<[1], [0], [0], [1], [0, 0, 1, 1], [], []>} : vector<8x8xbf16>, vector<8x8xbf16>, vector<8x8xf32> -> vector<8x8xf32>
    %433 = vector.extract_strided_slice %386 {offsets = [0, 16], sizes = [8, 8], strides = [1, 1]} : vector<8x32xf32> to vector<8x8xf32>
    %434 = vector.extract_strided_slice %387 {offsets = [0, 16], sizes = [8, 8], strides = [1, 1]} : vector<8x32xf32> to vector<8x8xf32>
    %435 = arith.truncf %433 : vector<8x8xf32> to vector<8x8xbf16>
    %436 = arith.truncf %434 : vector<8x8xf32> to vector<8x8xbf16>
    "tpu.trace_start"() <{level = 10 : i32, message = "qd,kd->qk"}> : () -> ()
    %cst_162 = arith.constant dense<0.000000e+00> : vector<8x8xf32>
    %437 = tpu.matmul %435, %436, %cst_162 {dimension_numbers = #tpu.dot_dimension_numbers<[1], [1], [0], [0], [0, 0, 1, 0], [], []>} : vector<8x8xbf16>, vector<8x8xbf16>, vector<8x8xf32> -> vector<8x8xf32>
    "tpu.trace_stop"() : () -> ()
    %438 = arith.addf %437, %31 : vector<8x8xf32>
    %cst_163 = arith.constant dense<0xFF800000> : vector<8xf32>
    %439 = vector.multi_reduction <maximumf>, %438, %cst_163 [1] : vector<8x8xf32> to vector<8xf32>
    %440 = vector.shape_cast %439 : vector<8xf32> to vector<8x1xf32>
    %441 = vector.broadcast %440 : vector<8x1xf32> to vector<8x8xf32>
    %442 = arith.subf %438, %441 : vector<8x8xf32>
    %443 = math.exp %442 : vector<8x8xf32>
    %cst_164 = arith.constant dense<0.000000e+00> : vector<8xf32>
    %444 = vector.multi_reduction <add>, %443, %cst_164 [1] : vector<8x8xf32> to vector<8xf32>
    %445 = vector.shape_cast %444 : vector<8xf32> to vector<8x1xf32>
    %446 = tpu.reciprocal %445 {approx = true} : vector<8x1xf32> -> vector<8x1xf32>
    %447 = vector.broadcast %446 : vector<8x1xf32> to vector<8x8xf32>
    %448 = arith.mulf %443, %447 : vector<8x8xf32>
    %449 = vector.extract_strided_slice %388 {offsets = [0, 16], sizes = [8, 8], strides = [1, 1]} : vector<8x32xf32> to vector<8x8xf32>
    %450 = arith.truncf %448 : vector<8x8xf32> to vector<8x8xbf16>
    %451 = arith.truncf %449 : vector<8x8xf32> to vector<8x8xbf16>
    %cst_165 = arith.constant dense<0.000000e+00> : vector<8x8xf32>
    %452 = tpu.matmul %450, %451, %cst_165 {dimension_numbers = #tpu.dot_dimension_numbers<[1], [0], [0], [1], [0, 0, 1, 1], [], []>} : vector<8x8xbf16>, vector<8x8xbf16>, vector<8x8xf32> -> vector<8x8xf32>
    %453 = vector.extract_strided_slice %386 {offsets = [0, 24], sizes = [8, 8], strides = [1, 1]} : vector<8x32xf32> to vector<8x8xf32>
    %454 = vector.extract_strided_slice %387 {offsets = [0, 24], sizes = [8, 8], strides = [1, 1]} : vector<8x32xf32> to vector<8x8xf32>
    %455 = arith.truncf %453 : vector<8x8xf32> to vector<8x8xbf16>
    %456 = arith.truncf %454 : vector<8x8xf32> to vector<8x8xbf16>
    "tpu.trace_start"() <{level = 10 : i32, message = "qd,kd->qk"}> : () -> ()
    %cst_166 = arith.constant dense<0.000000e+00> : vector<8x8xf32>
    %457 = tpu.matmul %455, %456, %cst_166 {dimension_numbers = #tpu.dot_dimension_numbers<[1], [1], [0], [0], [0, 0, 1, 0], [], []>} : vector<8x8xbf16>, vector<8x8xbf16>, vector<8x8xf32> -> vector<8x8xf32>
    "tpu.trace_stop"() : () -> ()
    %458 = arith.addf %457, %31 : vector<8x8xf32>
    %cst_167 = arith.constant dense<0xFF800000> : vector<8xf32>
    %459 = vector.multi_reduction <maximumf>, %458, %cst_167 [1] : vector<8x8xf32> to vector<8xf32>
    %460 = vector.shape_cast %459 : vector<8xf32> to vector<8x1xf32>
    %461 = vector.broadcast %460 : vector<8x1xf32> to vector<8x8xf32>
    %462 = arith.subf %458, %461 : vector<8x8xf32>
    %463 = math.exp %462 : vector<8x8xf32>
    %cst_168 = arith.constant dense<0.000000e+00> : vector<8xf32>
    %464 = vector.multi_reduction <add>, %463, %cst_168 [1] : vector<8x8xf32> to vector<8xf32>
    %465 = vector.shape_cast %464 : vector<8xf32> to vector<8x1xf32>
    %466 = tpu.reciprocal %465 {approx = true} : vector<8x1xf32> -> vector<8x1xf32>
    %467 = vector.broadcast %466 : vector<8x1xf32> to vector<8x8xf32>
    %468 = arith.mulf %463, %467 : vector<8x8xf32>
    %469 = vector.extract_strided_slice %388 {offsets = [0, 24], sizes = [8, 8], strides = [1, 1]} : vector<8x32xf32> to vector<8x8xf32>
    %470 = arith.truncf %468 : vector<8x8xf32> to vector<8x8xbf16>
    %471 = arith.truncf %469 : vector<8x8xf32> to vector<8x8xbf16>
    %cst_169 = arith.constant dense<0.000000e+00> : vector<8x8xf32>
    %472 = tpu.matmul %470, %471, %cst_169 {dimension_numbers = #tpu.dot_dimension_numbers<[1], [0], [0], [1], [0, 0, 1, 1], [], []>} : vector<8x8xbf16>, vector<8x8xbf16>, vector<8x8xf32> -> vector<8x8xf32>
    %473 = tpu.concatenate %412, %432, %452, %472 in 1 : vector<8x8xf32>, vector<8x8xf32>, vector<8x8xf32>, vector<8x8xf32> -> vector<8x32xf32>
    %474 = arith.truncf %473 : vector<8x32xf32> to vector<8x32xbf16>
    %cst_170 = arith.constant dense<0.000000e+00> : vector<8x32xf32>
    %475 = tpu.matmul %474, %390, %cst_170 {dimension_numbers = #tpu.dot_dimension_numbers<[1], [0], [0], [1], [0, 0, 1, 1], [], []>} : vector<8x32xbf16>, vector<32x32xbf16>, vector<8x32xf32> -> vector<8x32xf32>
    %476 = arith.extf %392 : vector<1x32xbf16> to vector<1x32xf32>
    %477 = vector.broadcast %476 : vector<1x32xf32> to vector<8x32xf32>
    %478 = arith.addf %475, %477 : vector<8x32xf32>
    %479 = arith.addf %350, %478 : vector<8x32xf32>
    %c1_171 = arith.constant 1 : index
    %c0_172 = arith.constant 0 : index
    %c0_173 = arith.constant 0 : index
    %480 = vector.load %arg11[%c1_171, %c0_172, %c0_173] : memref<2x1x32xf32, #tpu.memory_space<vmem>>, vector<1x1x32xf32>
    %481 = vector.shape_cast %480 : vector<1x1x32xf32> to vector<1x32xf32>
    %c1_174 = arith.constant 1 : index
    %c0_175 = arith.constant 0 : index
    %c0_176 = arith.constant 0 : index
    %482 = vector.load %arg12[%c1_174, %c0_175, %c0_176] : memref<2x1x32xf32, #tpu.memory_space<vmem>>, vector<1x1x32xf32>
    %483 = vector.shape_cast %482 : vector<1x1x32xf32> to vector<1x32xf32>
    %cst_177 = arith.constant dense<0.000000e+00> : vector<8xf32>
    %484 = vector.multi_reduction <add>, %479, %cst_177 [1] : vector<8x32xf32> to vector<8xf32>
    %485 = vector.shape_cast %484 : vector<8xf32> to vector<8x1xf32>
    %cst_178 = arith.constant 3.200000e+01 : f32
    %486 = vector.broadcast %cst_178 : f32 to vector<8x1xf32>
    %487 = arith.divf %485, %486 : vector<8x1xf32>
    %488 = vector.broadcast %487 : vector<8x1xf32> to vector<8x32xf32>
    %489 = arith.subf %479, %488 : vector<8x32xf32>
    %490 = arith.mulf %489, %489 : vector<8x32xf32>
    %cst_179 = arith.constant dense<0.000000e+00> : vector<8xf32>
    %491 = vector.multi_reduction <add>, %490, %cst_179 [1] : vector<8x32xf32> to vector<8xf32>
    %492 = vector.shape_cast %491 : vector<8xf32> to vector<8x1xf32>
    %cst_180 = arith.constant 3.200000e+01 : f32
    %493 = vector.broadcast %cst_180 : f32 to vector<8x1xf32>
    %494 = arith.divf %492, %493 : vector<8x1xf32>
    %495 = vector.broadcast %487 : vector<8x1xf32> to vector<8x32xf32>
    %496 = arith.subf %479, %495 : vector<8x32xf32>
    %cst_181 = arith.constant 9.99999974E-6 : f32
    %497 = vector.broadcast %cst_181 : f32 to vector<8x1xf32>
    %498 = arith.addf %494, %497 : vector<8x1xf32>
    %499 = math.rsqrt %498 : vector<8x1xf32>
    %500 = vector.broadcast %499 : vector<8x1xf32> to vector<8x32xf32>
    %501 = arith.mulf %496, %500 : vector<8x32xf32>
    %502 = vector.broadcast %481 : vector<1x32xf32> to vector<8x32xf32>
    %503 = arith.mulf %501, %502 : vector<8x32xf32>
    %504 = vector.broadcast %483 : vector<1x32xf32> to vector<8x32xf32>
    %505 = arith.addf %503, %504 : vector<8x32xf32>
    %c1_182 = arith.constant 1 : index
    %c0_183 = arith.constant 0 : index
    %c0_184 = arith.constant 0 : index
    %506 = vector.load %arg13[%c1_182, %c0_183, %c0_184] : memref<2x32x32xbf16, #tpu.memory_space<vmem>>, vector<1x32x32xbf16>
    %507 = vector.shape_cast %506 : vector<1x32x32xbf16> to vector<32x32xbf16>
    %508 = arith.truncf %505 : vector<8x32xf32> to vector<8x32xbf16>
    %cst_185 = arith.constant dense<0.000000e+00> : vector<8x32xf32>
    %509 = tpu.matmul %508, %507, %cst_185 {dimension_numbers = #tpu.dot_dimension_numbers<[1], [0], [0], [1], [0, 0, 1, 1], [], []>} : vector<8x32xbf16>, vector<32x32xbf16>, vector<8x32xf32> -> vector<8x32xf32>
    %c1_186 = arith.constant 1 : index
    %c0_187 = arith.constant 0 : index
    %c0_188 = arith.constant 0 : index
    %510 = vector.load %arg14[%c1_186, %c0_187, %c0_188] : memref<2x1x32xbf16, #tpu.memory_space<vmem>>, vector<1x1x32xbf16>
    %511 = vector.shape_cast %510 : vector<1x1x32xbf16> to vector<1x32xbf16>
    %512 = arith.extf %511 : vector<1x32xbf16> to vector<1x32xf32>
    %513 = vector.broadcast %512 : vector<1x32xf32> to vector<8x32xf32>
    %514 = arith.addf %509, %513 : vector<8x32xf32>
    %c1_189 = arith.constant 1 : index
    %c0_190 = arith.constant 0 : index
    %c0_191 = arith.constant 0 : index
    %515 = vector.load %arg15[%c1_189, %c0_190, %c0_191] : memref<2x32x64xbf16, #tpu.memory_space<vmem>>, vector<1x32x64xbf16>
    %516 = vector.shape_cast %515 : vector<1x32x64xbf16> to vector<32x64xbf16>
    %cst_192 = arith.constant dense<0.000000e+00> : vector<16x64xf32>
    %517 = tpu.matmul %25, %516, %cst_192 {dimension_numbers = #tpu.dot_dimension_numbers<[1], [0], [0], [1], [0, 0, 1, 1], [], []>} : vector<16x32xbf16>, vector<32x64xbf16>, vector<16x64xf32> -> vector<16x64xf32>
    %c1_193 = arith.constant 1 : index
    %c0_194 = arith.constant 0 : index
    %c0_195 = arith.constant 0 : index
    %518 = vector.load %arg16[%c1_193, %c0_194, %c0_195] : memref<2x1x64xbf16, #tpu.memory_space<vmem>>, vector<1x1x64xbf16>
    %519 = vector.shape_cast %518 : vector<1x1x64xbf16> to vector<1x64xbf16>
    %520 = arith.extf %519 : vector<1x64xbf16> to vector<1x64xf32>
    %521 = vector.broadcast %520 : vector<1x64xf32> to vector<16x64xf32>
    %522 = arith.addf %517, %521 : vector<16x64xf32>
    %523 = vector.extract_strided_slice %522 {offsets = [0, 0], sizes = [16, 32], strides = [1, 1]} : vector<16x64xf32> to vector<16x32xf32>
    %524 = vector.extract_strided_slice %522 {offsets = [0, 32], sizes = [16, 32], strides = [1, 1]} : vector<16x64xf32> to vector<16x32xf32>
    %c1_196 = arith.constant 1 : index
    %c0_197 = arith.constant 0 : index
    %c0_198 = arith.constant 0 : index
    %525 = vector.load %arg17[%c1_196, %c0_197, %c0_198] : memref<2x32x32xbf16, #tpu.memory_space<vmem>>, vector<1x32x32xbf16>
    %526 = vector.shape_cast %525 : vector<1x32x32xbf16> to vector<32x32xbf16>
    %c1_199 = arith.constant 1 : index
    %c0_200 = arith.constant 0 : index
    %c0_201 = arith.constant 0 : index
    %527 = vector.load %arg18[%c1_199, %c0_200, %c0_201] : memref<2x1x32xbf16, #tpu.memory_space<vmem>>, vector<1x1x32xbf16>
    %528 = vector.shape_cast %527 : vector<1x1x32xbf16> to vector<1x32xbf16>
    %529 = vector.extract_strided_slice %514 {offsets = [0, 0], sizes = [8, 8], strides = [1, 1]} : vector<8x32xf32> to vector<8x8xf32>
    %530 = vector.extract_strided_slice %523 {offsets = [0, 0], sizes = [16, 8], strides = [1, 1]} : vector<16x32xf32> to vector<16x8xf32>
    %531 = arith.truncf %529 : vector<8x8xf32> to vector<8x8xbf16>
    %532 = arith.truncf %530 : vector<16x8xf32> to vector<16x8xbf16>
    "tpu.trace_start"() <{level = 10 : i32, message = "qd,kd->qk"}> : () -> ()
    %cst_202 = arith.constant dense<0.000000e+00> : vector<8x16xf32>
    %533 = tpu.matmul %531, %532, %cst_202 {dimension_numbers = #tpu.dot_dimension_numbers<[1], [1], [0], [0], [0, 0, 1, 0], [], []>} : vector<8x8xbf16>, vector<16x8xbf16>, vector<8x16xf32> -> vector<8x16xf32>
    "tpu.trace_stop"() : () -> ()
    %cst_203 = arith.constant dense<0xFF800000> : vector<8xf32>
    %534 = vector.multi_reduction <maximumf>, %533, %cst_203 [1] : vector<8x16xf32> to vector<8xf32>
    %535 = vector.shape_cast %534 : vector<8xf32> to vector<8x1xf32>
    %536 = vector.broadcast %535 : vector<8x1xf32> to vector<8x16xf32>
    %537 = arith.subf %533, %536 : vector<8x16xf32>
    %538 = math.exp %537 : vector<8x16xf32>
    %cst_204 = arith.constant dense<0.000000e+00> : vector<8xf32>
    %539 = vector.multi_reduction <add>, %538, %cst_204 [1] : vector<8x16xf32> to vector<8xf32>
    %540 = vector.shape_cast %539 : vector<8xf32> to vector<8x1xf32>
    %541 = tpu.reciprocal %540 {approx = true} : vector<8x1xf32> -> vector<8x1xf32>
    %542 = vector.broadcast %541 : vector<8x1xf32> to vector<8x16xf32>
    %543 = arith.mulf %538, %542 : vector<8x16xf32>
    %544 = vector.extract_strided_slice %524 {offsets = [0, 0], sizes = [16, 8], strides = [1, 1]} : vector<16x32xf32> to vector<16x8xf32>
    %545 = arith.truncf %543 : vector<8x16xf32> to vector<8x16xbf16>
    %546 = arith.truncf %544 : vector<16x8xf32> to vector<16x8xbf16>
    %cst_205 = arith.constant dense<0.000000e+00> : vector<8x8xf32>
    %547 = tpu.matmul %545, %546, %cst_205 {dimension_numbers = #tpu.dot_dimension_numbers<[1], [0], [0], [1], [0, 0, 1, 1], [], []>} : vector<8x16xbf16>, vector<16x8xbf16>, vector<8x8xf32> -> vector<8x8xf32>
    %548 = vector.extract_strided_slice %514 {offsets = [0, 8], sizes = [8, 8], strides = [1, 1]} : vector<8x32xf32> to vector<8x8xf32>
    %549 = vector.extract_strided_slice %523 {offsets = [0, 8], sizes = [16, 8], strides = [1, 1]} : vector<16x32xf32> to vector<16x8xf32>
    %550 = arith.truncf %548 : vector<8x8xf32> to vector<8x8xbf16>
    %551 = arith.truncf %549 : vector<16x8xf32> to vector<16x8xbf16>
    "tpu.trace_start"() <{level = 10 : i32, message = "qd,kd->qk"}> : () -> ()
    %cst_206 = arith.constant dense<0.000000e+00> : vector<8x16xf32>
    %552 = tpu.matmul %550, %551, %cst_206 {dimension_numbers = #tpu.dot_dimension_numbers<[1], [1], [0], [0], [0, 0, 1, 0], [], []>} : vector<8x8xbf16>, vector<16x8xbf16>, vector<8x16xf32> -> vector<8x16xf32>
    "tpu.trace_stop"() : () -> ()
    %cst_207 = arith.constant dense<0xFF800000> : vector<8xf32>
    %553 = vector.multi_reduction <maximumf>, %552, %cst_207 [1] : vector<8x16xf32> to vector<8xf32>
    %554 = vector.shape_cast %553 : vector<8xf32> to vector<8x1xf32>
    %555 = vector.broadcast %554 : vector<8x1xf32> to vector<8x16xf32>
    %556 = arith.subf %552, %555 : vector<8x16xf32>
    %557 = math.exp %556 : vector<8x16xf32>
    %cst_208 = arith.constant dense<0.000000e+00> : vector<8xf32>
    %558 = vector.multi_reduction <add>, %557, %cst_208 [1] : vector<8x16xf32> to vector<8xf32>
    %559 = vector.shape_cast %558 : vector<8xf32> to vector<8x1xf32>
    %560 = tpu.reciprocal %559 {approx = true} : vector<8x1xf32> -> vector<8x1xf32>
    %561 = vector.broadcast %560 : vector<8x1xf32> to vector<8x16xf32>
    %562 = arith.mulf %557, %561 : vector<8x16xf32>
    %563 = vector.extract_strided_slice %524 {offsets = [0, 8], sizes = [16, 8], strides = [1, 1]} : vector<16x32xf32> to vector<16x8xf32>
    %564 = arith.truncf %562 : vector<8x16xf32> to vector<8x16xbf16>
    %565 = arith.truncf %563 : vector<16x8xf32> to vector<16x8xbf16>
    %cst_209 = arith.constant dense<0.000000e+00> : vector<8x8xf32>
    %566 = tpu.matmul %564, %565, %cst_209 {dimension_numbers = #tpu.dot_dimension_numbers<[1], [0], [0], [1], [0, 0, 1, 1], [], []>} : vector<8x16xbf16>, vector<16x8xbf16>, vector<8x8xf32> -> vector<8x8xf32>
    %567 = vector.extract_strided_slice %514 {offsets = [0, 16], sizes = [8, 8], strides = [1, 1]} : vector<8x32xf32> to vector<8x8xf32>
    %568 = vector.extract_strided_slice %523 {offsets = [0, 16], sizes = [16, 8], strides = [1, 1]} : vector<16x32xf32> to vector<16x8xf32>
    %569 = arith.truncf %567 : vector<8x8xf32> to vector<8x8xbf16>
    %570 = arith.truncf %568 : vector<16x8xf32> to vector<16x8xbf16>
    "tpu.trace_start"() <{level = 10 : i32, message = "qd,kd->qk"}> : () -> ()
    %cst_210 = arith.constant dense<0.000000e+00> : vector<8x16xf32>
    %571 = tpu.matmul %569, %570, %cst_210 {dimension_numbers = #tpu.dot_dimension_numbers<[1], [1], [0], [0], [0, 0, 1, 0], [], []>} : vector<8x8xbf16>, vector<16x8xbf16>, vector<8x16xf32> -> vector<8x16xf32>
    "tpu.trace_stop"() : () -> ()
    %cst_211 = arith.constant dense<0xFF800000> : vector<8xf32>
    %572 = vector.multi_reduction <maximumf>, %571, %cst_211 [1] : vector<8x16xf32> to vector<8xf32>
    %573 = vector.shape_cast %572 : vector<8xf32> to vector<8x1xf32>
    %574 = vector.broadcast %573 : vector<8x1xf32> to vector<8x16xf32>
    %575 = arith.subf %571, %574 : vector<8x16xf32>
    %576 = math.exp %575 : vector<8x16xf32>
    %cst_212 = arith.constant dense<0.000000e+00> : vector<8xf32>
    %577 = vector.multi_reduction <add>, %576, %cst_212 [1] : vector<8x16xf32> to vector<8xf32>
    %578 = vector.shape_cast %577 : vector<8xf32> to vector<8x1xf32>
    %579 = tpu.reciprocal %578 {approx = true} : vector<8x1xf32> -> vector<8x1xf32>
    %580 = vector.broadcast %579 : vector<8x1xf32> to vector<8x16xf32>
    %581 = arith.mulf %576, %580 : vector<8x16xf32>
    %582 = vector.extract_strided_slice %524 {offsets = [0, 16], sizes = [16, 8], strides = [1, 1]} : vector<16x32xf32> to vector<16x8xf32>
    %583 = arith.truncf %581 : vector<8x16xf32> to vector<8x16xbf16>
    %584 = arith.truncf %582 : vector<16x8xf32> to vector<16x8xbf16>
    %cst_213 = arith.constant dense<0.000000e+00> : vector<8x8xf32>
    %585 = tpu.matmul %583, %584, %cst_213 {dimension_numbers = #tpu.dot_dimension_numbers<[1], [0], [0], [1], [0, 0, 1, 1], [], []>} : vector<8x16xbf16>, vector<16x8xbf16>, vector<8x8xf32> -> vector<8x8xf32>
    %586 = vector.extract_strided_slice %514 {offsets = [0, 24], sizes = [8, 8], strides = [1, 1]} : vector<8x32xf32> to vector<8x8xf32>
    %587 = vector.extract_strided_slice %523 {offsets = [0, 24], sizes = [16, 8], strides = [1, 1]} : vector<16x32xf32> to vector<16x8xf32>
    %588 = arith.truncf %586 : vector<8x8xf32> to vector<8x8xbf16>
    %589 = arith.truncf %587 : vector<16x8xf32> to vector<16x8xbf16>
    "tpu.trace_start"() <{level = 10 : i32, message = "qd,kd->qk"}> : () -> ()
    %cst_214 = arith.constant dense<0.000000e+00> : vector<8x16xf32>
    %590 = tpu.matmul %588, %589, %cst_214 {dimension_numbers = #tpu.dot_dimension_numbers<[1], [1], [0], [0], [0, 0, 1, 0], [], []>} : vector<8x8xbf16>, vector<16x8xbf16>, vector<8x16xf32> -> vector<8x16xf32>
    "tpu.trace_stop"() : () -> ()
    %cst_215 = arith.constant dense<0xFF800000> : vector<8xf32>
    %591 = vector.multi_reduction <maximumf>, %590, %cst_215 [1] : vector<8x16xf32> to vector<8xf32>
    %592 = vector.shape_cast %591 : vector<8xf32> to vector<8x1xf32>
    %593 = vector.broadcast %592 : vector<8x1xf32> to vector<8x16xf32>
    %594 = arith.subf %590, %593 : vector<8x16xf32>
    %595 = math.exp %594 : vector<8x16xf32>
    %cst_216 = arith.constant dense<0.000000e+00> : vector<8xf32>
    %596 = vector.multi_reduction <add>, %595, %cst_216 [1] : vector<8x16xf32> to vector<8xf32>
    %597 = vector.shape_cast %596 : vector<8xf32> to vector<8x1xf32>
    %598 = tpu.reciprocal %597 {approx = true} : vector<8x1xf32> -> vector<8x1xf32>
    %599 = vector.broadcast %598 : vector<8x1xf32> to vector<8x16xf32>
    %600 = arith.mulf %595, %599 : vector<8x16xf32>
    %601 = vector.extract_strided_slice %524 {offsets = [0, 24], sizes = [16, 8], strides = [1, 1]} : vector<16x32xf32> to vector<16x8xf32>
    %602 = arith.truncf %600 : vector<8x16xf32> to vector<8x16xbf16>
    %603 = arith.truncf %601 : vector<16x8xf32> to vector<16x8xbf16>
    %cst_217 = arith.constant dense<0.000000e+00> : vector<8x8xf32>
    %604 = tpu.matmul %602, %603, %cst_217 {dimension_numbers = #tpu.dot_dimension_numbers<[1], [0], [0], [1], [0, 0, 1, 1], [], []>} : vector<8x16xbf16>, vector<16x8xbf16>, vector<8x8xf32> -> vector<8x8xf32>
    %605 = tpu.concatenate %547, %566, %585, %604 in 1 : vector<8x8xf32>, vector<8x8xf32>, vector<8x8xf32>, vector<8x8xf32> -> vector<8x32xf32>
    %606 = arith.truncf %605 : vector<8x32xf32> to vector<8x32xbf16>
    %cst_218 = arith.constant dense<0.000000e+00> : vector<8x32xf32>
    %607 = tpu.matmul %606, %526, %cst_218 {dimension_numbers = #tpu.dot_dimension_numbers<[1], [0], [0], [1], [0, 0, 1, 1], [], []>} : vector<8x32xbf16>, vector<32x32xbf16>, vector<8x32xf32> -> vector<8x32xf32>
    %608 = arith.extf %528 : vector<1x32xbf16> to vector<1x32xf32>
    %609 = vector.broadcast %608 : vector<1x32xf32> to vector<8x32xf32>
    %610 = arith.addf %607, %609 : vector<8x32xf32>
    %611 = arith.addf %479, %610 : vector<8x32xf32>
    %c1_219 = arith.constant 1 : index
    %c0_220 = arith.constant 0 : index
    %c0_221 = arith.constant 0 : index
    %612 = vector.load %arg19[%c1_219, %c0_220, %c0_221] : memref<2x1x32xf32, #tpu.memory_space<vmem>>, vector<1x1x32xf32>
    %613 = vector.shape_cast %612 : vector<1x1x32xf32> to vector<1x32xf32>
    %c1_222 = arith.constant 1 : index
    %c0_223 = arith.constant 0 : index
    %c0_224 = arith.constant 0 : index
    %614 = vector.load %arg20[%c1_222, %c0_223, %c0_224] : memref<2x1x32xf32, #tpu.memory_space<vmem>>, vector<1x1x32xf32>
    %615 = vector.shape_cast %614 : vector<1x1x32xf32> to vector<1x32xf32>
    %cst_225 = arith.constant dense<0.000000e+00> : vector<8xf32>
    %616 = vector.multi_reduction <add>, %611, %cst_225 [1] : vector<8x32xf32> to vector<8xf32>
    %617 = vector.shape_cast %616 : vector<8xf32> to vector<8x1xf32>
    %cst_226 = arith.constant 3.200000e+01 : f32
    %618 = vector.broadcast %cst_226 : f32 to vector<8x1xf32>
    %619 = arith.divf %617, %618 : vector<8x1xf32>
    %620 = vector.broadcast %619 : vector<8x1xf32> to vector<8x32xf32>
    %621 = arith.subf %611, %620 : vector<8x32xf32>
    %622 = arith.mulf %621, %621 : vector<8x32xf32>
    %cst_227 = arith.constant dense<0.000000e+00> : vector<8xf32>
    %623 = vector.multi_reduction <add>, %622, %cst_227 [1] : vector<8x32xf32> to vector<8xf32>
    %624 = vector.shape_cast %623 : vector<8xf32> to vector<8x1xf32>
    %cst_228 = arith.constant 3.200000e+01 : f32
    %625 = vector.broadcast %cst_228 : f32 to vector<8x1xf32>
    %626 = arith.divf %624, %625 : vector<8x1xf32>
    %627 = vector.broadcast %619 : vector<8x1xf32> to vector<8x32xf32>
    %628 = arith.subf %611, %627 : vector<8x32xf32>
    %cst_229 = arith.constant 9.99999974E-6 : f32
    %629 = vector.broadcast %cst_229 : f32 to vector<8x1xf32>
    %630 = arith.addf %626, %629 : vector<8x1xf32>
    %631 = math.rsqrt %630 : vector<8x1xf32>
    %632 = vector.broadcast %631 : vector<8x1xf32> to vector<8x32xf32>
    %633 = arith.mulf %628, %632 : vector<8x32xf32>
    %634 = vector.broadcast %613 : vector<1x32xf32> to vector<8x32xf32>
    %635 = arith.mulf %633, %634 : vector<8x32xf32>
    %636 = vector.broadcast %615 : vector<1x32xf32> to vector<8x32xf32>
    %637 = arith.addf %635, %636 : vector<8x32xf32>
    %c1_230 = arith.constant 1 : index
    %c0_231 = arith.constant 0 : index
    %c0_232 = arith.constant 0 : index
    %638 = vector.load %arg21[%c1_230, %c0_231, %c0_232] : memref<2x32x64xbf16, #tpu.memory_space<vmem>>, vector<1x32x64xbf16>
    %639 = vector.shape_cast %638 : vector<1x32x64xbf16> to vector<32x64xbf16>
    %640 = arith.truncf %637 : vector<8x32xf32> to vector<8x32xbf16>
    %cst_233 = arith.constant dense<0.000000e+00> : vector<8x64xf32>
    %641 = tpu.matmul %640, %639, %cst_233 {dimension_numbers = #tpu.dot_dimension_numbers<[1], [0], [0], [1], [0, 0, 1, 1], [], []>} : vector<8x32xbf16>, vector<32x64xbf16>, vector<8x64xf32> -> vector<8x64xf32>
    %c1_234 = arith.constant 1 : index
    %c0_235 = arith.constant 0 : index
    %c0_236 = arith.constant 0 : index
    %642 = vector.load %arg22[%c1_234, %c0_235, %c0_236] : memref<2x1x64xbf16, #tpu.memory_space<vmem>>, vector<1x1x64xbf16>
    %643 = vector.shape_cast %642 : vector<1x1x64xbf16> to vector<1x64xbf16>
    %644 = arith.extf %643 : vector<1x64xbf16> to vector<1x64xf32>
    %645 = vector.broadcast %644 : vector<1x64xf32> to vector<8x64xf32>
    %646 = arith.addf %641, %645 : vector<8x64xf32>
    %647 = arith.mulf %646, %646 : vector<8x64xf32>
    %648 = arith.mulf %646, %647 : vector<8x64xf32>
    %cst_237 = arith.constant 4.471500e-02 : f32
    %649 = vector.broadcast %cst_237 : f32 to vector<8x64xf32>
    %650 = arith.mulf %649, %648 : vector<8x64xf32>
    %651 = arith.addf %646, %650 : vector<8x64xf32>
    %cst_238 = arith.constant 0.797884583 : f32
    %652 = vector.broadcast %cst_238 : f32 to vector<8x64xf32>
    %653 = arith.mulf %652, %651 : vector<8x64xf32>
    %654 = math.tanh %653 : vector<8x64xf32>
    %cst_239 = arith.constant 1.000000e+00 : f32
    %655 = vector.broadcast %cst_239 : f32 to vector<8x64xf32>
    %656 = arith.addf %655, %654 : vector<8x64xf32>
    %cst_240 = arith.constant 5.000000e-01 : f32
    %657 = vector.broadcast %cst_240 : f32 to vector<8x64xf32>
    %658 = arith.mulf %657, %656 : vector<8x64xf32>
    %659 = arith.mulf %646, %658 : vector<8x64xf32>
    %c1_241 = arith.constant 1 : index
    %c0_242 = arith.constant 0 : index
    %c0_243 = arith.constant 0 : index
    %660 = vector.load %arg23[%c1_241, %c0_242, %c0_243] : memref<2x64x32xbf16, #tpu.memory_space<vmem>>, vector<1x64x32xbf16>
    %661 = vector.shape_cast %660 : vector<1x64x32xbf16> to vector<64x32xbf16>
    %662 = arith.truncf %659 : vector<8x64xf32> to vector<8x64xbf16>
    %cst_244 = arith.constant dense<0.000000e+00> : vector<8x32xf32>
    %663 = tpu.matmul %662, %661, %cst_244 {dimension_numbers = #tpu.dot_dimension_numbers<[1], [0], [0], [1], [0, 0, 1, 1], [], []>} : vector<8x64xbf16>, vector<64x32xbf16>, vector<8x32xf32> -> vector<8x32xf32>
    %664 = arith.addf %611, %663 : vector<8x32xf32>
    %c1_245 = arith.constant 1 : index
    %c0_246 = arith.constant 0 : index
    %c0_247 = arith.constant 0 : index
    %665 = vector.load %arg24[%c1_245, %c0_246, %c0_247] : memref<2x1x32xbf16, #tpu.memory_space<vmem>>, vector<1x1x32xbf16>
    %666 = vector.shape_cast %665 : vector<1x1x32xbf16> to vector<1x32xbf16>
    %667 = arith.extf %666 : vector<1x32xbf16> to vector<1x32xf32>
    %668 = vector.broadcast %667 : vector<1x32xf32> to vector<8x32xf32>
    %669 = arith.addf %664, %668 : vector<8x32xf32>
    %c0_248 = arith.constant 0 : index
    %c0_249 = arith.constant 0 : index
    %670 = vector.load %arg25[%c0_248, %c0_249] : memref<1x32xf32, #tpu.memory_space<vmem>>, vector<1x32xf32>
    %c0_250 = arith.constant 0 : index
    %c0_251 = arith.constant 0 : index
    %671 = vector.load %arg26[%c0_250, %c0_251] : memref<1x32xf32, #tpu.memory_space<vmem>>, vector<1x32xf32>
    %cst_252 = arith.constant dense<0.000000e+00> : vector<8xf32>
    %672 = vector.multi_reduction <add>, %669, %cst_252 [1] : vector<8x32xf32> to vector<8xf32>
    %673 = vector.shape_cast %672 : vector<8xf32> to vector<8x1xf32>
    %cst_253 = arith.constant 3.200000e+01 : f32
    %674 = vector.broadcast %cst_253 : f32 to vector<8x1xf32>
    %675 = arith.divf %673, %674 : vector<8x1xf32>
    %676 = vector.broadcast %675 : vector<8x1xf32> to vector<8x32xf32>
    %677 = arith.subf %669, %676 : vector<8x32xf32>
    %678 = arith.mulf %677, %677 : vector<8x32xf32>
    %cst_254 = arith.constant dense<0.000000e+00> : vector<8xf32>
    %679 = vector.multi_reduction <add>, %678, %cst_254 [1] : vector<8x32xf32> to vector<8xf32>
    %680 = vector.shape_cast %679 : vector<8xf32> to vector<8x1xf32>
    %cst_255 = arith.constant 3.200000e+01 : f32
    %681 = vector.broadcast %cst_255 : f32 to vector<8x1xf32>
    %682 = arith.divf %680, %681 : vector<8x1xf32>
    %683 = vector.broadcast %675 : vector<8x1xf32> to vector<8x32xf32>
    %684 = arith.subf %669, %683 : vector<8x32xf32>
    %cst_256 = arith.constant 9.99999974E-6 : f32
    %685 = vector.broadcast %cst_256 : f32 to vector<8x1xf32>
    %686 = arith.addf %682, %685 : vector<8x1xf32>
    %687 = math.rsqrt %686 : vector<8x1xf32>
    %688 = vector.broadcast %687 : vector<8x1xf32> to vector<8x32xf32>
    %689 = arith.mulf %684, %688 : vector<8x32xf32>
    %690 = vector.broadcast %670 : vector<1x32xf32> to vector<8x32xf32>
    %691 = arith.mulf %689, %690 : vector<8x32xf32>
    %692 = vector.broadcast %671 : vector<1x32xf32> to vector<8x32xf32>
    %693 = arith.addf %691, %692 : vector<8x32xf32>
    %c0_257 = arith.constant 0 : index
    %c0_258 = arith.constant 0 : index
    %694 = vector.load %arg27[%c0_257, %c0_258] : memref<8x32xf32, #tpu.memory_space<vmem>>, vector<8x32xf32>
    tpu.vector_store %arg27[%c0_257, %c0_258], %693 {strides = array<i32>} : memref<8x32xf32, #tpu.memory_space<vmem>>, vector<8x32xf32>,
    return
  }
  func.func @transform_0(%arg0: i32) -> (i32, i32) {
    %c0_i32 = arith.constant 0 : i32
    %c0_i32_0 = arith.constant 0 : i32
    %c0_i32_1 = arith.constant 0 : i32
    return %c0_i32, %c0_i32_0 : i32, i32
  }
  func.func @transform_1(%arg0: i32) -> (i32, i32) {
    %c0_i32 = arith.constant 0 : i32
    %c0_i32_0 = arith.constant 0 : i32
    %c0_i32_1 = arith.constant 0 : i32
    return %c0_i32, %c0_i32_0 : i32, i32
  }
  func.func @transform_2(%arg0: i32) -> (i32, i32) {
    %c0_i32 = arith.constant 0 : i32
    %c0_i32_0 = arith.constant 0 : i32
    %c0_i32_1 = arith.constant 0 : i32
    return %c0_i32, %c0_i32_0 : i32, i32
  }
  func.func @transform_3(%arg0: i32) -> (i32, i32) {
    %c0_i32 = arith.constant 0 : i32
    %c0_i32_0 = arith.constant 0 : i32
    %c0_i32_1 = arith.constant 0 : i32
    return %c0_i32, %c0_i32_0 : i32, i32
  }
  func.func @transform_4(%arg0: i32) -> (i32, i32, i32) {
    %c0_i32 = arith.constant 0 : i32
    %c0_i32_0 = arith.constant 0 : i32
    %c0_i32_1 = arith.constant 0 : i32
    %c0_i32_2 = arith.constant 0 : i32
    return %c0_i32, %c0_i32_0, %c0_i32_1 : i32, i32, i32
  }
  func.func @transform_5(%arg0: i32) -> (i32, i32, i32) {
    %c0_i32 = arith.constant 0 : i32
    %c0_i32_0 = arith.constant 0 : i32
    %c0_i32_1 = arith.constant 0 : i32
    %c0_i32_2 = arith.constant 0 : i32
    return %c0_i32, %c0_i32_0, %c0_i32_1 : i32, i32, i32
  }
  func.func @transform_6(%arg0: i32) -> (i32, i32, i32) {
    %c0_i32 = arith.constant 0 : i32
    %c0_i32_0 = arith.constant 0 : i32
    %c0_i32_1 = arith.constant 0 : i32
    %c0_i32_2 = arith.constant 0 : i32
    return %c0_i32, %c0_i32_0, %c0_i32_1 : i32, i32, i32
  }
  func.func @transform_7(%arg0: i32) -> (i32, i32, i32) {
    %c0_i32 = arith.constant 0 : i32
    %c0_i32_0 = arith.constant 0 : i32
    %c0_i32_1 = arith.constant 0 : i32
    %c0_i32_2 = arith.constant 0 : i32
    return %c0_i32, %c0_i32_0, %c0_i32_1 : i32, i32, i32
  }
  func.func @transform_8(%arg0: i32) -> (i32, i32, i32) {
    %c0_i32 = arith.constant 0 : i32
    %c0_i32_0 = arith.constant 0 : i32
    %c0_i32_1 = arith.constant 0 : i32
    %c0_i32_2 = arith.constant 0 : i32
    return %c0_i32, %c0_i32_0, %c0_i32_1 : i32, i32, i32
  }
  func.func @transform_9(%arg0: i32) -> (i32, i32, i32) {
    %c0_i32 = arith.constant 0 : i32
    %c0_i32_0 = arith.constant 0 : i32
    %c0_i32_1 = arith.constant 0 : i32
    %c0_i32_2 = arith.constant 0 : i32
    return %c0_i32, %c0_i32_0, %c0_i32_1 : i32, i32, i32
  }
  func.func @transform_10(%arg0: i32) -> (i32, i32, i32) {
    %c0_i32 = arith.constant 0 : i32
    %c0_i32_0 = arith.constant 0 : i32
    %c0_i32_1 = arith.constant 0 : i32
    %c0_i32_2 = arith.constant 0 : i32
    return %c0_i32, %c0_i32_0, %c0_i32_1 : i32, i32, i32
  }
  func.func @transform_11(%arg0: i32) -> (i32, i32, i32) {
    %c0_i32 = arith.constant 0 : i32
    %c0_i32_0 = arith.constant 0 : i32
    %c0_i32_1 = arith.constant 0 : i32
    %c0_i32_2 = arith.constant 0 : i32
    return %c0_i32, %c0_i32_0, %c0_i32_1 : i32, i32, i32
  }
  func.func @transform_12(%arg0: i32) -> (i32, i32, i32) {
    %c0_i32 = arith.constant 0 : i32
    %c0_i32_0 = arith.constant 0 : i32
    %c0_i32_1 = arith.constant 0 : i32
    %c0_i32_2 = arith.constant 0 : i32
    return %c0_i32, %c0_i32_0, %c0_i32_1 : i32, i32, i32
  }
  func.func @transform_13(%arg0: i32) -> (i32, i32, i32) {
    %c0_i32 = arith.constant 0 : i32
    %c0_i32_0 = arith.constant 0 : i32
    %c0_i32_1 = arith.constant 0 : i32
    %c0_i32_2 = arith.constant 0 : i32
    return %c0_i32, %c0_i32_0, %c0_i32_1 : i32, i32, i32
  }
  func.func @transform_14(%arg0: i32) -> (i32, i32, i32) {
    %c0_i32 = arith.constant 0 : i32
    %c0_i32_0 = arith.constant 0 : i32
    %c0_i32_1 = arith.constant 0 : i32
    %c0_i32_2 = arith.constant 0 : i32
    return %c0_i32, %c0_i32_0, %c0_i32_1 : i32, i32, i32
  }
  func.func @transform_15(%arg0: i32) -> (i32, i32, i32) {
    %c0_i32 = arith.constant 0 : i32
    %c0_i32_0 = arith.constant 0 : i32
    %c0_i32_1 = arith.constant 0 : i32
    %c0_i32_2 = arith.constant 0 : i32
    return %c0_i32, %c0_i32_0, %c0_i32_1 : i32, i32, i32
  }
  func.func @transform_16(%arg0: i32) -> (i32, i32, i32) {
    %c0_i32 = arith.constant 0 : i32
    %c0_i32_0 = arith.constant 0 : i32
    %c0_i32_1 = arith.constant 0 : i32
    %c0_i32_2 = arith.constant 0 : i32
    return %c0_i32, %c0_i32_0, %c0_i32_1 : i32, i32, i32
  }
  func.func @transform_17(%arg0: i32) -> (i32, i32, i32) {
    %c0_i32 = arith.constant 0 : i32
    %c0_i32_0 = arith.constant 0 : i32
    %c0_i32_1 = arith.constant 0 : i32
    %c0_i32_2 = arith.constant 0 : i32
    return %c0_i32, %c0_i32_0, %c0_i32_1 : i32, i32, i32
  }
  func.func @transform_18(%arg0: i32) -> (i32, i32, i32) {
    %c0_i32 = arith.constant 0 : i32
    %c0_i32_0 = arith.constant 0 : i32
    %c0_i32_1 = arith.constant 0 : i32
    %c0_i32_2 = arith.constant 0 : i32
    return %c0_i32, %c0_i32_0, %c0_i32_1 : i32, i32, i32
  }
  func.func @transform_19(%arg0: i32) -> (i32, i32, i32) {
    %c0_i32 = arith.constant 0 : i32
    %c0_i32_0 = arith.constant 0 : i32
    %c0_i32_1 = arith.constant 0 : i32
    %c0_i32_2 = arith.constant 0 : i32
    return %c0_i32, %c0_i32_0, %c0_i32_1 : i32, i32, i32
  }
  func.func @transform_20(%arg0: i32) -> (i32, i32, i32) {
    %c0_i32 = arith.constant 0 : i32
    %c0_i32_0 = arith.constant 0 : i32
    %c0_i32_1 = arith.constant 0 : i32
    %c0_i32_2 = arith.constant 0 : i32
    return %c0_i32, %c0_i32_0, %c0_i32_1 : i32, i32, i32
  }
  func.func @transform_21(%arg0: i32) -> (i32, i32, i32) {
    %c0_i32 = arith.constant 0 : i32
    %c0_i32_0 = arith.constant 0 : i32
    %c0_i32_1 = arith.constant 0 : i32
    %c0_i32_2 = arith.constant 0 : i32
    return %c0_i32, %c0_i32_0, %c0_i32_1 : i32, i32, i32
  }
  func.func @transform_22(%arg0: i32) -> (i32, i32, i32) {
    %c0_i32 = arith.constant 0 : i32
    %c0_i32_0 = arith.constant 0 : i32
    %c0_i32_1 = arith.constant 0 : i32
    %c0_i32_2 = arith.constant 0 : i32
    return %c0_i32, %c0_i32_0, %c0_i32_1 : i32, i32, i32
  }
  func.func @transform_23(%arg0: i32) -> (i32, i32, i32) {
    %c0_i32 = arith.constant 0 : i32
    %c0_i32_0 = arith.constant 0 : i32
    %c0_i32_1 = arith.constant 0 : i32
    %c0_i32_2 = arith.constant 0 : i32
    return %c0_i32, %c0_i32_0, %c0_i32_1 : i32, i32, i32
  }
  func.func @transform_24(%arg0: i32) -> (i32, i32) {
    %c0_i32 = arith.constant 0 : i32
    %c0_i32_0 = arith.constant 0 : i32
    %c0_i32_1 = arith.constant 0 : i32
    return %c0_i32, %c0_i32_0 : i32, i32
  }
  func.func @transform_25(%arg0: i32) -> (i32, i32) {
    %c0_i32 = arith.constant 0 : i32
    %c0_i32_0 = arith.constant 0 : i32
    %c0_i32_1 = arith.constant 0 : i32
    return %c0_i32, %c0_i32_0 : i32, i32
  }
  func.func @transform_26(%arg0: i32) -> (i32, i32) {
    %c0_i32 = arith.constant 0 : i32
    %c0_i32_0 = arith.constant 0 : i32
    %c0_i32_1 = arith.constant 0 : i32
    return %c0_i32, %c0_i32_0 : i32, i32
  }
}

</mosaic_0001>

<bundles_post_ra>
// kernel: dolphin_forward.2
= control target key start
LH: loop header
LB: loop body
LE: loop exit
PB: predicated region body
PF: predicated region fallthrough
CT: control target
= control target key end

     0   :  { %vm96_vm0 = vcmask 392192   ;;  %vm116_vm1 = vcmask 261120   ;;  %v1809_v15 = vmov 32.0   ;;  %s1810_s22 = smov 96   ;;  %s1812_s24 = smov 80   ;;  %vm282_vm15 = vcmask 64512   ;;  %s2361_s1 = inlined_call_operand.vmem [shape: bf16[48,32], index: 1, kind: input, shape index: {}]   ;;  %s2362_s0 = inlined_call_operand.vmem [shape: f32[16,48], index: 0, kind: input, shape index: {}]   ;;  %s2363_s2 = inlined_call_operand.vmem [shape: bf16[1,32], index: 2, kind: input, shape index: {}]   ;;  %s2364_s3 = inlined_call_operand.vmem [shape: f32[1,32], index: 3, kind: input, shape index: {}]   ;;  %s2365_s4 = inlined_call_operand.vmem [shape: f32[1,32], index: 4, kind: input, shape index: {}]   ;;  %s2366_s6 = inlined_call_operand.vmem [shape: f32[2,1,32], index: 6, kind: input, shape index: {}]   ;;  %s2367_s7 = inlined_call_operand.vmem [shape: f32[2,1,32], index: 7, kind: input, shape index: {}]   ;;  %s2368_s8 = inlined_call_operand.vmem [shape: bf16[2,32,96], index: 8, kind: input, shape index: {}]   ;;  %s2369_s9 = inlined_call_operand.vmem [shape: bf16[2,1,96], index: 9, kind: input, shape index: {}]   ;;  %s2370_s5 = inlined_call_operand.vmem [shape: f32[4,16,16], index: 5, kind: input, shape index: {}]   ;;  %s2371_s10 = inlined_call_operand.vmem [shape: bf16[2,32,32], index: 10, kind: input, shape index: {}]   ;;  %s2372_s11 = inlined_call_operand.vmem [shape: bf16[2,1,32], index: 11, kind: input, shape index: {}]   ;;  %s2373_s12 = inlined_call_operand.vmem [shape: f32[2,1,32], index: 12, kind: input, shape index: {}]   ;;  %s2374_s13 = inlined_call_operand.vmem [shape: f32[2,1,32], index: 13, kind: input, shape index: {}]   ;;  %s2375_s14 = inlined_call_operand.vmem [shape: bf16[2,32,64], index: 14, kind: input, shape index: {}]   ;;  %s2376_s16 = inlined_call_operand.vmem [shape: bf16[2,64,32], index: 16, kind: input, shape index: {}]   ;;  %s2377_s15 = inlined_call_operand.vmem [shape: bf16[2,1,64], index: 15, kind: input, shape index: {}]   ;;  %s2378_s17 = inlined_call_operand.vmem [shape: bf16[2,1,32], index: 17, kind: input, shape index: {}]   ;;  %s2379_s18 = inlined_call_operand.vmem [shape: f32[1,32], index: 18, kind: input, shape index: {}]   ;;  %s2380_s19 = inlined_call_operand.vmem [shape: f32[1,32], index: 19, kind: input, shape index: {}]   ;;  %s2381_s20 = inlined_call_operand.vmem [shape: bf16[16,32], index: 20, kind: output, shape index: {}]  }
   0x1   :  { %2390 = sst [smem:[#allocation2_spill]] %s2361_s1  ;;  %1711 = vrcp.f32 %v1809_v15  ;;  %s1816_s29 = smov 112  }
   0x2   :  { %2391 = sst [smem:[#allocation3_spill]] %s2362_s0  ;;  %s1817_s30 = smov 88  }
   0x3   :  { %2392 = sst [smem:[#allocation4_spill]] %s2363_s2  ;;  %s1813_s2 = smov 72  }
   0x4   :  { %2393 = sst [smem:[#allocation5_spill]] %s2364_s3  ;;  %s2389_s27 = smov 56  }
   0x5   :  { %2394 = sst [smem:[#allocation6_spill]] %s2365_s4  ;;  %s1815_s4 = smov 64  }
   0x6   :  { %s2395_s23 = sld [smem:[#allocation2_spill]]  ;;  %s2387_s1 = smov 16  }
   0x7   :  { %s2396_s28 = sld [smem:[#allocation3_spill]]  ;;  %v1712_v16 = vpop.eup %1711  ;;  %s2386_s0 = smov 24  }
   0x8   :  { %s2397_s21 = sld [smem:[#allocation4_spill]]  ;;  %v124_v17 = vmul.f32 32.0, %v1712_v16  ;;  %vm128_vm2 = vweird.f32 %v1712_v16 }
   0x9   :  { %s2399_s25 = sld [smem:[#allocation6_spill]] }
   0xa   :  { %v125_v18 = vsub.f32 1.0, %v124_v17 }
   0xc   :  { %v1633_v0 = vld [vmem:[%s2395_s23 + $0x10] sm:$0xff]  ;;  %v1632_v1 = vld [vmem:[%s2395_s23 + $0x8] sm:$0xff]  ;;  %v1631_v2 = vld [vmem:[%s2395_s23] sm:$0xff]  ;;  %v126_v19 = vmul.f32 %v1712_v16, %v125_v18  ;;  %s2398_s23 = sld [smem:[#allocation5_spill]] }
   0xd   :  { %105 = vmatpush.bf16.msra.mxu0 %v1633_v0  ;;  %v66_v3 = vld [vmem:[%s2396_s28] sm:$0xff]  ;;  %v67_v4 = vld [vmem:[%s2396_s28 + $0x8] sm:$0xff]  ;;  %s2385_s28 = smov 40  }
   0xe   :  { %v74_v5 = vpack.c.bf16 %v67_v4, %v66_v3  ;;  %v75_v6 = vld [vmem:[%s2397_s21] sm:$0x1]  ;;  %v127_v20 = vadd.f32 %v1712_v16, %v126_v19  ;;  %s2388_s21 = smov 8  }
   0xf   :  { %v76_v7 = vunpack.c.l.bf16 %v75_v6  ;;  %v1700_v50 = vld [vmem:[%s2399_s25] ss:$0 sm:$0xff]  ;;  %s1814_s25 = smov 104  }
  0x10   :  { %v1949_v21 = vsel %vm128_vm2, %v1712_v16, %v127_v20  ;;  %vm585_vm2 = vcmask 195584  }
  0x11   :  { %106 = vmatpush.bf16.msra.mxu0 %v1632_v1  ;;  %v77_v8 = vperm.slane %v76_v7, 0 }
  0x12   :  { %v1699_v46 = vld [vmem:[%s2398_s23] ss:$0 sm:$0xff]  ;;  %s1811_s23 = smov 120  }
  0x15   :  { %107 = vmatpush.bf16.msra.mxu0 %v1631_v2 }
  0x18   :  { %1486 = vmatmul.msk.bf16.vlgmr.msra.gmra.mxu0 %vm96_vm0, %v74_v5  ;;  %vm303_vm0 = vcmask 130048  }
  0x95   :  { %v109_v9 = vpop.f32.mrf.mxu0 }
  0x96   :  { %v110_v10 = vadd.f32 %v109_v9, %v77_v8 }
  0x98   :  { %v117_v11 = vsel %vm116_vm1, %v110_v10, 0.0 }
  0x99   :  { %118 = vadd.xlane.f32.xlu0 %v117_v11 }
  0x9d   :  { %v111_v12 = vpop.f32.mrf.mxu0 }
  0x9e   :  { %v112_v13 = vadd.f32 %v111_v12, %v77_v8  ;;  %v1635_v8 = vld [vmem:[%s2368_s8 + $0x8] sm:$0xff] }
  0x9f   :  { %263 = vmatpush.bf16.msra.mxu1 %v1635_v8 }
  0xa0   :  { %v120_v14 = vsel %vm116_vm1, %v112_v13, 0.0 }
  0xa1   :  { %121 = vadd.xlane.f32.xlu0 %v120_v14 }
 0x10c   :  { %v119_v22 = vpop.xlane.xlu0 %118 }
 0x10d   :  { %v130_v23 = vmul.f32 %v1949_v21, %v119_v22 }
 0x10f   :  { %v132_v24 = vsub.f32 %v110_v10, %v130_v23  ;;  %v1634_v10 = vld [vmem:[%s2368_s8] sm:$0xff] }
 0x110   :  { %264 = vmatpush.bf16.msra.mxu1 %v1634_v10 }
 0x111   :  { %v134_v25 = vmul.f32 %v132_v24, %v132_v24 }
 0x113   :  { %v136_v26 = vsel %vm116_vm1, %v134_v25, 0.0 }
 0x114   :  { %137 = vadd.xlane.f32.xlu1 %v136_v26  ;;  %v122_v27 = vpop.xlane.xlu0 %121 }
 0x115   :  { %v131_v28 = vmul.f32 %v1949_v21, %v122_v27 }
 0x117   :  { %v133_v29 = vsub.f32 %v112_v13, %v131_v28 }
 0x119   :  { %v135_v30 = vmul.f32 %v133_v29, %v133_v29 }
 0x11b   :  { %v139_v31 = vsel %vm116_vm1, %v135_v30, 0.0  ;;  %v1701_v30 = vld [vmem:[%s2366_s6] ss:$0 sm:$0xff] }
 0x11c   :  { %140 = vadd.xlane.f32.xlu1 %v139_v31 }
 0x187   :  { %v138_v32 = vpop.xlane.xlu1 %137 }
 0x188   :  { %v142_v33 = vmul.f32 %v138_v32, %v1949_v21 }
 0x18a   :  { %v144_v34 = vadd.f32 1e-05, %v142_v33 }
 0x18c   :  { %1713 = vrsqrt.f32 %v144_v34  ;;  %vm152_vm4 = vweird.f32 %v144_v34 }
 0x18f   :  { %v141_v35 = vpop.xlane.xlu1 %140 }
 0x190   :  { %v143_v36 = vmul.f32 %v141_v35, %v1949_v21  ;;  %v1702_v35 = vld [vmem:[%s2367_s7] ss:$0 sm:$0xff] }
 0x192   :  { %v1714_v37 = vpop.eup %1713  ;;  %v145_v38 = vadd.f32 1e-05, %v143_v36 }
 0x193   :  { %v147_v39 = vmul.f32 %v1714_v37, %v144_v34  ;;  %vm153_vm3 = vweird.f32 %v1714_v37 }
 0x194   :  { %1715 = vrsqrt.f32 %v145_v38  ;;  %vm154_vm5 = vmor %vm152_vm4, %vm153_vm3  ;;  %vm162_vm7 = vweird.f32 %v145_v38 }
 0x195   :  { %v148_v40 = vmul.f32 %v1714_v37, %v147_v39 }
 0x197   :  { %v149_v41 = vmul.f32 0.5, %v148_v40  ;;  %v239_v40 = vld [vmem:[%s2369_s9] sm:$0x1] }
 0x199   :  { %v150_v42 = vsub.f32 1.5, %v149_v41 }
 0x19a   :  { %v1716_v43 = vpop.eup %1715 }
 0x19b   :  { %v151_v44 = vmul.f32 %v1714_v37, %v150_v42  ;;  %v157_v45 = vmul.f32 %v1716_v43, %v145_v38  ;;  %vm163_vm6 = vweird.f32 %v1716_v43  ;;  %v240_v42 = vunpack.c.l.bf16 %v239_v40 }
 0x19c   :  { %vm164_vm8 = vmor %vm162_vm7, %vm163_vm6 }
 0x19d   :  { %v155_v47 = vsel %vm154_vm5, %v1714_v37, %v151_v44  ;;  %v158_v48 = vmul.f32 %v1716_v43, %v157_v45 }
 0x19e   :  { %v166_v49 = vmul.f32 %v155_v47, %v132_v24 }
 0x19f   :  { %v159_v51 = vmul.f32 0.5, %v158_v48 }
 0x1a0   :  { %v171_v52 = vmul.f32 %v1699_v46, %v166_v49 }
 0x1a1   :  { %v160_v53 = vsub.f32 1.5, %v159_v51 }
 0x1a2   :  { %v1963_v54 = vadd.f32 %v1700_v50, %v171_v52 }
 0x1a3   :  { %v161_v55 = vmul.f32 %v1716_v43, %v160_v53  ;;  %v2014_v53 = vld [vmem:[%s2370_s5] sm:$0xff] }
 0x1a4   :  { %v180_v56 = vsel %vm116_vm1, %v1963_v54, 0.0 }
 0x1a5   :  { %v165_v57 = vsel %vm164_vm8, %v1716_v43, %v161_v55  ;;  %181 = vadd.xlane.f32.xlu2 %v180_v56  ;;  %v241_v43 = vperm.slane %v240_v42, 0  ;;  %v2074_v42 = vld [vmem:[%s2370_s5 + $0x30] sm:$0xff] }
 0x1a6   :  { %v167_v58 = vmul.f32 %v165_v57, %v133_v29 }
 0x1a8   :  { %v172_v59 = vmul.f32 %v1699_v46, %v167_v58  ;;  %v2021_v58 = vld [vmem:[%s2370_s5 + $0x8] sm:$0xff] }
 0x1aa   :  { %v1967_v60 = vadd.f32 %v1700_v50, %v172_v59 }
 0x1ac   :  { %v183_v61 = vsel %vm116_vm1, %v1967_v60, 0.0 }
 0x1ad   :  { %184 = vadd.xlane.f32.xlu2 %v183_v61 }
 0x218   :  { %v182_v62 = vpop.xlane.xlu2 %181 }
 0x219   :  { %v186_v63 = vmul.f32 %v182_v62, %v1949_v21 }
 0x21b   :  { %v188_v0 = vsub.f32 %v1963_v54, %v186_v63 }
 0x21d   :  { %v190_v1 = vmul.f32 %v188_v0, %v188_v0 }
 0x21f   :  { %v192_v2 = vsel %vm116_vm1, %v190_v1, 0.0 }
 0x220   :  { %193 = vadd.xlane.f32.xlu0 %v192_v2  ;;  %v185_v3 = vpop.xlane.xlu2 %184 }
 0x221   :  { %v187_v4 = vmul.f32 %v185_v3, %v1949_v21 }
 0x223   :  { %v189_v5 = vsub.f32 %v1967_v60, %v187_v4 }
 0x225   :  { %v191_v6 = vmul.f32 %v189_v5, %v189_v5 }
 0x227   :  { %v195_v7 = vsel %vm116_vm1, %v191_v6, 0.0 }
 0x228   :  { %196 = vadd.xlane.f32.xlu1 %v195_v7 }
 0x293   :  { %v194_v9 = vpop.xlane.xlu0 %193 }
 0x294   :  { %v198_v11 = vmul.f32 %v194_v9, %v1949_v21 }
 0x296   :  { %v200_v12 = vadd.f32 1e-05, %v198_v11 }
 0x298   :  { %1717 = vrsqrt.f32 %v200_v12  ;;  %vm208_vm10 = vweird.f32 %v200_v12 }
 0x29b   :  { %v197_v13 = vpop.xlane.xlu1 %196 }
 0x29c   :  { %v199_v14 = vmul.f32 %v197_v13, %v1949_v21 }
 0x29e   :  { %v1718_v15 = vpop.eup %1717  ;;  %v201_v16 = vadd.f32 1e-05, %v199_v14 }
 0x29f   :  { %v203_v17 = vmul.f32 %v1718_v15, %v200_v12  ;;  %vm209_vm9 = vweird.f32 %v1718_v15 }
 0x2a0   :  { %1719 = vrsqrt.f32 %v201_v16  ;;  %vm210_vm11 = vmor %vm208_vm10, %vm209_vm9  ;;  %vm218_vm13 = vweird.f32 %v201_v16  ;;  %vm766_vm9 = vcmask 523264  }
 0x2a1   :  { %v204_v18 = vmul.f32 %v1718_v15, %v203_v17 }
 0x2a3   :  { %v205_v19 = vmul.f32 0.5, %v204_v18 }
 0x2a5   :  { %v206_v20 = vsub.f32 1.5, %v205_v19 }
 0x2a6   :  { %v1720_v22 = vpop.eup %1719 }
 0x2a7   :  { %v207_v23 = vmul.f32 %v1718_v15, %v206_v20  ;;  %v213_v24 = vmul.f32 %v1720_v22, %v201_v16  ;;  %vm219_vm12 = vweird.f32 %v1720_v22 }
 0x2a8   :  { %vm220_vm14 = vmor %vm218_vm13, %vm219_vm12 }
 0x2a9   :  { %v214_v25 = vmul.f32 %v1720_v22, %v213_v24  ;;  %v211_v26 = vsel %vm210_vm11, %v1718_v15, %v207_v23 }
 0x2aa   :  { %v222_v29 = vmul.f32 %v211_v26, %v188_v0 }
 0x2ab   :  { %v215_v27 = vmul.f32 0.5, %v214_v25  ;;  %v2044_v25 = vld [vmem:[%s2370_s5 + $0x20] sm:$0xff] }
 0x2ac   :  { %v227_v34 = vmul.f32 %v1701_v30, %v222_v29 }
 0x2ad   :  { %v216_v28 = vsub.f32 1.5, %v215_v27 }
 0x2ae   :  { %v232_v37 = vadd.f32 %v1702_v35, %v227_v34  ;;  %v2060_v34 = vld [vmem:[%s2370_s5 + $0x28] sm:$0xff] }
 0x2af   :  { %v217_v31 = vmul.f32 %v1720_v22, %v216_v28 }
 0x2b1   :  { %v221_v32 = vsel %vm220_vm14, %v1720_v22, %v217_v31 }
 0x2b2   :  { %v223_v33 = vmul.f32 %v221_v32, %v189_v5 }
 0x2b4   :  { %v228_v36 = vmul.f32 %v1701_v30, %v223_v33  ;;  %v2053_v30 = vld [vmem:[%s2370_s5 + $0x10] sm:$0xff] }
 0x2b6   :  { %v233_v38 = vadd.f32 %v1702_v35, %v228_v36  ;;  %v2065_v36 = vld [vmem:[%s2370_s5 + $0x18] sm:$0xff] }
 0x2b8   :  { %v238_v39 = vpack.c.bf16 %v233_v38, %v232_v37 }
 0x2ba   :  { %1495 = vmatmul.msk.bf16.vlgmr.msra.gmra.mxu1 %vm116_vm1, %v238_v39 }
 0x337   :  { %v266_v41 = vpop.f32.mrf.mxu1 }
 0x338   :  { %v267_v45 = vadd.f32 %v266_v41, %v241_v43 }
 0x33f   :  { %v268_v44 = vpop.f32.mrf.mxu1 }
 0x340   :  { %v269_v46 = vadd.f32 %v268_v44, %v241_v43 }
 0x342   :  { %v1995_v47 = vpack.c.bf16 %v269_v46, %v267_v45  ;;  %v2081_v46 = vld [vmem:[%s2370_s5 + $0x38] sm:$0xff]  ;;  %s2384_s5 = smov 48  }
 0x344   :  { %280 = vrot.lane.b32.xlu2 %v1995_v47, %s1810_s22 }
 0x34c   :  { %350 = vrot.lane.b32.xlu2 %v1995_v47, %s1811_s23 }
 0x354   :  { %422 = vrot.lane.b32.xlu2 %v1995_v47, %s1812_s24 }
 0x35c   :  { %492 = vrot.lane.b32.xlu2 %v1995_v47, %s1813_s2 }
 0x364   :  { %490 = vrot.lane.b32.xlu2 %v1995_v47, %s1814_s25 }
 0x39e   :  { %v281_v48 = vpop.permute.xlu2 %280 }
 0x39f   :  { %v287_v49 = vsel %vm282_vm15, %v281_v48, 0 }
 0x3a0   :  { %296 = vmatpush.bf16.xpose.msra.mxu2 %v287_v49 }
 0x3a6   :  { %v351_v50 = vpop.permute.xlu2 %350 }
 0x3a7   :  { %1496 = vmatmul.msk.bf16.vlgmr.msra.gmra.mxu2 %vm282_vm15, %v1995_v47 }
 0x3ae   :  { %v423_v51 = vpop.permute.xlu2 %422 }
 0x3af   :  { %v428_v52 = vsel %vm282_vm15, %v423_v51, 0 }
 0x3b0   :  { %437 = vmatpush.bf16.xpose.msrb.mxu2 %v428_v52 }
 0x3b6   :  { %v493_v18 = vpop.permute.xlu2 %492 }
 0x3b7   :  { %v498_v22 = vsel %vm282_vm15, %v493_v18, 0 }
 0x3be   :  { %v491_v23 = vpop.permute.xlu2 %490 }
 0x42a   :  { %v298_v55 = vpop.f32.mrf.mxu2 }
 0x42b   :  { %v299_v56 = vadd.f32 %v298_v55, %v2014_v53 }
 0x42d   :  { %v304_v57 = vsel %vm303_vm0, %v299_v56, -inf }
 0x42e   :  { %305 = vmax.xlane.f32.xlu0 %v304_v57 }
 0x432   :  { %v300_v59 = vpop.f32.mrf.mxu2 }
 0x433   :  { %v301_v61 = vadd.f32 %v300_v59, %v2021_v58 }
 0x435   :  { %v307_v62 = vsel %vm303_vm0, %v301_v61, -inf }
 0x436   :  { %308 = vmax.xlane.f32.xlu1 %v307_v62 }
 0x4a1   :  { %v306_v63 = vpop.xlane.xlu0 %305 }
 0x4a2   :  { %v310_v0 = vsub.f32 %v299_v56, %v306_v63 }
 0x4a4   :  { %v312_v1 = vmul.f32 1.442695, %v310_v0 }
 0x4a6   :  { %1721 = vpow2.f32 %v312_v1 }
 0x4a9   :  { %v309_v2 = vpop.xlane.xlu1 %308 }
 0x4aa   :  { %v311_v3 = vsub.f32 %v301_v61, %v309_v2 }
 0x4ac   :  { %v1722_v4 = vpop.eup %1721  ;;  %v314_v5 = vmul.f32 1.442695, %v311_v3 }
 0x4ad   :  { %v316_v6 = vsel %vm303_vm0, %v1722_v4, 0.0 }
 0x4ae   :  { %1723 = vpow2.f32 %v314_v5  ;;  %317 = vadd.xlane.f32.xlu0 %v316_v6 }
 0x4b4   :  { %v1724_v7 = vpop.eup %1723 }
 0x4b5   :  { %v319_v8 = vsel %vm303_vm0, %v1724_v7, 0.0 }
 0x4b6   :  { %320 = vadd.xlane.f32.xlu1 %v319_v8 }
 0x4c2   :  { %327 = vrot.lane.b32.xlu0 %v1995_v47, %s1815_s4 }
 0x4ca   :  { %420 = vrot.lane.b32.xlu0 %v1995_v47, %s1816_s29 }
 0x4cf   :  { %352 = vrot.lane.b32.xlu1 %v1995_v47, %s1817_s30 }
 0x521   :  { %v318_v9 = vpop.xlane.xlu0 %317 }
 0x529   :  { %v321_v10 = vpop.xlane.xlu1 %320 }
 0x52a   :  { %1725 = vrcp.f32 %v321_v10 }
 0x52b   :  { %1727 = vrcp.f32 %v318_v9 }
 0x530   :  { %v1726_v11 = vpop.eup %1725 }
 0x531   :  { %v1728_v12 = vpop.eup %1727  ;;  %v325_v13 = vmul.f32 %v1726_v11, %v1724_v7 }
 0x532   :  { %v324_v15 = vmul.f32 %v1728_v12, %v1722_v4 }
 0x534   :  { %v328_v14 = vpop.permute.xlu0 %327  ;;  %v326_v16 = vpack.c.bf16 %v325_v13, %v324_v15 }
 0x535   :  { %340 = vmatpush.bf16.msra.mxu3 %v328_v14 }
 0x538   :  { %1497 = vmatmul.msk.bf16.vlgmr.msra.gmra.mxu3 %vm303_vm0, %v326_v16 }
 0x53c   :  { %v421_v17 = vpop.permute.xlu0 %420 }
 0x53d   :  { %1504 = vmatmul.msk.bf16.vlgmr.msrb.gmra.mxu2 %vm282_vm15, %v421_v17 }
 0x541   :  { %v353_v19 = vpop.permute.xlu1 %352 }
 0x542   :  { %v358_v20 = vsel %vm282_vm15, %v353_v19, 0 }
 0x543   :  { %367 = vmatpush.bf16.xpose.msrb.mxu3 %v358_v20 }
 0x54a   :  { %1500 = vmatmul.msk.bf16.vlgmr.msrb.gmra.mxu3 %vm282_vm15, %v351_v50 }
 0x54b   :  { %507 = vmatpush.bf16.xpose.msra.mxu3 %v498_v22 }
 0x55a   :  { %1508 = vmatmul.msk.bf16.vlgmr.msra.gmra.mxu3 %vm282_vm15, %v491_v23 }
 0x5bb   :  { %v2039_v24 = vpop.f32.mrf.mxu3 }
 0x5c0   :  { %v439_v26 = vpop.f32.mrf.mxu2 }
 0x5c1   :  { %v440_v27 = vadd.f32 %v2044_v25, %v439_v26 }
 0x5c3   :  { %v444_v28 = vsel %vm303_vm0, %v440_v27, -inf  ;;  %v2048_v29 = vpop.f32.mrf.mxu3 }
 0x5c4   :  { %445 = vmax.xlane.f32.xlu2 %v444_v28 }
 0x5c8   :  { %v441_v35 = vpop.f32.mrf.mxu2 }
 0x5c9   :  { %v442_v37 = vadd.f32 %v2060_v34, %v441_v35 }
 0x5cb   :  { %v447_v41 = vsel %vm303_vm0, %v442_v37, -inf }
 0x5cd   :  { %v369_v31 = vpop.f32.mrf.mxu3 }
 0x5ce   :  { %v370_v32 = vadd.f32 %v2053_v30, %v369_v31 }
 0x5d0   :  { %v374_v33 = vsel %vm303_vm0, %v370_v32, -inf }
 0x5d1   :  { %375 = vmax.xlane.f32.xlu1 %v374_v33 }
 0x5d5   :  { %v371_v38 = vpop.f32.mrf.mxu3 }
 0x5d6   :  { %v372_v39 = vadd.f32 %v2065_v36, %v371_v38 }
 0x5d8   :  { %v377_v40 = vsel %vm303_vm0, %v372_v39, -inf }
 0x5d9   :  { %378 = vmax.xlane.f32.xlu0 %v377_v40  ;;  %448 = vmax.xlane.f32.xlu1 %v447_v41 }
 0x5dd   :  { %v509_v43 = vpop.f32.mrf.mxu3 }
 0x5de   :  { %v510_v44 = vadd.f32 %v2074_v42, %v509_v43 }
 0x5e0   :  { %v514_v45 = vsel %vm303_vm0, %v510_v44, -inf }
 0x5e1   :  { %515 = vmax.xlane.f32.xlu0 %v514_v45 }
 0x5e5   :  { %v511_v48 = vpop.f32.mrf.mxu3 }
 0x5e6   :  { %v512_v49 = vadd.f32 %v2081_v46, %v511_v48 }
 0x5e8   :  { %v517_v50 = vsel %vm303_vm0, %v512_v49, -inf }
 0x5e9   :  { %518 = vmax.xlane.f32.xlu2 %v517_v50 }
 0x601   :  { %397 = vrot.lane.b32.xlu2 %v1995_v47, %s2389_s27 }
 0x637   :  { %v446_v51 = vpop.xlane.xlu2 %445 }
 0x638   :  { %v450_v52 = vsub.f32 %v440_v27, %v446_v51 }
 0x63a   :  { %v452_v55 = vmul.f32 1.442695, %v450_v52 }
 0x63c   :  { %1729 = vpow2.f32 %v452_v55 }
 0x642   :  { %v2087_v56 = vpop.eup %1729 }
 0x643   :  { %v456_v57 = vsel %vm303_vm0, %v2087_v56, 0.0 }
 0x644   :  { %v376_v59 = vpop.xlane.xlu1 %375  ;;  %457 = vadd.xlane.f32.xlu1 %v456_v57 }
 0x645   :  { %v380_v61 = vsub.f32 %v370_v32, %v376_v59 }
 0x647   :  { %v382_v62 = vmul.f32 1.442695, %v380_v61 }
 0x649   :  { %1731 = vpow2.f32 %v382_v62 }
 0x64c   :  { %v379_v63 = vpop.xlane.xlu0 %378  ;;  %v449_v0 = vpop.xlane.xlu1 %448 }
 0x64d   :  { %v451_v1 = vsub.f32 %v442_v37, %v449_v0  ;;  %v381_v4 = vsub.f32 %v372_v39, %v379_v63 }
 0x64f   :  { %v1732_v2 = vpop.eup %1731  ;;  %v454_v3 = vmul.f32 1.442695, %v451_v1  ;;  %v384_v6 = vmul.f32 1.442695, %v381_v4  ;;  %v1636_v4 = vld [vmem:[%s2371_s10] sm:$0xff] }
 0x650   :  { %v386_v5 = vsel %vm303_vm0, %v1732_v2, 0.0 }
 0x651   :  { %387 = vadd.xlane.f32.xlu1 %v386_v5  ;;  %1733 = vpow2.f32 %v454_v3  ;;  %v1637_v3 = vld [vmem:[%s2371_s10 + $0x8] sm:$0xff] }
 0x652   :  { %1735 = vpow2.f32 %v384_v6  ;;  %612 = vmatpush.bf16.msra.mxu2 %v1637_v3 }
 0x654   :  { %v516_v7 = vpop.xlane.xlu0 %515 }
 0x655   :  { %v520_v8 = vsub.f32 %v510_v44, %v516_v7 }
 0x656   :  { %613 = vmatpush.bf16.msra.mxu2 %v1636_v4 }
 0x657   :  { %v522_v9 = vmul.f32 1.442695, %v520_v8  ;;  %v1734_v10 = vpop.eup %1733 }
 0x658   :  { %v459_v11 = vsel %vm303_vm0, %v1734_v10, 0.0  ;;  %v1736_v14 = vpop.eup %1735 }
 0x659   :  { %1737 = vpow2.f32 %v522_v9  ;;  %460 = vadd.xlane.f32.xlu0 %v459_v11  ;;  %v389_v18 = vsel %vm303_vm0, %v1736_v14, 0.0 }
 0x65c   :  { %v519_v12 = vpop.xlane.xlu2 %518 }
 0x65d   :  { %v521_v13 = vsub.f32 %v512_v49, %v519_v12 }
 0x65f   :  { %v1738_v15 = vpop.eup %1737  ;;  %v524_v16 = vmul.f32 1.442695, %v521_v13 }
 0x660   :  { %v526_v17 = vsel %vm303_vm0, %v1738_v15, 0.0 }
 0x661   :  { %1739 = vpow2.f32 %v524_v16  ;;  %527 = vadd.xlane.f32.xlu1 %v526_v17  ;;  %390 = vadd.xlane.f32.xlu0 %v389_v18 }
 0x664   :  { %v398_v19 = vpop.permute.xlu2 %397 }
 0x665   :  { %410 = vmatpush.bf16.msrb.mxu1 %v398_v19 }
 0x667   :  { %v1740_v20 = vpop.eup %1739 }
 0x668   :  { %v529_v22 = vsel %vm303_vm0, %v1740_v20, 0.0 }
 0x669   :  { %530 = vadd.xlane.f32.xlu0 %v529_v22 }
 0x67a   :  { %467 = vrot.lane.b32.xlu1 %v1995_v47, %s2384_s5 }
 0x67d   :  { %537 = vrot.lane.b32.xlu0 %v1995_v47, %s2385_s28 }
 0x6b7   :  { %v458_v23 = vpop.xlane.xlu1 %457 }
 0x6c4   :  { %v388_v27 = vpop.xlane.xlu1 %387 }
 0x6c5   :  { %1741 = vrcp.f32 %v388_v27 }
 0x6cb   :  { %v1742_v31 = vpop.eup %1741 }
 0x6cc   :  { %v461_v26 = vpop.xlane.xlu0 %460  ;;  %v394_v33 = vmul.f32 %v1742_v31, %v1732_v2 }
 0x6d4   :  { %v391_v28 = vpop.xlane.xlu0 %390  ;;  %v528_v39 = vpop.xlane.xlu1 %527 }
 0x6d5   :  { %1743 = vrcp.f32 %v391_v28 }
 0x6d6   :  { %1745 = vrcp.f32 %v461_v26 }
 0x6d7   :  { %1747 = vrcp.f32 %v458_v23 }
 0x6db   :  { %v1744_v32 = vpop.eup %1743 }
 0x6dc   :  { %v395_v35 = vmul.f32 %v1744_v32, %v1736_v14  ;;  %v531_v38 = vpop.xlane.xlu0 %530  ;;  %v1746_v40 = vpop.eup %1745 }
 0x6dd   :  { %1749 = vrcp.f32 %v531_v38  ;;  %v1748_v47 = vpop.eup %1747  ;;  %v465_v41 = vmul.f32 %v1746_v40, %v1734_v10 }
 0x6de   :  { %v396_v37 = vpack.c.bf16 %v395_v35, %v394_v33  ;;  %1751 = vrcp.f32 %v528_v39  ;;  %v464_v44 = vmul.f32 %v1748_v47, %v2087_v56 }
 0x6e0   :  { %1501 = vmatmul.msk.bf16.vlgmr.msrb.gmra.mxu1 %vm303_vm0, %v396_v37  ;;  %v466_v50 = vpack.c.bf16 %v465_v41, %v464_v44 }
 0x6e3   :  { %v1750_v43 = vpop.eup %1749 }
 0x6e4   :  { %v1752_v48 = vpop.eup %1751  ;;  %v535_v49 = vmul.f32 %v1750_v43, %v1740_v20 }
 0x6e5   :  { %v534_v51 = vmul.f32 %v1752_v48, %v1738_v15 }
 0x6e7   :  { %v536_v55 = vpack.c.bf16 %v535_v49, %v534_v51  ;;  %v1638_v51 = vld [vmem:[%s2375_s14] sm:$0xff] }
 0x6ec   :  { %v468_v45 = vpop.permute.xlu1 %467 }
 0x6ed   :  { %480 = vmatpush.bf16.msrb.mxu0 %v468_v45  ;;  %v1639_v45 = vld [vmem:[%s2375_s14 + $0x8] sm:$0xff] }
 0x6ef   :  { %v538_v52 = vpop.permute.xlu0 %537 }
 0x6f0   :  { %1505 = vmatmul.msk.bf16.vlgmr.msrb.gmra.mxu0 %vm303_vm0, %v466_v50  ;;  %550 = vmatpush.bf16.msra.mxu1 %v538_v52 }
 0x6f1   :  { %707 = vmatpush.bf16.msra.mxu0 %v1639_v45 }
 0x6f3   :  { %1509 = vmatmul.msk.bf16.vlgmr.msra.gmra.mxu1 %vm303_vm0, %v536_v55 }
 0x6f5   :  { %708 = vmatpush.bf16.msra.mxu0 %v1638_v51 }
 0x75d   :  { %v412_v57 = vpop.f32.mrf.mxu1 }
 0x765   :  { %v414_v61 = vpop.f32.mrf.mxu1 }
 0x766   :  { %v1674_v0 = vpack.i.bf16 %v414_v61, %v412_v57 }
 0x76d   :  { %v482_v59 = vpop.f32.mrf.mxu0 }
 0x770   :  { %v552_v56 = vpop.f32.mrf.mxu1 }
 0x775   :  { %v484_v62 = vpop.f32.mrf.mxu0 }
 0x776   :  { %v1669_v63 = vpack.i.bf16 %v484_v62, %v482_v59 }
 0x778   :  { %1670 = vrot.lane.b32.xlu2 %v1669_v63, %s2387_s1  ;;  %v554_v1 = vpop.f32.mrf.mxu1 }
 0x779   :  { %v1679_v2 = vpack.i.bf16 %v554_v1, %v552_v56 }
 0x780   :  { %1675 = vrot.lane.b32.xlu2 %v1674_v0, %s2388_s21 }
 0x788   :  { %1680 = vrot.lane.b32.xlu2 %v1679_v2, %s2386_s0 }
 0x7d2   :  { %v1671_v5 = vpop.permute.xlu2 %1670 }
 0x7d3   :  { %v1673_v11 = vunpack.i.h.bf16 %v1671_v5  ;;  %v1672_v12 = vunpack.i.l.bf16 %v1671_v5 }
 0x7da   :  { %v1676_v6 = vpop.permute.xlu2 %1675 }
 0x7db   :  { %v1678_v7 = vunpack.i.h.bf16 %v1676_v6  ;;  %v1677_v8 = vunpack.i.l.bf16 %v1676_v6 }
 0x7dd   :  { %v582_v9 = vsel %vm282_vm15, %v2048_v29, %v1678_v7  ;;  %v581_v10 = vsel %vm282_vm15, %v2039_v24, %v1677_v8  ;;  %v275_v24 = vld [vmem:[%s2372_s11] sm:$0x1] }
 0x7de   :  { %v583_v16 = vsel %vm303_vm0, %v581_v10, %v1672_v12  ;;  %v584_v17 = vsel %vm303_vm0, %v582_v9, %v1673_v11  ;;  %v589_v29 = vunpack.c.l.bf16 %v275_v24  ;;  %v1705_v7 = vld [vmem:[%s2373_s12] ss:$0 sm:$0xff] }
 0x7df   :  { %v1706_v11 = vld [vmem:[%s2374_s13] ss:$0 sm:$0xff] }
 0x7e0   :  { %v590_v22 = vperm.slane %v589_v29, 0  ;;  %v1641_v29 = vld [vmem:[%s2376_s16 + $0x8] sm:$0xff] }
 0x7e2   :  { %v1681_v13 = vpop.permute.xlu2 %1680 }
 0x7e3   :  { %v1683_v14 = vunpack.i.h.bf16 %v1681_v13  ;;  %v1682_v15 = vunpack.i.l.bf16 %v1681_v13 }
 0x7e5   :  { %v586_v18 = vsel %vm585_vm2, %v583_v16, %v1682_v15  ;;  %v587_v19 = vsel %vm585_vm2, %v584_v17, %v1683_v14 }
 0x7e6   :  { %v588_v20 = vpack.c.bf16 %v587_v19, %v586_v18  ;;  %v1643_v18 = vld [vmem:[%s2376_s16 + $0x18] sm:$0xff]  ;;  %v683_v19 = vld [vmem:[%s2377_s15] sm:$0x1] }
 0x7e7   :  { %774 = vmatpush.bf16.msrb.mxu3 %v1643_v18  ;;  %v684_v24 = vunpack.c.l.bf16 %v683_v19  ;;  %v1644_v18 = vld [vmem:[%s2368_s8 + $0x10] sm:$0xff] }
 0x7e8   :  { %1518 = vmatmul.msk.bf16.vlgmr.msra.gmra.mxu2 %vm116_vm1, %v588_v20  ;;  %v1642_v20 = vld [vmem:[%s2376_s16 + $0x10] sm:$0xff] }
 0x7eb   :  { %775 = vmatpush.bf16.msrb.mxu3 %v1642_v20 }
 0x7ef   :  { %776 = vmatpush.bf16.msrb.mxu3 %v1641_v29 }
 0x86b   :  { %v615_v23 = vpop.f32.mrf.mxu2 }
 0x86c   :  { %v616_v26 = vadd.f32 %v615_v23, %v590_v22 }
 0x86e   :  { %v2126_v27 = vadd.f32 %v616_v26, %v1963_v54  ;;  %v1640_v26 = vld [vmem:[%s2376_s16] sm:$0xff] }
 0x86f   :  { %777 = vmatpush.bf16.msrb.mxu3 %v1640_v26 }
 0x870   :  { %v624_v28 = vsel %vm116_vm1, %v2126_v27, 0.0 }
 0x871   :  { %625 = vadd.xlane.f32.xlu0 %v624_v28 }
 0x873   :  { %v617_v31 = vpop.f32.mrf.mxu2 }
 0x874   :  { %v618_v32 = vadd.f32 %v617_v31, %v590_v22  ;;  %v685_v22 = vperm.slane %v684_v24, 0 }
 0x876   :  { %v2131_v33 = vadd.f32 %v618_v32, %v1967_v60 }
 0x878   :  { %v627_v35 = vsel %vm116_vm1, %v2131_v33, 0.0 }
 0x879   :  { %628 = vadd.xlane.f32.xlu1 %v627_v35 }
 0x8e4   :  { %v626_v37 = vpop.xlane.xlu0 %625 }
 0x8e5   :  { %v630_v38 = vmul.f32 %v626_v37, %v1949_v21 }
 0x8e7   :  { %v632_v39 = vsub.f32 %v2126_v27, %v630_v38 }
 0x8e9   :  { %v634_v54 = vmul.f32 %v632_v39, %v632_v39 }
 0x8eb   :  { %v636_v40 = vsel %vm116_vm1, %v634_v54, 0.0 }
 0x8ec   :  { %v629_v47 = vpop.xlane.xlu1 %628  ;;  %637 = vadd.xlane.f32.xlu2 %v636_v40 }
 0x8ed   :  { %v631_v41 = vmul.f32 %v629_v47, %v1949_v21 }
 0x8ef   :  { %v633_v43 = vsub.f32 %v2131_v33, %v631_v41 }
 0x8f1   :  { %v635_v60 = vmul.f32 %v633_v43, %v633_v43 }
 0x8f3   :  { %v639_v44 = vsel %vm116_vm1, %v635_v60, 0.0 }
 0x8f4   :  { %640 = vadd.xlane.f32.xlu0 %v639_v44 }
 0x95f   :  { %v638_v48 = vpop.xlane.xlu2 %637 }
 0x960   :  { %v642_v49 = vmul.f32 %v638_v48, %v1949_v21 }
 0x962   :  { %v644_v50 = vadd.f32 1e-05, %v642_v49 }
 0x964   :  { %1753 = vrsqrt.f32 %v644_v50  ;;  %vm652_vm4 = vweird.f32 %v644_v50 }
 0x967   :  { %v641_v52 = vpop.xlane.xlu0 %640 }
 0x968   :  { %v643_v55 = vmul.f32 %v641_v52, %v1949_v21 }
 0x96a   :  { %v1754_v57 = vpop.eup %1753  ;;  %v645_v59 = vadd.f32 1e-05, %v643_v55 }
 0x96b   :  { %v647_v61 = vmul.f32 %v1754_v57, %v644_v50  ;;  %vm653_vm3 = vweird.f32 %v1754_v57 }
 0x96c   :  { %1755 = vrsqrt.f32 %v645_v59  ;;  %vm654_vm5 = vmor %vm652_vm4, %vm653_vm3  ;;  %vm662_vm7 = vweird.f32 %v645_v59 }
 0x96d   :  { %v648_v62 = vmul.f32 %v1754_v57, %v647_v61 }
 0x96f   :  { %v649_v63 = vmul.f32 0.5, %v648_v62 }
 0x971   :  { %v650_v56 = vsub.f32 1.5, %v649_v63 }
 0x972   :  { %v1756_v0 = vpop.eup %1755 }
 0x973   :  { %v651_v1 = vmul.f32 %v1754_v57, %v650_v56  ;;  %v657_v2 = vmul.f32 %v1756_v0, %v645_v59  ;;  %vm663_vm6 = vweird.f32 %v1756_v0  ;;  %v786_v59 = vld [vmem:[%s2378_s17] sm:$0x1] }
 0x974   :  { %vm664_vm8 = vmor %vm662_vm7, %vm663_vm6  ;;  %v787_v61 = vunpack.c.l.bf16 %v786_v59 }
 0x975   :  { %v658_v3 = vmul.f32 %v1756_v0, %v657_v2  ;;  %v655_v4 = vsel %vm654_vm5, %v1754_v57, %v651_v1 }
 0x976   :  { %v666_v8 = vmul.f32 %v655_v4, %v632_v39  ;;  %v788_v62 = vperm.slane %v787_v61, 0 }
 0x977   :  { %v659_v5 = vmul.f32 0.5, %v658_v3 }
 0x978   :  { %v671_v12 = vmul.f32 %v1705_v7, %v666_v8 }
 0x979   :  { %v660_v6 = vsub.f32 1.5, %v659_v5 }
 0x97a   :  { %v676_v15 = vadd.f32 %v1706_v11, %v671_v12 }
 0x97b   :  { %v661_v9 = vmul.f32 %v1756_v0, %v660_v6 }
 0x97d   :  { %v665_v10 = vsel %vm664_vm8, %v1756_v0, %v661_v9 }
 0x97e   :  { %v667_v13 = vmul.f32 %v665_v10, %v633_v43 }
 0x980   :  { %v672_v14 = vmul.f32 %v1705_v7, %v667_v13 }
 0x982   :  { %v677_v16 = vadd.f32 %v1706_v11, %v672_v14  ;;  %v1645_v14 = vld [vmem:[%s2368_s8 + $0x18] sm:$0xff] }
 0x983   :  { %880 = vmatpush.bf16.msrb.mxu1 %v1645_v14 }
 0x984   :  { %v682_v17 = vpack.c.bf16 %v677_v16, %v676_v15 }
 0x986   :  { %1527 = vmatmul.msk.bf16.vlgmr.msra.gmra.mxu0 %vm116_vm1, %v682_v17 }
 0x987   :  { %881 = vmatpush.bf16.msrb.mxu1 %v1644_v18 }
 0xa03   :  { %v710_v23 = vpop.f32.mrf.mxu0 }
 0xa04   :  { %v711_v28 = vadd.f32 %v710_v23, %v685_v22 }
 0xa06   :  { %v715_v31 = vmul.f32 %v711_v28, %v711_v28 }
 0xa08   :  { %v717_v32 = vmul.f32 %v715_v31, %v711_v28 }
 0xa0a   :  { %v719_v35 = vmul.f32 0.044715, %v717_v32 }
 0xa0b   :  { %v712_v37 = vpop.f32.mrf.mxu0 }
 0xa0c   :  { %v721_v38 = vadd.f32 %v719_v35, %v711_v28  ;;  %v713_v39 = vadd.f32 %v712_v37, %v685_v22 }
 0xa0e   :  { %v723_v54 = vmul.f32 0.7978846, %v721_v38  ;;  %v716_v40 = vmul.f32 %v713_v39, %v713_v39 }
 0xa10   :  { %v718_v47 = vmul.f32 %v716_v40, %v713_v39  ;;  %1757 = vtanh.f32 %v723_v54  ;;  %v1703_v40 = vld [vmem:[%s2366_s6 + $0x1] ss:$0 sm:$0xff]  ;;  %s2400_s6 = smov 56  }
 0xa12   :  { %v720_v41 = vmul.f32 0.044715, %v718_v47 }
 0xa14   :  { %v722_v43 = vadd.f32 %v720_v41, %v713_v39 }
 0xa16   :  { %v724_v60 = vmul.f32 0.7978846, %v722_v43  ;;  %v1758_v44 = vpop.eup %1757 }
 0xa17   :  { %v727_v45 = vadd.f32 1.0, %v1758_v44 }
 0xa18   :  { %1759 = vtanh.f32 %v724_v60  ;;  %v1704_v60 = vld [vmem:[%s2367_s7 + $0x1] ss:$0 sm:$0xff]  ;;  %s2401_s7 = smov 40  }
 0xa19   :  { %v729_v49 = vmul.f32 0.5, %v727_v45 }
 0xa1b   :  { %v731_v52 = vmul.f32 %v729_v49, %v711_v28 }
 0xa1e   :  { %v1760_v48 = vpop.eup %1759 }
 0xa1f   :  { %v728_v50 = vadd.f32 1.0, %v1760_v48 }
 0xa21   :  { %v730_v51 = vmul.f32 0.5, %v728_v50 }
 0xa23   :  { %v732_v55 = vmul.f32 %v730_v51, %v713_v39 }
 0xa25   :  { %v741_v57 = vpack.c.bf16 %v732_v55, %v731_v52  ;;  %v1551_v52 = vld [vmem:[%s2369_s9 + $0x1] sm:$0x1]  ;;  %s2402_s9 = smov 48  }
 0xa27   :  { %1544 = vmatmul.msk.bf16.vlgmr.msrb.gmra.mxu3 %vm766_vm9, %v741_v57  ;;  %v857_v57 = vunpack.c.l.bf16 %v1551_v52 }
 0xa29   :  { %v858_v59 = vperm.slane %v857_v57, 0 }
 0xaaa   :  { %v779_v63 = vpop.f32.mrf.mxu3 }
 0xaab   :  { %v784_v56 = vadd.f32 %v779_v63, %v2126_v27 }
 0xaad   :  { %v2176_v0 = vadd.f32 %v788_v62, %v784_v56 }
 0xaaf   :  { %v795_v1 = vsel %vm116_vm1, %v2176_v0, 0.0 }
 0xab0   :  { %796 = vadd.xlane.f32.xlu1 %v795_v1 }
 0xab2   :  { %v781_v2 = vpop.f32.mrf.mxu3 }
 0xab3   :  { %v785_v3 = vadd.f32 %v781_v2, %v2131_v33 }
 0xab5   :  { %v2181_v4 = vadd.f32 %v788_v62, %v785_v3 }
 0xab7   :  { %v798_v5 = vsel %vm116_vm1, %v2181_v4, 0.0 }
 0xab8   :  { %799 = vadd.xlane.f32.xlu2 %v798_v5 }
 0xb23   :  { %v797_v6 = vpop.xlane.xlu1 %796 }
 0xb24   :  { %v801_v7 = vmul.f32 %v797_v6, %v1949_v21 }
 0xb26   :  { %v803_v27 = vsub.f32 %v2176_v0, %v801_v7 }
 0xb28   :  { %v805_v8 = vmul.f32 %v803_v27, %v803_v27 }
 0xb2a   :  { %v807_v9 = vsel %vm116_vm1, %v805_v8, 0.0 }
 0xb2b   :  { %808 = vadd.xlane.f32.xlu0 %v807_v9  ;;  %v800_v10 = vpop.xlane.xlu2 %799 }
 0xb2c   :  { %v802_v11 = vmul.f32 %v800_v10, %v1949_v21 }
 0xb2e   :  { %v804_v33 = vsub.f32 %v2181_v4, %v802_v11 }
 0xb30   :  { %v806_v12 = vmul.f32 %v804_v33, %v804_v33 }
 0xb32   :  { %v810_v13 = vsel %vm116_vm1, %v806_v12, 0.0 }
 0xb33   :  { %811 = vadd.xlane.f32.xlu1 %v810_v13 }
 0xb9e   :  { %v809_v15 = vpop.xlane.xlu0 %808 }
 0xb9f   :  { %v813_v16 = vmul.f32 %v809_v15, %v1949_v21 }
 0xba1   :  { %v815_v17 = vadd.f32 1e-05, %v813_v16 }
 0xba3   :  { %1761 = vrsqrt.f32 %v815_v17  ;;  %vm823_vm11 = vweird.f32 %v815_v17 }
 0xba6   :  { %v812_v19 = vpop.xlane.xlu1 %811 }
 0xba7   :  { %v814_v20 = vmul.f32 %v812_v19, %v1949_v21 }
 0xba9   :  { %v1762_v24 = vpop.eup %1761  ;;  %v816_v29 = vadd.f32 1e-05, %v814_v20 }
 0xbaa   :  { %v818_v22 = vmul.f32 %v1762_v24, %v815_v17  ;;  %vm824_vm10 = vweird.f32 %v1762_v24 }
 0xbab   :  { %1763 = vrsqrt.f32 %v816_v29  ;;  %vm825_vm12 = vmor %vm823_vm11, %vm824_vm10  ;;  %vm833_vm14 = vweird.f32 %v816_v29  ;;  %vm1467_vm10 = vcmask 257024  }
 0xbac   :  { %v819_v23 = vmul.f32 %v1762_v24, %v818_v22 }
 0xbae   :  { %v820_v26 = vmul.f32 0.5, %v819_v23 }
 0xbb0   :  { %v821_v28 = vsub.f32 1.5, %v820_v26 }
 0xbb1   :  { %v1764_v31 = vpop.eup %1763 }
 0xbb2   :  { %v822_v32 = vmul.f32 %v1762_v24, %v821_v28  ;;  %v828_v35 = vmul.f32 %v1764_v31, %v816_v29  ;;  %vm834_vm13 = vweird.f32 %v1764_v31 }
 0xbb3   :  { %vm835_vm3 = vmor %vm833_vm14, %vm834_vm13 }
 0xbb4   :  { %v829_v37 = vmul.f32 %v1764_v31, %v828_v35  ;;  %v826_v38 = vsel %vm825_vm12, %v1762_v24, %v822_v32 }
 0xbb5   :  { %v837_v47 = vmul.f32 %v826_v38, %v803_v27 }
 0xbb6   :  { %v830_v39 = vmul.f32 0.5, %v829_v37 }
 0xbb7   :  { %v842_v44 = vmul.f32 %v1703_v40, %v837_v47 }
 0xbb8   :  { %v831_v54 = vsub.f32 1.5, %v830_v39 }
 0xbb9   :  { %v847_v49 = vadd.f32 %v1704_v60, %v842_v44 }
 0xbba   :  { %v832_v41 = vmul.f32 %v1764_v31, %v831_v54 }
 0xbbc   :  { %v836_v43 = vsel %vm835_vm3, %v1764_v31, %v832_v41 }
 0xbbd   :  { %v838_v45 = vmul.f32 %v836_v43, %v804_v33 }
 0xbbf   :  { %v843_v48 = vmul.f32 %v1703_v40, %v838_v45 }
 0xbc1   :  { %v848_v50 = vadd.f32 %v1704_v60, %v843_v48 }
 0xbc3   :  { %v854_v51 = vpack.c.bf16 %v848_v50, %v847_v49 }
 0xbc5   :  { %1560 = vmatmul.msk.bf16.vlgmr.msrb.gmra.mxu1 %vm116_vm1, %v854_v51 }
 0xc42   :  { %v883_v55 = vpop.f32.mrf.mxu1 }
 0xc43   :  { %v884_v62 = vadd.f32 %v883_v55, %v858_v59 }
 0xc4a   :  { %v885_v61 = vpop.f32.mrf.mxu1 }
 0xc4b   :  { %v886_v63 = vadd.f32 %v885_v61, %v858_v59 }
 0xc4d   :  { %v2209_v56 = vpack.c.bf16 %v886_v63, %v884_v62 }
 0xc4f   :  { %966 = vrot.lane.b32.xlu1 %v2209_v56, %s1811_s23  ;;  %968 = vrot.lane.b32.xlu0 %v2209_v56, %s1817_s30  ;;  %s2404_s23 = smov 16  }
 0xc50   :  { %899 = vrot.lane.b32.xlu2 %v2209_v56, %s1810_s22  ;;  %s2403_s22 = smov 8  }
 0xc57   :  { %1035 = vrot.lane.b32.xlu1 %v2209_v56, %s1816_s29  ;;  %1037 = vrot.lane.b32.xlu0 %v2209_v56, %s1812_s24  ;;  %s2405_s24 = smov 24  }
 0xc58   :  { %1106 = vrot.lane.b32.xlu2 %v2209_v56, %s1813_s2 }
 0xc5f   :  { %1104 = vrot.lane.b32.xlu0 %v2209_v56, %s1814_s25 }
 0xcaa   :  { %v900_v1 = vpop.permute.xlu2 %899 }
 0xcab   :  { %v905_v2 = vsel %vm282_vm15, %v900_v1, 0 }
 0xcac   :  { %914 = vmatpush.bf16.xpose.msrb.mxu2 %v905_v2 }
 0xcb2   :  { %v1107_v3 = vpop.permute.xlu2 %1106 }
 0xcb3   :  { %1566 = vmatmul.msk.bf16.vlgmr.msrb.gmra.mxu2 %vm282_vm15, %v2209_v56  ;;  %v1112_v7 = vsel %vm282_vm15, %v1107_v3, 0 }
 0xcc1   :  { %v969_v5 = vpop.permute.xlu0 %968  ;;  %v967_v27 = vpop.permute.xlu1 %966 }
 0xcc2   :  { %v974_v6 = vsel %vm282_vm15, %v969_v5, 0 }
 0xcc3   :  { %983 = vmatpush.bf16.xpose.msra.mxu3 %v974_v6 }
 0xcc9   :  { %v1038_v8 = vpop.permute.xlu0 %1037  ;;  %v1036_v10 = vpop.permute.xlu1 %1035 }
 0xcca   :  { %v1043_v9 = vsel %vm282_vm15, %v1038_v8, 0  ;;  %1570 = vmatmul.msk.bf16.vlgmr.msra.gmra.mxu3 %vm282_vm15, %v967_v27 }
 0xccb   :  { %1121 = vmatpush.bf16.xpose.msrb.mxu3 %v1112_v7  ;;  %1052 = vmatpush.bf16.xpose.msra.mxu2 %v1043_v9 }
 0xcd1   :  { %v1105_v11 = vpop.permute.xlu0 %1104 }
 0xcd2   :  { %1574 = vmatmul.msk.bf16.vlgmr.msra.gmra.mxu2 %vm282_vm15, %v1036_v10 }
 0xcda   :  { %1578 = vmatmul.msk.bf16.vlgmr.msrb.gmra.mxu3 %vm282_vm15, %v1105_v11 }
 0xd36   :  { %v916_v33 = vpop.f32.mrf.mxu2 }
 0xd37   :  { %v917_v12 = vadd.f32 %v916_v33, %v2014_v53 }
 0xd39   :  { %v921_v13 = vsel %vm303_vm0, %v917_v12, -inf }
 0xd3a   :  { %922 = vmax.xlane.f32.xlu2 %v921_v13 }
 0xd3e   :  { %v918_v14 = vpop.f32.mrf.mxu2 }
 0xd3f   :  { %v919_v15 = vadd.f32 %v918_v14, %v2021_v58 }
 0xd41   :  { %v924_v16 = vsel %vm303_vm0, %v919_v15, -inf }
 0xd42   :  { %925 = vmax.xlane.f32.xlu1 %v924_v16 }
 0xd4d   :  { %v985_v17 = vpop.f32.mrf.mxu3 }
 0xd4e   :  { %v986_v18 = vadd.f32 %v2053_v30, %v985_v17 }
 0xd50   :  { %v990_v19 = vsel %vm303_vm0, %v986_v18, -inf }
 0xd51   :  { %991 = vmax.xlane.f32.xlu0 %v990_v19 }
 0xd55   :  { %v987_v20 = vpop.f32.mrf.mxu3  ;;  %v1054_v24 = vpop.f32.mrf.mxu2 }
 0xd56   :  { %v988_v29 = vadd.f32 %v2065_v36, %v987_v20  ;;  %v1055_v53 = vadd.f32 %v2044_v25, %v1054_v24 }
 0xd58   :  { %v1059_v22 = vsel %vm303_vm0, %v1055_v53, -inf  ;;  %v993_v23 = vsel %vm303_vm0, %v988_v29, -inf }
 0xd59   :  { %1060 = vmax.xlane.f32.xlu1 %v1059_v22  ;;  %994 = vmax.xlane.f32.xlu2 %v993_v23 }
 0xd5d   :  { %v1056_v58 = vpop.f32.mrf.mxu2  ;;  %v1123_v26 = vpop.f32.mrf.mxu3 }
 0xd5e   :  { %v1057_v28 = vadd.f32 %v2060_v34, %v1056_v58  ;;  %v1124_v30 = vadd.f32 %v2074_v42, %v1123_v26 }
 0xd60   :  { %v1062_v31 = vsel %vm303_vm0, %v1057_v28, -inf  ;;  %v1128_v32 = vsel %vm303_vm0, %v1124_v30, -inf }
 0xd61   :  { %1063 = vmax.xlane.f32.xlu0 %v1062_v31  ;;  %1129 = vmax.xlane.f32.xlu2 %v1128_v32 }
 0xd65   :  { %v1125_v36 = vpop.f32.mrf.mxu3 }
 0xd66   :  { %v1126_v25 = vadd.f32 %v2081_v46, %v1125_v36 }
 0xd68   :  { %v1131_v35 = vsel %vm303_vm0, %v1126_v25, -inf }
 0xd69   :  { %1132 = vmax.xlane.f32.xlu1 %v1131_v35 }
 0xdad   :  { %v923_v37 = vpop.xlane.xlu2 %922 }
 0xdae   :  { %v927_v38 = vsub.f32 %v917_v12, %v923_v37 }
 0xdb0   :  { %v929_v39 = vmul.f32 1.442695, %v927_v38 }
 0xdb2   :  { %1765 = vpow2.f32 %v929_v39 }
 0xdb5   :  { %v926_v54 = vpop.xlane.xlu1 %925 }
 0xdb6   :  { %v928_v34 = vsub.f32 %v919_v15, %v926_v54 }
 0xdb8   :  { %v1766_v40 = vpop.eup %1765  ;;  %v931_v42 = vmul.f32 1.442695, %v928_v34 }
 0xdb9   :  { %v933_v47 = vsel %vm303_vm0, %v1766_v40, 0.0 }
 0xdba   :  { %1767 = vpow2.f32 %v931_v42  ;;  %934 = vadd.xlane.f32.xlu0 %v933_v47 }
 0xdc0   :  { %v1768_v41 = vpop.eup %1767 }
 0xdc1   :  { %v936_v43 = vsel %vm303_vm0, %v1768_v41, 0.0 }
 0xdc2   :  { %937 = vadd.xlane.f32.xlu2 %v936_v43 }
 0xdc4   :  { %v992_v46 = vpop.xlane.xlu0 %991 }
 0xdc5   :  { %v996_v60 = vsub.f32 %v986_v18, %v992_v46 }
 0xdc7   :  { %v998_v44 = vmul.f32 1.442695, %v996_v60 }
 0xdc9   :  { %1769 = vpow2.f32 %v998_v44 }
 0xdcc   :  { %v995_v45 = vpop.xlane.xlu2 %994  ;;  %v1061_v48 = vpop.xlane.xlu1 %1060 }
 0xdcd   :  { %v997_v49 = vsub.f32 %v988_v29, %v995_v45  ;;  %v1065_v52 = vsub.f32 %v1055_v53, %v1061_v48 }
 0xdcf   :  { %v1770_v50 = vpop.eup %1769  ;;  %v1000_v51 = vmul.f32 1.442695, %v997_v49  ;;  %v1067_v57 = vmul.f32 1.442695, %v1065_v52 }
 0xdd0   :  { %v1002_v55 = vsel %vm303_vm0, %v1770_v50, 0.0 }
 0xdd1   :  { %1003 = vadd.xlane.f32.xlu1 %v1002_v55  ;;  %1771 = vpow2.f32 %v1000_v51 }
 0xdd2   :  { %1773 = vpow2.f32 %v1067_v57 }
 0xdd4   :  { %v1130_v59 = vpop.xlane.xlu2 %1129  ;;  %v1064_v2 = vpop.xlane.xlu0 %1063 }
 0xdd5   :  { %v1134_v62 = vsub.f32 %v1124_v30, %v1130_v59  ;;  %v1066_v5 = vsub.f32 %v1057_v28, %v1064_v2 }
 0xdd7   :  { %v1772_v61 = vpop.eup %1771  ;;  %v1136_v1 = vmul.f32 1.442695, %v1134_v62  ;;  %v1069_v7 = vmul.f32 1.442695, %v1066_v5  ;;  %v1646_v62 = vld [vmem:[%s2371_s10 + $0x10] sm:$0xff] }
 0xdd8   :  { %v1005_v63 = vsel %vm303_vm0, %v1772_v61, 0.0  ;;  %v1774_v3 = vpop.eup %1773 }
 0xdd9   :  { %1006 = vadd.xlane.f32.xlu0 %v1005_v63  ;;  %1775 = vpow2.f32 %v1136_v1  ;;  %v1071_v6 = vsel %vm303_vm0, %v1774_v3, 0.0 }
 0xdda   :  { %944 = vrot.lane.b32.xlu2 %v2209_v56, %s1815_s4  ;;  %1777 = vpow2.f32 %v1069_v7 }
 0xddc   :  { %v1133_v10 = vpop.xlane.xlu1 %1132 }
 0xddd   :  { %v1135_v11 = vsub.f32 %v1126_v25, %v1133_v10 }
 0xddf   :  { %v1776_v27 = vpop.eup %1775  ;;  %v1138_v12 = vmul.f32 1.442695, %v1135_v11 }
 0xde0   :  { %v1140_v8 = vsel %vm303_vm0, %v1776_v27, 0.0  ;;  %v1778_v9 = vpop.eup %1777 }
 0xde1   :  { %1072 = vadd.xlane.f32.xlu0 %v1071_v6  ;;  %v1074_v33 = vsel %vm303_vm0, %v1778_v9, 0.0  ;;  %1779 = vpow2.f32 %v1138_v12 }
 0xde7   :  { %v1780_v13 = vpop.eup %1779 }
 0xde8   :  { %v1143_v14 = vsel %vm303_vm0, %v1780_v13, 0.0 }
 0xde9   :  { %1141 = vadd.xlane.f32.xlu0 %v1140_v8 }
 0xdea   :  { %1013 = vrot.lane.b32.xlu1 %v2209_v56, %s2400_s6 }
 0xdf1   :  { %1075 = vadd.xlane.f32.xlu0 %v1074_v33 }
 0xdf2   :  { %1151 = vrot.lane.b32.xlu1 %v2209_v56, %s2401_s7 }
 0xe03   :  { %1144 = vadd.xlane.f32.xlu2 %v1143_v14 }
 0xe05   :  { %1082 = vrot.lane.b32.xlu0 %v2209_v56, %s2402_s9 }
 0xe2d   :  { %v935_v15 = vpop.xlane.xlu0 %934 }
 0xe2e   :  { %1781 = vrcp.f32 %v935_v15  ;;  %v1565_v15 = vld [vmem:[%s2372_s11 + $0x1] sm:$0x1] }
 0xe34   :  { %v1782_v17 = vpop.eup %1781 }
 0xe35   :  { %v938_v16 = vpop.xlane.xlu2 %937  ;;  %v941_v19 = vmul.f32 %v1782_v17, %v1766_v40 }
 0xe36   :  { %1783 = vrcp.f32 %v938_v16  ;;  %v1202_v16 = vunpack.c.l.bf16 %v1565_v15 }
 0xe38   :  { %v1203_v17 = vperm.slane %v1202_v16, 0 }
 0xe3c   :  { %v1784_v18 = vpop.eup %1783 }
 0xe3d   :  { %v942_v20 = vmul.f32 %v1784_v18, %v1768_v41  ;;  %v945_v24 = vpop.permute.xlu2 %944 }
 0xe3e   :  { %957 = vmatpush.bf16.msrb.mxu0 %v945_v24 }
 0xe3f   :  { %v943_v29 = vpack.c.bf16 %v942_v20, %v941_v19 }
 0xe41   :  { %1567 = vmatmul.msk.bf16.vlgmr.msrb.gmra.mxu0 %vm303_vm0, %v943_v29 }
 0xe44   :  { %v1004_v22 = vpop.xlane.xlu1 %1003 }
 0xe4c   :  { %v1007_v53 = vpop.xlane.xlu0 %1006 }
 0xe4d   :  { %1785 = vrcp.f32 %v1007_v53 }
 0xe4e   :  { %1787 = vrcp.f32 %v1004_v22 }
 0xe53   :  { %v1786_v58 = vpop.eup %1785 }
 0xe54   :  { %v1073_v23 = vpop.xlane.xlu0 %1072  ;;  %v1788_v56 = vpop.eup %1787  ;;  %v1011_v26 = vmul.f32 %v1786_v58, %v1772_v61  ;;  %v1647_v61 = vld [vmem:[%s2371_s10 + $0x18] sm:$0xff] }
 0xe55   :  { %v1010_v28 = vmul.f32 %v1788_v56, %v1770_v50  ;;  %1225 = vmatpush.bf16.msrb.mxu2 %v1647_v61  ;;  %v1708_v61 = vld [vmem:[%s2374_s13 + $0x1] ss:$0 sm:$0xff] }
 0xe57   :  { %v1012_v31 = vpack.c.bf16 %v1011_v26, %v1010_v28 }
 0xe59   :  { %1226 = vmatpush.bf16.msrb.mxu2 %v1646_v62 }
 0xe5c   :  { %v1014_v30 = vpop.permute.xlu1 %1013  ;;  %v1142_v32 = vpop.xlane.xlu0 %1141 }
 0xe5d   :  { %1026 = vmatpush.bf16.msra.mxu1 %v1014_v30 }
 0xe60   :  { %1571 = vmatmul.msk.bf16.vlgmr.msra.gmra.mxu1 %vm303_vm0, %v1012_v31 }
 0xe64   :  { %v1152_v36 = vpop.permute.xlu1 %1151  ;;  %v1076_v25 = vpop.xlane.xlu0 %1075 }
 0xe65   :  { %1164 = vmatpush.bf16.msrb.mxu1 %v1152_v36  ;;  %1789 = vrcp.f32 %v1076_v25  ;;  %v1649_v25 = vld [vmem:[%s2375_s14 + $0x18] sm:$0xff] }
 0xe66   :  { %1791 = vrcp.f32 %v1073_v23 }
 0xe67   :  { %1793 = vrcp.f32 %v1142_v32 }
 0xe6b   :  { %v1790_v35 = vpop.eup %1789 }
 0xe6c   :  { %v1792_v37 = vpop.eup %1791  ;;  %v1080_v38 = vmul.f32 %v1790_v35, %v1778_v9 }
 0xe6d   :  { %v1079_v54 = vmul.f32 %v1792_v37, %v1774_v3  ;;  %v1794_v42 = vpop.eup %1793 }
 0xe6e   :  { %v1148_v41 = vmul.f32 %v1794_v42, %v1776_v27 }
 0xe6f   :  { %v1081_v40 = vpack.c.bf16 %v1080_v38, %v1079_v54  ;;  %v1648_v38 = vld [vmem:[%s2375_s14 + $0x10] sm:$0xff] }
 0xe76   :  { %v1145_v39 = vpop.xlane.xlu2 %1144 }
 0xe77   :  { %1795 = vrcp.f32 %v1145_v39  ;;  %v1083_v34 = vpop.permute.xlu0 %1082 }
 0xe78   :  { %1095 = vmatpush.bf16.msra.mxu0 %v1083_v34 }
 0xe7b   :  { %1575 = vmatmul.msk.bf16.vlgmr.msra.gmra.mxu0 %vm303_vm0, %v1081_v40 }
 0xe7c   :  { %1324 = vmatpush.bf16.msrb.mxu0 %v1649_v25  ;;  %v1630_v25 = vld [vmem:[%s2378_s17 + $0x1] sm:$0x1] }
 0xe7d   :  { %v1796_v47 = vpop.eup %1795 }
 0xe7e   :  { %v1149_v43 = vmul.f32 %v1796_v47, %v1780_v13 }
 0xe80   :  { %v1150_v46 = vpack.c.bf16 %v1149_v43, %v1148_v41  ;;  %1325 = vmatpush.bf16.msrb.mxu0 %v1648_v38 }
 0xe82   :  { %1579 = vmatmul.msk.bf16.vlgmr.msrb.gmra.mxu1 %vm303_vm0, %v1150_v46 }
 0xebe   :  { %v959_v48 = vpop.f32.mrf.mxu0 }
 0xec6   :  { %v961_v49 = vpop.f32.mrf.mxu0 }
 0xedd   :  { %v1028_v60 = vpop.f32.mrf.mxu1 }
 0xee5   :  { %v1030_v44 = vpop.f32.mrf.mxu1 }
 0xee6   :  { %v1684_v45 = vpack.i.bf16 %v1030_v44, %v1028_v60 }
 0xee8   :  { %1685 = vrot.lane.b32.xlu1 %v1684_v45, %s2403_s22 }
 0xef8   :  { %v1097_v50 = vpop.f32.mrf.mxu0 }
 0xeff   :  { %v1166_v51 = vpop.f32.mrf.mxu1 }
 0xf00   :  { %v1099_v52 = vpop.f32.mrf.mxu0 }
 0xf01   :  { %v1689_v55 = vpack.i.bf16 %v1099_v52, %v1097_v50  ;;  %v1707_v52 = vld [vmem:[%s2373_s12 + $0x1] ss:$0 sm:$0xff] }
 0xf03   :  { %1690 = vrot.lane.b32.xlu1 %v1689_v55, %s2404_s23 }
 0xf07   :  { %v1168_v57 = vpop.f32.mrf.mxu1 }
 0xf08   :  { %v1694_v59 = vpack.i.bf16 %v1168_v57, %v1166_v51 }
 0xf0a   :  { %1695 = vrot.lane.b32.xlu0 %v1694_v59, %s2405_s24 }
 0xf5a   :  { %v1686_v63 = vpop.permute.xlu1 %1685 }
 0xf5b   :  { %v1688_v2 = vunpack.i.h.bf16 %v1686_v63  ;;  %v1687_v3 = vunpack.i.l.bf16 %v1686_v63 }
 0xf5d   :  { %v1195_v27 = vsel %vm282_vm15, %v959_v48, %v1687_v3  ;;  %v1196_v8 = vsel %vm282_vm15, %v961_v49, %v1688_v2 }
 0xf75   :  { %v1691_v1 = vpop.permute.xlu1 %1690 }
 0xf76   :  { %v1693_v5 = vunpack.i.h.bf16 %v1691_v1  ;;  %v1692_v6 = vunpack.i.l.bf16 %v1691_v1 }
 0xf78   :  { %v1198_v11 = vsel %vm303_vm0, %v1196_v8, %v1693_v5  ;;  %v1197_v33 = vsel %vm303_vm0, %v1195_v27, %v1692_v6  ;;  %v1653_v6 = vld [vmem:[%s2376_s16 + $0x38] sm:$0xff]  ;;  %v1652_v27 = vld [vmem:[%s2376_s16 + $0x30] sm:$0xff] }
 0xf79   :  { %1391 = vmatpush.bf16.msra.mxu3 %v1653_v6 }
 0xf7c   :  { %v1696_v7 = vpop.permute.xlu0 %1695 }
 0xf7d   :  { %v1698_v9 = vunpack.i.h.bf16 %v1696_v7  ;;  %v1697_v10 = vunpack.i.l.bf16 %v1696_v7  ;;  %v1595_v7 = vld [vmem:[%s2377_s15 + $0x1] sm:$0x1]  ;;  %1392 = vmatpush.bf16.msra.mxu3 %v1652_v27  ;;  %v1709_v27 = vld [vmem:[%s2379_s18] ss:$0 sm:$0xff] }
 0xf7e   :  { %v1301_v8 = vunpack.c.l.bf16 %v1595_v7 }
 0xf7f   :  { %v1200_v12 = vsel %vm585_vm2, %v1198_v11, %v1698_v9  ;;  %v1199_v13 = vsel %vm585_vm2, %v1197_v33, %v1697_v10  ;;  %v1651_v9 = vld [vmem:[%s2376_s16 + $0x28] sm:$0xff]  ;;  %v1650_v11 = vld [vmem:[%s2376_s16 + $0x20] sm:$0xff] }
 0xf80   :  { %v1201_v14 = vpack.c.bf16 %v1200_v12, %v1199_v13  ;;  %v1302_v10 = vperm.slane %v1301_v8, 0 }
 0xf81   :  { %1393 = vmatpush.bf16.msra.mxu3 %v1651_v9 }
 0xf82   :  { %1588 = vmatmul.msk.bf16.vlgmr.msrb.gmra.mxu2 %vm116_vm1, %v1201_v14 }
 0xf85   :  { %1394 = vmatpush.bf16.msra.mxu3 %v1650_v11 }
0x1005   :  { %v1228_v18 = vpop.f32.mrf.mxu2 }
0x1006   :  { %v1229_v19 = vadd.f32 %v1228_v18, %v1203_v17 }
0x1008   :  { %v2290_v20 = vadd.f32 %v1229_v19, %v2176_v0 }
0x100a   :  { %v1239_v24 = vsel %vm116_vm1, %v2290_v20, 0.0 }
0x100b   :  { %1240 = vadd.xlane.f32.xlu1 %v1239_v24 }
0x100d   :  { %v1230_v29 = vpop.f32.mrf.mxu2 }
0x100e   :  { %v1231_v53 = vadd.f32 %v1230_v29, %v1203_v17 }
0x1010   :  { %v2295_v22 = vadd.f32 %v1231_v53, %v2181_v4 }
0x1012   :  { %v1242_v23 = vsel %vm116_vm1, %v2295_v22, 0.0 }
0x1013   :  { %1243 = vadd.xlane.f32.xlu0 %v1242_v23 }
0x107e   :  { %v1241_v58 = vpop.xlane.xlu1 %1240 }
0x107f   :  { %v1245_v56 = vmul.f32 %v1241_v58, %v1949_v21 }
0x1081   :  { %v1247_v26 = vsub.f32 %v2290_v20, %v1245_v56 }
0x1083   :  { %v1249_v0 = vmul.f32 %v1247_v26, %v1247_v26 }
0x1085   :  { %v1251_v28 = vsel %vm116_vm1, %v1249_v0, 0.0 }
0x1086   :  { %v1244_v30 = vpop.xlane.xlu0 %1243  ;;  %1252 = vadd.xlane.f32.xlu2 %v1251_v28 }
0x1087   :  { %v1246_v31 = vmul.f32 %v1244_v30, %v1949_v21 }
0x1089   :  { %v1248_v32 = vsub.f32 %v2295_v22, %v1246_v31 }
0x108b   :  { %v1250_v4 = vmul.f32 %v1248_v32, %v1248_v32 }
0x108d   :  { %v1254_v36 = vsel %vm116_vm1, %v1250_v4, 0.0 }
0x108e   :  { %1255 = vadd.xlane.f32.xlu2 %v1254_v36 }
0x10f9   :  { %v1253_v35 = vpop.xlane.xlu2 %1252 }
0x10fa   :  { %v1257_v37 = vmul.f32 %v1253_v35, %v1949_v21  ;;  %v1405_v35 = vunpack.c.l.bf16 %v1630_v25 }
0x10fc   :  { %v1259_v39 = vadd.f32 1e-05, %v1257_v37  ;;  %v1406_v37 = vperm.slane %v1405_v35, 0 }
0x10fe   :  { %1797 = vrsqrt.f32 %v1259_v39  ;;  %vm1267_vm0 = vweird.f32 %v1259_v39 }
0x1101   :  { %v1256_v54 = vpop.xlane.xlu2 %1255 }
0x1102   :  { %v1258_v34 = vmul.f32 %v1256_v54, %v1949_v21 }
0x1104   :  { %v1798_v40 = vpop.eup %1797  ;;  %v1260_v42 = vadd.f32 1e-05, %v1258_v34 }
0x1105   :  { %v1262_v47 = vmul.f32 %v1798_v40, %v1259_v39  ;;  %vm1268_vm15 = vweird.f32 %v1798_v40 }
0x1106   :  { %1799 = vrsqrt.f32 %v1260_v42  ;;  %vm1269_vm2 = vmor %vm1267_vm0, %vm1268_vm15  ;;  %vm1277_vm5 = vweird.f32 %v1260_v42 }
0x1107   :  { %v1263_v41 = vmul.f32 %v1798_v40, %v1262_v47 }
0x1109   :  { %v1264_v43 = vmul.f32 0.5, %v1263_v41 }
0x110b   :  { %v1265_v46 = vsub.f32 1.5, %v1264_v43 }
0x110c   :  { %v1800_v60 = vpop.eup %1799 }
0x110d   :  { %v1266_v44 = vmul.f32 %v1798_v40, %v1265_v46  ;;  %v1272_v45 = vmul.f32 %v1800_v60, %v1260_v42  ;;  %vm1278_vm4 = vweird.f32 %v1800_v60 }
0x110e   :  { %vm1279_vm6 = vmor %vm1277_vm5, %vm1278_vm4 }
0x110f   :  { %v1273_v48 = vmul.f32 %v1800_v60, %v1272_v45  ;;  %v1270_v49 = vsel %vm1269_vm2, %v1798_v40, %v1266_v44 }
0x1110   :  { %v1281_v55 = vmul.f32 %v1270_v49, %v1247_v26 }
0x1111   :  { %v1274_v50 = vmul.f32 0.5, %v1273_v48 }
0x1112   :  { %v1286_v62 = vmul.f32 %v1707_v52, %v1281_v55 }
0x1113   :  { %v1275_v51 = vsub.f32 1.5, %v1274_v50 }
0x1114   :  { %v1291_v2 = vadd.f32 %v1708_v61, %v1286_v62 }
0x1115   :  { %v1276_v57 = vmul.f32 %v1800_v60, %v1275_v51 }
0x1117   :  { %v1280_v59 = vsel %vm1279_vm6, %v1800_v60, %v1276_v57 }
0x1118   :  { %v1282_v63 = vmul.f32 %v1280_v59, %v1248_v32 }
0x111a   :  { %v1287_v1 = vmul.f32 %v1707_v52, %v1282_v63 }
0x111c   :  { %v1292_v3 = vadd.f32 %v1708_v61, %v1287_v1 }
0x111e   :  { %v1298_v5 = vpack.c.bf16 %v1292_v3, %v1291_v2 }
0x1120   :  { %1604 = vmatmul.msk.bf16.vlgmr.msrb.gmra.mxu0 %vm116_vm1, %v1298_v5 }
0x119d   :  { %v1327_v33 = vpop.f32.mrf.mxu0 }
0x119e   :  { %v1328_v12 = vadd.f32 %v1327_v33, %v1302_v10 }
0x11a0   :  { %v1332_v13 = vmul.f32 %v1328_v12, %v1328_v12 }
0x11a2   :  { %v1334_v14 = vmul.f32 %v1332_v13, %v1328_v12 }
0x11a4   :  { %v1336_v15 = vmul.f32 0.044715, %v1334_v14 }
0x11a5   :  { %v1329_v16 = vpop.f32.mrf.mxu0 }
0x11a6   :  { %v1338_v17 = vadd.f32 %v1336_v15, %v1328_v12  ;;  %v1330_v18 = vadd.f32 %v1329_v16, %v1302_v10 }
0x11a8   :  { %v1340_v19 = vmul.f32 0.7978846, %v1338_v17  ;;  %v1333_v24 = vmul.f32 %v1330_v18, %v1330_v18 }
0x11aa   :  { %v1335_v29 = vmul.f32 %v1333_v24, %v1330_v18  ;;  %1801 = vtanh.f32 %v1340_v19 }
0x11ac   :  { %v1337_v53 = vmul.f32 0.044715, %v1335_v29 }
0x11ae   :  { %v1339_v23 = vadd.f32 %v1337_v53, %v1330_v18 }
0x11b0   :  { %v1341_v58 = vmul.f32 0.7978846, %v1339_v23  ;;  %v1802_v56 = vpop.eup %1801 }
0x11b1   :  { %v1344_v26 = vadd.f32 1.0, %v1802_v56 }
0x11b2   :  { %1803 = vtanh.f32 %v1341_v58 }
0x11b3   :  { %v1346_v28 = vmul.f32 0.5, %v1344_v26 }
0x11b5   :  { %v1348_v32 = vmul.f32 %v1346_v28, %v1328_v12 }
0x11b8   :  { %v1804_v0 = vpop.eup %1803 }
0x11b9   :  { %v1345_v30 = vadd.f32 1.0, %v1804_v0 }
0x11bb   :  { %v1347_v31 = vmul.f32 0.5, %v1345_v30 }
0x11bd   :  { %v1349_v4 = vmul.f32 %v1347_v31, %v1330_v18 }
0x11bf   :  { %v1359_v36 = vpack.c.bf16 %v1349_v4, %v1348_v32 }
0x11c1   :  { %1629 = vmatmul.msk.bf16.vlgmr.msra.gmra.mxu3 %vm766_vm9, %v1359_v36 }
0x1244   :  { %v1396_v38 = vpop.f32.mrf.mxu3 }
0x1245   :  { %v1401_v39 = vadd.f32 %v1396_v38, %v2290_v20 }
0x1247   :  { %v1407_v54 = vadd.f32 %v1406_v37, %v1401_v39 }
0x1249   :  { %v1411_v34 = vsel %vm116_vm1, %v1407_v54, 0.0 }
0x124a   :  { %1412 = vadd.xlane.f32.xlu2 %v1411_v34 }
0x124c   :  { %v1398_v40 = vpop.f32.mrf.mxu3 }
0x124d   :  { %v1402_v42 = vadd.f32 %v1398_v40, %v2295_v22 }
0x124f   :  { %v1408_v47 = vadd.f32 %v1406_v37, %v1402_v42 }
0x1251   :  { %v1414_v41 = vsel %vm116_vm1, %v1408_v47, 0.0 }
0x1252   :  { %1415 = vadd.xlane.f32.xlu2 %v1414_v41 }
0x12bd   :  { %v1413_v43 = vpop.xlane.xlu2 %1412 }
0x12be   :  { %v1417_v46 = vmul.f32 %v1413_v43, %v1949_v21 }
0x12c0   :  { %v1419_v60 = vsub.f32 %v1407_v54, %v1417_v46 }
0x12c2   :  { %v1421_v44 = vmul.f32 %v1419_v60, %v1419_v60 }
0x12c4   :  { %v1423_v45 = vsel %vm116_vm1, %v1421_v44, 0.0 }
0x12c5   :  { %1424 = vadd.xlane.f32.xlu1 %v1423_v45  ;;  %v1416_v20 = vpop.xlane.xlu2 %1415 }
0x12c6   :  { %v1418_v48 = vmul.f32 %v1416_v20, %v1949_v21 }
0x12c8   :  { %v1420_v49 = vsub.f32 %v1408_v47, %v1418_v48 }
0x12ca   :  { %v1422_v50 = vmul.f32 %v1420_v49, %v1420_v49 }
0x12cc   :  { %v1426_v51 = vsel %vm116_vm1, %v1422_v50, 0.0 }
0x12cd   :  { %1427 = vadd.xlane.f32.xlu2 %v1426_v51 }
0x1338   :  { %v1425_v22 = vpop.xlane.xlu1 %1424 }
0x1339   :  { %v1429_v52 = vmul.f32 %v1425_v22, %v1949_v21 }
0x133b   :  { %v1431_v55 = vadd.f32 1e-05, %v1429_v52 }
0x133d   :  { %1805 = vrsqrt.f32 %v1431_v55  ;;  %vm1439_vm1 = vweird.f32 %v1431_v55 }
0x1340   :  { %v1428_v57 = vpop.xlane.xlu2 %1427 }
0x1341   :  { %v1430_v59 = vmul.f32 %v1428_v57, %v1949_v21  ;;  %v1710_v21 = vld [vmem:[%s2380_s19] ss:$0 sm:$0xff] }
0x1343   :  { %v1806_v61 = vpop.eup %1805  ;;  %v1432_v62 = vadd.f32 1e-05, %v1430_v59 }
0x1344   :  { %v1434_v63 = vmul.f32 %v1806_v61, %v1431_v55  ;;  %vm1440_vm7 = vweird.f32 %v1806_v61 }
0x1345   :  { %1807 = vrsqrt.f32 %v1432_v62  ;;  %vm1441_vm8 = vmor %vm1439_vm1, %vm1440_vm7  ;;  %vm1449_vm11 = vweird.f32 %v1432_v62 }
0x1346   :  { %v1435_v1 = vmul.f32 %v1806_v61, %v1434_v63 }
0x1348   :  { %v1436_v2 = vmul.f32 0.5, %v1435_v1 }
0x134a   :  { %v1437_v3 = vsub.f32 1.5, %v1436_v2 }
0x134b   :  { %v1808_v5 = vpop.eup %1807 }
0x134c   :  { %v1438_v6 = vmul.f32 %v1806_v61, %v1437_v3  ;;  %v1444_v7 = vmul.f32 %v1808_v5, %v1432_v62  ;;  %vm1450_vm9 = vweird.f32 %v1808_v5 }
0x134d   :  { %vm1451_vm12 = vmor %vm1449_vm11, %vm1450_vm9 }
0x134e   :  { %v1442_v8 = vsel %vm1441_vm8, %v1806_v61, %v1438_v6  ;;  %v1445_v9 = vmul.f32 %v1808_v5, %v1444_v7 }
0x134f   :  { %v1453_v10 = vmul.f32 %v1442_v8, %v1419_v60 }
0x1350   :  { %v1446_v11 = vmul.f32 0.5, %v1445_v9 }
0x1351   :  { %v1458_v33 = vmul.f32 %v1709_v27, %v1453_v10 }
0x1352   :  { %v1447_v12 = vsub.f32 1.5, %v1446_v11 }
0x1353   :  { %v1463_v13 = vadd.f32 %v1710_v21, %v1458_v33 }
0x1354   :  { %v1448_v14 = vmul.f32 %v1808_v5, %v1447_v12 }
0x1355   :  { %v1465_v15 = vpack.c.bf16 %v1463_v13, %v1463_v13 }
0x1356   :  { %v1452_v16 = vsel %vm1451_vm12, %v1808_v5, %v1448_v14 }
0x1357   :  { %1468 = vst.msk [vmem:[%s2381_s20] sm:$0xf] %vm1467_vm10, %v1465_v15  ;;  %v1454_v17 = vmul.f32 %v1452_v16, %v1420_v49 }
0x1359   :  { %v1459_v18 = vmul.f32 %v1709_v27, %v1454_v17 }
0x135b   :  { %v1464_v19 = vadd.f32 %v1710_v21, %v1459_v18 }
0x135d   :  { %v1466_v24 = vpack.c.bf16 %v1464_v19, %v1464_v19 }
0x135f   :  { %1469 = vst.msk [vmem:[%s2381_s20 + $0x4] sm:$0xf] %vm1467_vm10, %v1466_v24 }

// kernel: dolphin_forward.3
= control target key start
LH: loop header
LB: loop body
LE: loop exit
PB: predicated region body
PF: predicated region fallthrough
CT: control target
= control target key end

     0   :  { %s2947_s0 = inlined_call_operand.vmem [shape: f32[8,32], index: 0, kind: input, shape index: {}]   ;;  %s2948_s1 = inlined_call_operand.vmem [shape: bf16[16,32], index: 1, kind: input, shape index: {}]   ;;  %s2949_s2 = inlined_call_operand.vmem [shape: f32[1,32], index: 2, kind: input, shape index: {}]   ;;  %s2950_s3 = inlined_call_operand.vmem [shape: f32[1,32], index: 3, kind: input, shape index: {}]   ;;  %s2951_s4 = inlined_call_operand.vmem [shape: f32[2,1,32], index: 4, kind: input, shape index: {}]   ;;  %s2952_s5 = inlined_call_operand.vmem [shape: f32[2,1,32], index: 5, kind: input, shape index: {}]   ;;  %s2953_s6 = inlined_call_operand.vmem [shape: bf16[2,32,96], index: 6, kind: input, shape index: {}]   ;;  %s2954_s7 = inlined_call_operand.vmem [shape: bf16[2,1,96], index: 7, kind: input, shape index: {}]   ;;  %s2955_s8 = inlined_call_operand.vmem [shape: bf16[2,32,32], index: 8, kind: input, shape index: {}]   ;;  %s2956_s9 = inlined_call_operand.vmem [shape: bf16[2,1,32], index: 9, kind: input, shape index: {}]   ;;  %s2957_s10 = inlined_call_operand.vmem [shape: f32[2,1,32], index: 10, kind: input, shape index: {}]   ;;  %s2958_s11 = inlined_call_operand.vmem [shape: f32[2,1,32], index: 11, kind: input, shape index: {}]   ;;  %s2959_s12 = inlined_call_operand.vmem [shape: bf16[2,32,32], index: 12, kind: input, shape index: {}]   ;;  %s2960_s13 = inlined_call_operand.vmem [shape: bf16[2,1,32], index: 13, kind: input, shape index: {}]   ;;  %s2961_s14 = inlined_call_operand.vmem [shape: bf16[2,32,64], index: 14, kind: input, shape index: {}]   ;;  %s2962_s15 = inlined_call_operand.vmem [shape: bf16[2,1,64], index: 15, kind: input, shape index: {}]   ;;  %s2963_s16 = inlined_call_operand.vmem [shape: bf16[2,32,32], index: 16, kind: input, shape index: {}]   ;;  %s2964_s17 = inlined_call_operand.vmem [shape: bf16[2,1,32], index: 17, kind: input, shape index: {}]   ;;  %s2965_s18 = inlined_call_operand.vmem [shape: f32[2,1,32], index: 18, kind: input, shape index: {}]   ;;  %s2966_s19 = inlined_call_operand.vmem [shape: f32[2,1,32], index: 19, kind: input, shape index: {}]   ;;  %s2967_s20 = inlined_call_operand.vmem [shape: bf16[2,32,64], index: 20, kind: input, shape index: {}]   ;;  %s2968_s21 = inlined_call_operand.vmem [shape: bf16[2,1,64], index: 21, kind: input, shape index: {}]   ;;  %s2969_s22 = inlined_call_operand.vmem [shape: bf16[2,64,32], index: 22, kind: input, shape index: {}]   ;;  %s2970_s23 = inlined_call_operand.vmem [shape: bf16[2,1,32], index: 23, kind: input, shape index: {}]   ;;  %s2971_s24 = inlined_call_operand.vmem [shape: f32[1,32], index: 24, kind: input, shape index: {}]   ;;  %s2972_s25 = inlined_call_operand.vmem [shape: f32[1,32], index: 25, kind: input, shape index: {}]   ;;  %s2973_s26 = inlined_call_operand.hbm [shape: f32[8,32], index: 26, kind: output, shape index: {}]  }
   0x1   :  { %3014 = sst [smem:[#allocation5_spill]] %s2947_s0 }
   0x2   :  { %3015 = sst [smem:[#allocation6_spill]] %s2948_s1 }
   0x3   :  { %3016 = sst [smem:[#allocation7_spill]] %s2949_s2 }
   0x4   :  { %3017 = sst [smem:[#allocation8_spill]] %s2950_s3 }
   0x5   :  { %3018 = sst [smem:[#allocation9_spill]] %s2951_s4 }
   0x6   :  { %3019 = sst [smem:[#allocation10_spill]] %s2952_s5 }
   0x7   :  { %3020 = sst [smem:[#allocation11_spill]] %s2953_s6 }
   0x8   :  { %3021 = sst [smem:[#allocation12_spill]] %s2954_s7 }
   0x9   :  { %3022 = sst [smem:[#allocation13_spill]] %s2955_s8 }
   0xa   :  { %3023 = sst [smem:[#allocation14_spill]] %s2956_s9 }
   0xb   :  { %3024 = sst [smem:[#allocation15_spill]] %s2957_s10 }
   0xc   :  { %3025 = sst [smem:[#allocation16_spill]] %s2958_s11 }
   0xd   :  { %3026 = sst [smem:[#allocation17_spill]] %s2960_s13 }
   0xe   :  { %3027 = sst [smem:[#allocation18_spill]] %s2963_s16 }
   0xf   :  { %3028 = sst [smem:[#allocation19_spill]] %s2964_s17 }
  0x10   :  { %3029 = sst [smem:[#allocation20_spill]] %s2965_s18 }
  0x11   :  { %3030 = sst [smem:[#allocation21_spill]] %s2966_s19 }
  0x12   :  { %3031 = sst [smem:[#allocation22_spill]] %s2967_s20 }
  0x13   :  { %3032 = sst [smem:[#allocation23_spill]] %s2971_s24 }
  0x14   :  { %3033 = sst [smem:[#allocation24_spill]] %s2972_s25 }
  0x15   :  { %3034 = sst [smem:[#allocation25_spill]] %s2973_s26 }
  0x16   :  { %s3035_s7 = sld [smem:[#allocation5_spill]]  ;;  %vm88_vm0 = vcmask 261120  }
  0x1c   :  { %v85_v0 = vld [vmem:[%s3035_s7] sm:$0xff] }
  0x1d   :  { %v89_v1 = vsel %vm88_vm0, %v85_v0, 0.0 }
  0x1e   :  { %90 = vadd.xlane.f32.xlu0 %v89_v1 }
  0x1f   :  { %31 = vsyncpa [#allocation3], 0  ;;  %v2305_v2 = vmov 32.0   ;;  %s3036_s4 = sld [smem:[#allocation7_spill]]  ;;  %s3003_s30 = smov 120   ;;  %vm211_vm8 = vcmask 64512  }
  0x20   :  { %2193 = vrcp.f32 %v2305_v2  ;;  %s3037_s9 = sld [smem:[#allocation8_spill]]  ;;  %s2991_s2 = smov 96   ;;  %vm248_vm10 = vcmask 1043456   ;;  %vm446_vm11 = vcmask 130048   ;;  %vm448_vm12 = vcmask 195584  }
  0x21   :  { %s3038_s5 = sld [smem:[#allocation11_spill]]  ;;  %s2989_s10 = smov 88  }
  0x22   :  { %s3039_s3 = sld [smem:[#allocation9_spill]]  ;;  %s2999_s6 = smov 104  }
  0x23   :  { %s3040_s8 = sld [smem:[#allocation10_spill]]  ;;  %s2985_s1 = smov 80  }
  0x24   :  { %s3041_s0 = sld [smem:[#allocation12_spill]]  ;;  %s3001_s27 = smov 112  }
  0x25   :  { %v2177_v23 = vld [vmem:[%s3036_s4] ss:$0 sm:$0xff]  ;;  %s2984_s7 = smov 64   ;;  %s2981_s28 = smov 40  }
  0x26   :  { %v2194_v3 = vpop.eup %2193  ;;  %v2178_v26 = vld [vmem:[%s3037_s9] ss:$0 sm:$0xff]  ;;  %s2987_s9 = smov 72   ;;  %s2983_s4 = smov 56  }
  0x27   :  { %v93_v4 = vmul.f32 32.0, %v2194_v3  ;;  %vm97_vm1 = vweird.f32 %v2194_v3  ;;  %v2129_v35 = vld [vmem:[%s3038_s5 + $0x8] sm:$0xff]  ;;  %v2128_v36 = vld [vmem:[%s3038_s5] sm:$0xff]  ;;  %s2982_s29 = smov 48   ;;  %s3060_s24 = sld [smem:[#allocation16_spill]] }
  0x28   :  { %195 = vmatpush.bf16.msra.mxu0 %v2129_v35  ;;  %v2179_v46 = vld [vmem:[%s3039_s3] ss:$0 sm:$0xff] }
  0x29   :  { %v94_v5 = vsub.f32 1.0, %v93_v4  ;;  %v2180_v49 = vld [vmem:[%s3040_s8] ss:$0 sm:$0xff] }
  0x2a   :  { %v171_v53 = vld [vmem:[%s3041_s0] sm:$0x1] }
  0x2b   :  { %v95_v6 = vmul.f32 %v2194_v3, %v94_v5  ;;  %v172_v54 = vunpack.c.l.bf16 %v171_v53 }
  0x2c   :  { %196 = vmatpush.bf16.msra.mxu0 %v2128_v36 }
  0x2d   :  { %v96_v7 = vadd.f32 %v2194_v3, %v95_v6  ;;  %v173_v55 = vperm.slane %v172_v54, 0 }
  0x2f   :  { %v2461_v8 = vsel %vm97_vm1, %v2194_v3, %v96_v7  ;;  %v128_v7 = vlaneseq }
  0x91   :  { %v91_v9 = vpop.xlane.xlu0 %90 }
  0x92   :  { %v99_v10 = vmul.f32 %v2461_v8, %v91_v9  ;;  %v129_v9 = vshrl.u32 %v128_v7, 7 }
  0x94   :  { %v100_v11 = vsub.f32 %v85_v0, %v99_v10  ;;  %v131_v10 = vand.u32 127, %v128_v7 }
  0x96   :  { %v101_v12 = vmul.f32 %v100_v11, %v100_v11  ;;  %vm132_vm9 = vcmp.ge.s32.totalorder %v129_v9, %v131_v10 }
  0x98   :  { %v102_v13 = vsel %vm88_vm0, %v101_v12, 0.0 }
  0x99   :  { %103 = vadd.xlane.f32.xlu0 %v102_v13 }
 0x10c   :  { %v104_v14 = vpop.xlane.xlu0 %103 }
 0x10d   :  { %v105_v15 = vmul.f32 %v104_v14, %v2461_v8 }
 0x10f   :  { %v106_v16 = vadd.f32 1e-05, %v105_v15 }
 0x111   :  { %2195 = vrsqrt.f32 %v106_v16  ;;  %vm113_vm3 = vweird.f32 %v106_v16 }
 0x117   :  { %v2196_v17 = vpop.eup %2195 }
 0x118   :  { %v108_v18 = vmul.f32 %v2196_v17, %v106_v16  ;;  %vm114_vm2 = vweird.f32 %v2196_v17 }
 0x119   :  { %vm115_vm4 = vmor %vm113_vm3, %vm114_vm2 }
 0x11a   :  { %v109_v19 = vmul.f32 %v2196_v17, %v108_v18 }
 0x11c   :  { %v110_v20 = vmul.f32 0.5, %v109_v19 }
 0x11e   :  { %v111_v21 = vsub.f32 1.5, %v110_v20 }
 0x120   :  { %v112_v22 = vmul.f32 %v2196_v17, %v111_v21 }
 0x122   :  { %v116_v24 = vsel %vm115_vm4, %v2196_v17, %v112_v22  ;;  %vm969_vm4 = vcmask 523264  }
 0x123   :  { %v117_v25 = vmul.f32 %v116_v24, %v100_v11  ;;  %v2313_v11 = vmov -1e+09  }
 0x124   :  { %v2521_v12 = vsel %vm132_vm9, 0.0, %v2313_v11 }
 0x125   :  { %v121_v27 = vmul.f32 %v2177_v23, %v117_v25 }
 0x127   :  { %v2472_v28 = vadd.f32 %v2178_v26, %v121_v27 }
 0x129   :  { %v136_v29 = vsel %vm88_vm0, %v2472_v28, 0.0 }
 0x12a   :  { %137 = vadd.xlane.f32.xlu1 %v136_v29 }
 0x19d   :  { %v138_v30 = vpop.xlane.xlu1 %137 }
 0x19e   :  { %v139_v31 = vmul.f32 %v138_v30, %v2461_v8 }
 0x1a0   :  { %v140_v32 = vsub.f32 %v2472_v28, %v139_v31 }
 0x1a2   :  { %v141_v33 = vmul.f32 %v140_v32, %v140_v32 }
 0x1a4   :  { %v142_v34 = vsel %vm88_vm0, %v141_v33, 0.0 }
 0x1a5   :  { %143 = vadd.xlane.f32.xlu1 %v142_v34 }
 0x218   :  { %v144_v37 = vpop.xlane.xlu1 %143 }
 0x219   :  { %v145_v38 = vmul.f32 %v144_v37, %v2461_v8 }
 0x21b   :  { %v146_v39 = vadd.f32 1e-05, %v145_v38 }
 0x21d   :  { %2197 = vrsqrt.f32 %v146_v39  ;;  %vm153_vm6 = vweird.f32 %v146_v39 }
 0x223   :  { %v2198_v40 = vpop.eup %2197 }
 0x224   :  { %v148_v41 = vmul.f32 %v2198_v40, %v146_v39  ;;  %vm154_vm5 = vweird.f32 %v2198_v40 }
 0x225   :  { %vm155_vm7 = vmor %vm153_vm6, %vm154_vm5 }
 0x226   :  { %v149_v42 = vmul.f32 %v2198_v40, %v148_v41 }
 0x228   :  { %v150_v43 = vmul.f32 0.5, %v149_v42 }
 0x22a   :  { %v151_v44 = vsub.f32 1.5, %v150_v43 }
 0x22c   :  { %v152_v45 = vmul.f32 %v2198_v40, %v151_v44 }
 0x22e   :  { %v156_v47 = vsel %vm155_vm7, %v2198_v40, %v152_v45 }
 0x22f   :  { %v157_v48 = vmul.f32 %v156_v47, %v140_v32 }
 0x231   :  { %v161_v50 = vmul.f32 %v2179_v46, %v157_v48 }
 0x233   :  { %v165_v51 = vadd.f32 %v2180_v49, %v161_v50 }
 0x235   :  { %v170_v52 = vpack.c.bf16 %v165_v51, %v165_v51 }
 0x237   :  { %1912 = vmatmul.msk.bf16.vlgmr.msra.gmra.mxu0 %vm88_vm0, %v170_v52 }
 0x2b4   :  { %v198_v56 = vpop.f32.mrf.mxu0 }
 0x2b5   :  { %v199_v57 = vadd.f32 %v198_v56, %v173_v55 }
 0x2b7   :  { %v2496_v58 = vpack.c.bf16 %v199_v57, %v199_v57 }
 0x2b9   :  { %379 = vrot.lane.b32.xlu1 %v2496_v58, %s2987_s9  ;;  %265 = vrot.lane.b32.xlu0 %v2496_v58, %s3003_s30  ;;  %s3042_s9 = sld [smem:[#allocation13_spill]] }
 0x2ba   :  { %209 = vrot.lane.b32.xlu2 %v2496_v58, %s2991_s2  ;;  %s3045_s2 = sld [smem:[#allocation15_spill]] }
 0x2bc   :  { %v200_v59 = vpop.f32.mrf.mxu0 }
 0x2c2   :  { %267 = vrot.lane.b32.xlu2 %v2496_v58, %s2989_s10  ;;  %s3050_s10 = smov 80  }
 0x2ca   :  { %377 = vrot.lane.b32.xlu2 %v2496_v58, %s2999_s6  ;;  %s3044_s6 = sld [smem:[#allocation6_spill]] }
 0x2d2   :  { %323 = vrot.lane.b32.xlu2 %v2496_v58, %s2985_s1  ;;  %s3051_s1 = smov 8  }
 0x2da   :  { %321 = vrot.lane.b32.xlu2 %v2496_v58, %s3001_s27 }
 0x314   :  { %v210_v60 = vpop.permute.xlu2 %209 }
 0x315   :  { %v216_v61 = vsel %vm211_vm8, %v210_v60, 0 }
 0x316   :  { %225 = vmatpush.bf16.xpose.msra.mxu1 %v216_v61 }
 0x31c   :  { %v268_v62 = vpop.permute.xlu2 %267 }
 0x31d   :  { %1913 = vmatmul.msk.bf16.vlgmr.msra.gmra.mxu1 %vm211_vm8, %v2496_v58  ;;  %v273_v63 = vsel %vm211_vm8, %v268_v62, 0 }
 0x31e   :  { %282 = vmatpush.bf16.xpose.msra.mxu3 %v273_v63 }
 0x324   :  { %v378_v0 = vpop.permute.xlu2 %377 }
 0x32b   :  { %v380_v1 = vpop.permute.xlu1 %379  ;;  %v266_v2 = vpop.permute.xlu0 %265 }
 0x32c   :  { %v324_v3 = vpop.permute.xlu2 %323  ;;  %1915 = vmatmul.msk.bf16.vlgmr.msra.gmra.mxu3 %vm211_vm8, %v266_v2  ;;  %v385_v4 = vsel %vm211_vm8, %v380_v1, 0 }
 0x32d   :  { %v329_v5 = vsel %vm211_vm8, %v324_v3, 0  ;;  %394 = vmatpush.bf16.xpose.msrb.mxu3 %v385_v4 }
 0x32e   :  { %338 = vmatpush.bf16.xpose.msrb.mxu0 %v329_v5 }
 0x334   :  { %v322_v6 = vpop.permute.xlu2 %321 }
 0x335   :  { %1917 = vmatmul.msk.bf16.vlgmr.msrb.gmra.mxu0 %vm211_vm8, %v322_v6 }
 0x33c   :  { %1919 = vmatmul.msk.bf16.vlgmr.msrb.gmra.mxu3 %vm211_vm8, %v378_v0 }
 0x39a   :  { %v227_v13 = vpop.f32.mrf.mxu1 }
 0x39b   :  { %v228_v14 = vadd.f32 %v227_v13, %v2521_v12 }
 0x39d   :  { %v231_v15 = vsel %vm211_vm8, %v228_v14, -inf }
 0x39e   :  { %232 = vmax.xlane.f32.xlu0 %v231_v15 }
 0x3a2   :  { %v229_v16 = vpop.f32.mrf.mxu1 }
 0x3af   :  { %v284_v17 = vpop.f32.mrf.mxu3 }
 0x3b0   :  { %v285_v18 = vadd.f32 %v284_v17, %v2521_v12 }
 0x3b2   :  { %v340_v19 = vpop.f32.mrf.mxu0  ;;  %v288_v20 = vsel %vm211_vm8, %v285_v18, -inf }
 0x3b3   :  { %v341_v21 = vadd.f32 %v340_v19, %v2521_v12  ;;  %289 = vmax.xlane.f32.xlu2 %v288_v20  ;;  %v2131_v20 = vld [vmem:[%s3042_s9 + $0x8] sm:$0xff] }
 0x3b4   :  { %474 = vmatpush.bf16.msra.mxu0 %v2131_v20 }
 0x3b5   :  { %v344_v22 = vsel %vm211_vm8, %v341_v21, -inf }
 0x3b6   :  { %345 = vmax.xlane.f32.xlu0 %v344_v22 }
 0x3b7   :  { %v286_v23 = vpop.f32.mrf.mxu3 }
 0x3ba   :  { %v342_v24 = vpop.f32.mrf.mxu0 }
 0x3bf   :  { %v396_v25 = vpop.f32.mrf.mxu3 }
 0x3c0   :  { %v397_v26 = vadd.f32 %v396_v25, %v2521_v12 }
 0x3c2   :  { %v400_v27 = vsel %vm211_vm8, %v397_v26, -inf }
 0x3c3   :  { %401 = vmax.xlane.f32.xlu1 %v400_v27 }
 0x3c7   :  { %v398_v29 = vpop.f32.mrf.mxu3 }
 0x3dc   :  { %243 = vrot.lane.b32.xlu1 %v2496_v58, %s2984_s7  ;;  %s3046_s7 = smov 104  }
 0x3e4   :  { %412 = vrot.lane.b32.xlu1 %v2496_v58, %s2981_s28  ;;  %s2997_s28 = smov 8  }
 0x411   :  { %v233_v30 = vpop.xlane.xlu0 %232 }
 0x412   :  { %v234_v31 = vsub.f32 %v228_v14, %v233_v30 }
 0x414   :  { %v235_v32 = vmul.f32 1.442695, %v234_v31 }
 0x416   :  { %2199 = vpow2.f32 %v235_v32 }
 0x41c   :  { %v2200_v33 = vpop.eup %2199 }
 0x41d   :  { %v237_v34 = vsel %vm211_vm8, %v2200_v33, 0.0 }
 0x41e   :  { %238 = vadd.xlane.f32.xlu2 %v237_v34 }
 0x426   :  { %v290_v35 = vpop.xlane.xlu2 %289 }
 0x427   :  { %v291_v38 = vsub.f32 %v285_v18, %v290_v35 }
 0x429   :  { %v346_v36 = vpop.xlane.xlu0 %345  ;;  %v292_v40 = vmul.f32 1.442695, %v291_v38  ;;  %v2135_v38 = vld [vmem:[%s2961_s14 + $0x8] sm:$0xff] }
 0x42a   :  { %v347_v37 = vsub.f32 %v341_v21, %v346_v36  ;;  %v2130_v21 = vld [vmem:[%s3042_s9] sm:$0xff]  ;;  %583 = vmatpush.bf16.msra.mxu3 %v2135_v38 }
 0x42b   :  { %475 = vmatpush.bf16.msra.mxu0 %v2130_v21 }
 0x42c   :  { %v348_v39 = vmul.f32 1.442695, %v347_v37 }
 0x42e   :  { %2201 = vpow2.f32 %v348_v39  ;;  %v2134_v39 = vld [vmem:[%s2961_s14] sm:$0xff] }
 0x42f   :  { %2203 = vpow2.f32 %v292_v40  ;;  %v2581_v40 = vld [vmem:[%s3044_s6] sm:$0xff]  ;;  %584 = vmatpush.bf16.msra.mxu3 %v2134_v39  ;;  %s3048_s6 = smov 88  }
 0x432   :  { %1951 = vmatmul.msk.bf16.vlgmr.msra.gmra.mxu3 %vm88_vm0, %v2581_v40 }
 0x434   :  { %v2202_v41 = vpop.eup %2201 }
 0x435   :  { %v350_v42 = vsel %vm211_vm8, %v2202_v41, 0.0  ;;  %v2204_v46 = vpop.eup %2203 }
 0x436   :  { %300 = vrot.lane.b32.xlu2 %v2496_v58, %s2983_s4  ;;  %351 = vadd.xlane.f32.xlu0 %v350_v42  ;;  %v402_v43 = vpop.xlane.xlu1 %401  ;;  %v294_v47 = vsel %vm211_vm8, %v2204_v46, 0.0  ;;  %s2993_s4 = smov 24  }
 0x437   :  { %v403_v44 = vsub.f32 %v397_v26, %v402_v43 }
 0x439   :  { %v404_v45 = vmul.f32 1.442695, %v403_v44 }
 0x43b   :  { %2205 = vpow2.f32 %v404_v45  ;;  %v2133_v45 = vld [vmem:[%s2959_s12 + $0x8] sm:$0xff] }
 0x43e   :  { %295 = vadd.xlane.f32.xlu0 %v294_v47  ;;  %v554_v47 = vld [vmem:[%s2962_s15] sm:$0x1] }
 0x441   :  { %v2206_v48 = vpop.eup %2205 }
 0x442   :  { %v406_v49 = vsel %vm211_vm8, %v2206_v48, 0.0 }
 0x446   :  { %407 = vadd.xlane.f32.xlu0 %v406_v49 }
 0x44e   :  { %v244_v50 = vpop.permute.xlu1 %243 }
 0x44f   :  { %v250_v51 = vsel %vm248_vm10, %v244_v50, 0  ;;  %v555_v50 = vunpack.c.l.bf16 %v554_v47 }
 0x450   :  { %259 = vmatpush.bf16.msra.mxu2 %v250_v51 }
 0x456   :  { %v413_v56 = vpop.permute.xlu1 %412 }
 0x457   :  { %v418_v60 = vsel %vm248_vm10, %v413_v56, 0 }
 0x45a   :  { %356 = vrot.lane.b32.xlu0 %v2496_v58, %s2982_s29  ;;  %s2995_s29 = smov 16  }
 0x491   :  { %v239_v52 = vpop.xlane.xlu2 %238 }
 0x492   :  { %2207 = vrcp.f32 %v239_v52  ;;  %v556_v52 = vperm.slane %v555_v50, 0 }
 0x498   :  { %v2208_v53 = vpop.eup %2207 }
 0x499   :  { %v301_v54 = vpop.permute.xlu2 %300  ;;  %v241_v55 = vmul.f32 %v2208_v53, %v2200_v33 }
 0x49a   :  { %v306_v57 = vsel %vm248_vm10, %v301_v54, 0 }
 0x49b   :  { %315 = vmatpush.bf16.msrb.mxu2 %v306_v57  ;;  %v242_v59 = vpack.c.bf16 %v241_v55, %v241_v55 }
 0x49d   :  { %1914 = vmatmul.msk.bf16.vlgmr.msra.gmra.mxu2 %vm211_vm8, %v242_v59 }
 0x49f   :  { %427 = vmatpush.bf16.msra.mxu2 %v418_v60 }
 0x4a9   :  { %v352_v61 = vpop.xlane.xlu0 %351 }
 0x4b1   :  { %v296_v62 = vpop.xlane.xlu0 %295 }
 0x4b2   :  { %2209 = vrcp.f32 %v296_v62 }
 0x4b8   :  { %v2210_v63 = vpop.eup %2209 }
 0x4b9   :  { %v298_v58 = vmul.f32 %v2210_v63, %v2204_v46  ;;  %v408_v0 = vpop.xlane.xlu0 %407  ;;  %v2132_v46 = vld [vmem:[%s2959_s12] sm:$0xff] }
 0x4ba   :  { %2211 = vrcp.f32 %v408_v0 }
 0x4bb   :  { %v299_v1 = vpack.c.bf16 %v298_v58, %v298_v58  ;;  %2213 = vrcp.f32 %v352_v61 }
 0x4bd   :  { %1916 = vmatmul.msk.bf16.vlgmr.msrb.gmra.mxu2 %vm211_vm8, %v299_v1  ;;  %v2181_v1 = vld [vmem:[%s3045_s2] ss:$0 sm:$0xff] }
 0x4c0   :  { %v2212_v2 = vpop.eup %2211 }
 0x4c1   :  { %v410_v3 = vmul.f32 %v2212_v2, %v2206_v48  ;;  %v2214_v4 = vpop.eup %2213  ;;  %v586_v48 = vpop.f32.mrf.mxu3 }
 0x4c2   :  { %v354_v5 = vmul.f32 %v2214_v4, %v2202_v41  ;;  %v587_v54 = vadd.f32 %v586_v48, %v556_v52  ;;  %v2182_v4 = vld [vmem:[%s2958_s11] ss:$0 sm:$0xff] }
 0x4c3   :  { %v411_v6 = vpack.c.bf16 %v410_v3, %v410_v3 }
 0x4c4   :  { %v355_v10 = vpack.c.bf16 %v354_v5, %v354_v5 }
 0x4c9   :  { %v588_v55 = vpop.f32.mrf.mxu3 }
 0x4ca   :  { %v589_v56 = vadd.f32 %v588_v55, %v556_v52 }
 0x4cc   :  { %v357_v7 = vpop.permute.xlu0 %356  ;;  %v2598_v57 = vpack.c.bf16 %v589_v56, %v587_v54 }
 0x4cd   :  { %1920 = vmatmul.msk.bf16.vlgmr.msra.gmra.mxu2 %vm211_vm8, %v411_v6  ;;  %v362_v9 = vsel %vm248_vm10, %v357_v7, 0 }
 0x4ce   :  { %371 = vmatpush.bf16.msrb.mxu1 %v362_v9  ;;  %652 = vrot.lane.b32.xlu0 %v2598_v57, %s3003_s30  ;;  %v602_v61 = vsel %vm211_vm8, %v2598_v57, 0 }
 0x4cf   :  { %611 = vmatpush.bf16.xpose.msrb.mxu2 %v602_v61 }
 0x4d1   :  { %1918 = vmatmul.msk.bf16.vlgmr.msrb.gmra.mxu1 %vm211_vm8, %v355_v10  ;;  %v519_v10 = vld [vmem:[%s2960_s13] sm:$0x1] }
 0x4d2   :  { %543 = vmatpush.bf16.msra.mxu1 %v2133_v45 }
 0x4d6   :  { %544 = vmatpush.bf16.msra.mxu1 %v2132_v46  ;;  %706 = vrot.lane.b32.xlu0 %v2598_v57, %s3001_s27 }
 0x520   :  { %v261_v11 = vpop.f32.mrf.mxu2 }
 0x528   :  { %v263_v13 = vpop.f32.mrf.mxu2 }
 0x529   :  { %v520_v13 = vunpack.c.l.bf16 %v519_v10 }
 0x540   :  { %v317_v14 = vpop.f32.mrf.mxu2  ;;  %v653_v9 = vpop.permute.xlu0 %652 }
 0x541   :  { %434 = vrot.lane.b32.xlu2 %v317_v14, %s2997_s28  ;;  %v521_v14 = vperm.slane %v520_v13, 0  ;;  %s3049_s28 = smov 72  }
 0x548   :  { %v319_v15 = vpop.f32.mrf.mxu2 }
 0x549   :  { %v707_v15 = vpop.permute.xlu0 %706 }
 0x54e   :  { %v373_v16 = vpop.f32.mrf.mxu1 }
 0x54f   :  { %438 = vrot.lane.b32.xlu1 %v373_v16, %s2995_s29  ;;  %v712_v16 = vsel %vm211_vm8, %v707_v15, 0  ;;  %s3047_s29 = smov 96  }
 0x550   :  { %v429_v17 = vpop.f32.mrf.mxu2  ;;  %721 = vmatpush.bf16.xpose.msra.mxu2 %v712_v16 }
 0x551   :  { %442 = vrot.lane.b32.xlu2 %v429_v17, %s2993_s4  ;;  %s3043_s4 = sld [smem:[#allocation14_spill]] }
 0x556   :  { %v375_v18 = vpop.f32.mrf.mxu1 }
 0x557   :  { %v206_v30 = vld [vmem:[%s3043_s4] sm:$0x1] }
 0x558   :  { %v431_v19 = vpop.f32.mrf.mxu2  ;;  %v451_v31 = vunpack.c.l.bf16 %v206_v30 }
 0x55a   :  { %v452_v32 = vperm.slane %v451_v31, 0 }
 0x59b   :  { %v435_v22 = vpop.permute.xlu2 %434 }
 0x59c   :  { %v445_v23 = vsel %vm211_vm8, %v261_v11, %v435_v22  ;;  %v658_v11 = vsel %vm211_vm8, %v653_v9, 0 }
 0x59d   :  { %667 = vmatpush.bf16.xpose.msrb.mxu1 %v658_v11 }
 0x5ab   :  { %v443_v25 = vpop.permute.xlu2 %442 }
 0x5c1   :  { %v439_v24 = vpop.permute.xlu1 %438 }
 0x5c2   :  { %v447_v26 = vsel %vm446_vm11, %v445_v23, %v439_v24 }
 0x5c3   :  { %v449_v27 = vsel %vm448_vm12, %v447_v26, %v443_v25 }
 0x5c4   :  { %v450_v29 = vpack.c.bf16 %v449_v27, %v449_v27 }
 0x5c6   :  { %1929 = vmatmul.msk.bf16.vlgmr.msra.gmra.mxu0 %vm88_vm0, %v450_v29 }
 0x643   :  { %v477_v33 = vpop.f32.mrf.mxu0 }
 0x644   :  { %v478_v34 = vadd.f32 %v477_v33, %v452_v32 }
 0x646   :  { %v2568_v35 = vadd.f32 %v478_v34, %v2472_v28 }
 0x648   :  { %v484_v36 = vsel %vm88_vm0, %v2568_v35, 0.0 }
 0x649   :  { %485 = vadd.xlane.f32.xlu1 %v484_v36 }
 0x64b   :  { %v479_v37 = vpop.f32.mrf.mxu0 }
 0x6bc   :  { %v486_v28 = vpop.xlane.xlu1 %485 }
 0x6bd   :  { %v487_v41 = vmul.f32 %v486_v28, %v2461_v8 }
 0x6bf   :  { %v488_v42 = vsub.f32 %v2568_v35, %v487_v41 }
 0x6c1   :  { %v489_v43 = vmul.f32 %v488_v42, %v488_v42 }
 0x6c3   :  { %v490_v44 = vsel %vm88_vm0, %v489_v43, 0.0 }
 0x6c4   :  { %491 = vadd.xlane.f32.xlu2 %v490_v44 }
 0x737   :  { %v492_v49 = vpop.xlane.xlu2 %491 }
 0x738   :  { %v493_v51 = vmul.f32 %v492_v49, %v2461_v8 }
 0x73a   :  { %v494_v53 = vadd.f32 1e-05, %v493_v51 }
 0x73c   :  { %2215 = vrsqrt.f32 %v494_v53  ;;  %vm501_vm14 = vweird.f32 %v494_v53 }
 0x742   :  { %v2216_v59 = vpop.eup %2215 }
 0x743   :  { %v496_v60 = vmul.f32 %v2216_v59, %v494_v53  ;;  %vm502_vm13 = vweird.f32 %v2216_v59 }
 0x744   :  { %vm503_vm15 = vmor %vm501_vm14, %vm502_vm13 }
 0x745   :  { %v497_v62 = vmul.f32 %v2216_v59, %v496_v60 }
 0x747   :  { %v498_v63 = vmul.f32 0.5, %v497_v62 }
 0x749   :  { %v499_v58 = vsub.f32 1.5, %v498_v63 }
 0x74b   :  { %v500_v0 = vmul.f32 %v2216_v59, %v499_v58 }
 0x74d   :  { %v504_v2 = vsel %vm503_vm15, %v2216_v59, %v500_v0 }
 0x74e   :  { %v505_v3 = vmul.f32 %v504_v2, %v488_v42 }
 0x750   :  { %v509_v5 = vmul.f32 %v2181_v1, %v505_v3 }
 0x752   :  { %v513_v6 = vadd.f32 %v2182_v4, %v509_v5 }
 0x754   :  { %v518_v7 = vpack.c.bf16 %v513_v6, %v513_v6 }
 0x756   :  { %1938 = vmatmul.msk.bf16.vlgmr.msra.gmra.mxu1 %vm88_vm0, %v518_v7 }
 0x7d3   :  { %v546_v17 = vpop.f32.mrf.mxu1 }
 0x7d4   :  { %v547_v18 = vadd.f32 %v546_v17, %v521_v14 }
 0x7d6   :  { %v596_v19 = vpack.c.bf16 %v547_v18, %v547_v18 }
 0x7d8   :  { %758 = vrot.lane.b32.xlu1 %v596_v19, %s3046_s7  ;;  %650 = vrot.lane.b32.xlu0 %v596_v19, %s3003_s30  ;;  %s3053_s30 = smov 24  }
 0x7d9   :  { %1952 = vmatmul.msk.bf16.vlgmr.msrb.gmra.mxu2 %vm211_vm8, %v596_v19 }
 0x7db   :  { %v548_v20 = vpop.f32.mrf.mxu1 }
 0x7e0   :  { %760 = vrot.lane.b32.xlu0 %v2598_v57, %s3046_s7 }
 0x7e8   :  { %704 = vrot.lane.b32.xlu0 %v596_v19, %s3001_s27  ;;  %s3052_s27 = smov 16  }
 0x84a   :  { %v651_v21 = vpop.permute.xlu0 %650  ;;  %v759_v24 = vpop.permute.xlu1 %758 }
 0x84b   :  { %1954 = vmatmul.msk.bf16.vlgmr.msrb.gmra.mxu1 %vm211_vm8, %v651_v21 }
 0x852   :  { %v761_v22 = vpop.permute.xlu0 %760 }
 0x853   :  { %v766_v23 = vsel %vm211_vm8, %v761_v22, 0 }
 0x854   :  { %775 = vmatpush.bf16.xpose.msra.mxu1 %v766_v23 }
 0x85a   :  { %v705_v25 = vpop.permute.xlu0 %704 }
 0x85b   :  { %1956 = vmatmul.msk.bf16.vlgmr.msra.gmra.mxu2 %vm211_vm8, %v705_v25  ;;  %1958 = vmatmul.msk.bf16.vlgmr.msra.gmra.mxu1 %vm211_vm8, %v759_v24 }
 0x85c   :  { %v613_v26 = vpop.f32.mrf.mxu2 }
 0x85d   :  { %v617_v27 = vsel %vm446_vm11, %v613_v26, -inf }
 0x85e   :  { %618 = vmax.xlane.f32.xlu2 %v617_v27  ;;  %v2136_v27 = vld [vmem:[%s2963_s16] sm:$0xff] }
 0x864   :  { %v615_v29 = vpop.f32.mrf.mxu2 }
 0x8c8   :  { %v669_v30 = vpop.f32.mrf.mxu1 }
 0x8c9   :  { %v673_v31 = vsel %vm446_vm11, %v669_v30, -inf }
 0x8ca   :  { %674 = vmax.xlane.f32.xlu0 %v673_v31 }
 0x8d0   :  { %v671_v32 = vpop.f32.mrf.mxu1 }
 0x8d1   :  { %v619_v34 = vpop.xlane.xlu2 %618 }
 0x8d2   :  { %v620_v36 = vsub.f32 %v613_v26, %v619_v34  ;;  %v2137_v26 = vld [vmem:[%s2963_s16 + $0x8] sm:$0xff]  ;;  %s3057_s16 = smov 56  }
 0x8d3   :  { %851 = vmatpush.bf16.msrb.mxu2 %v2137_v26 }
 0x8d4   :  { %v621_v28 = vmul.f32 1.442695, %v620_v36 }
 0x8d6   :  { %2217 = vpow2.f32 %v621_v28 }
 0x8d7   :  { %852 = vmatpush.bf16.msrb.mxu2 %v2136_v27 }
 0x8d8   :  { %v777_v33 = vpop.f32.mrf.mxu1 }
 0x8d9   :  { %v781_v42 = vsel %vm446_vm11, %v777_v33, -inf }
 0x8dc   :  { %v2218_v43 = vpop.eup %2217 }
 0x8dd   :  { %v623_v44 = vsel %vm446_vm11, %v2218_v43, 0.0 }
 0x8de   :  { %630 = vrot.lane.b32.xlu0 %v2598_v57, %s3047_s29  ;;  %v723_v37 = vpop.f32.mrf.mxu2 }
 0x8df   :  { %v727_v38 = vsel %vm446_vm11, %v723_v37, -inf }
 0x8e0   :  { %v779_v39 = vpop.f32.mrf.mxu1  ;;  %728 = vmax.xlane.f32.xlu2 %v727_v38 }
 0x8e6   :  { %v725_v41 = vpop.f32.mrf.mxu2 }
 0x8e8   :  { %782 = vmax.xlane.f32.xlu2 %v781_v42 }
 0x8f0   :  { %624 = vadd.xlane.f32.xlu2 %v623_v44 }
 0x908   :  { %685 = vrot.lane.b32.xlu2 %v2598_v57, %s3048_s6 }
 0x93d   :  { %v675_v45 = vpop.xlane.xlu0 %674 }
 0x93e   :  { %v676_v46 = vsub.f32 %v669_v30, %v675_v45 }
 0x940   :  { %v677_v47 = vmul.f32 1.442695, %v676_v46 }
 0x942   :  { %2219 = vpow2.f32 %v677_v47 }
 0x948   :  { %v2220_v48 = vpop.eup %2219 }
 0x949   :  { %v679_v49 = vsel %vm446_vm11, %v2220_v48, 0.0 }
 0x94a   :  { %680 = vadd.xlane.f32.xlu1 %v679_v49 }
 0x950   :  { %v631_v50 = vpop.permute.xlu0 %630 }
 0x951   :  { %643 = vmatpush.bf16.msrb.mxu0 %v631_v50  ;;  %v2139_v50 = vld [vmem:[%s2967_s20 + $0x8] sm:$0xff] }
 0x953   :  { %v729_v51 = vpop.xlane.xlu2 %728 }
 0x954   :  { %v730_v52 = vsub.f32 %v723_v37, %v729_v51  ;;  %v595_v37 = vld [vmem:[%s2964_s17] sm:$0x1]  ;;  %s3058_s17 = smov 48  }
 0x955   :  { %v828_v38 = vunpack.c.l.bf16 %v595_v37 }
 0x956   :  { %v731_v53 = vmul.f32 1.442695, %v730_v52 }
 0x957   :  { %v829_v39 = vperm.slane %v828_v38, 0 }
 0x958   :  { %2221 = vpow2.f32 %v731_v53 }
 0x95b   :  { %v783_v54 = vpop.xlane.xlu2 %782 }
 0x95c   :  { %v784_v55 = vsub.f32 %v777_v33, %v783_v54 }
 0x95e   :  { %v2222_v56 = vpop.eup %2221  ;;  %v785_v59 = vmul.f32 1.442695, %v784_v55 }
 0x95f   :  { %v733_v60 = vsel %vm446_vm11, %v2222_v56, 0.0 }
 0x960   :  { %2223 = vpow2.f32 %v785_v59  ;;  %734 = vadd.xlane.f32.xlu0 %v733_v60 }
 0x963   :  { %793 = vrot.lane.b32.xlu1 %v2598_v57, %s3049_s28  ;;  %v625_v61 = vpop.xlane.xlu2 %624 }
 0x964   :  { %2225 = vrcp.f32 %v625_v61 }
 0x966   :  { %v2224_v62 = vpop.eup %2223 }
 0x967   :  { %v787_v63 = vsel %vm446_vm11, %v2224_v62, 0.0 }
 0x968   :  { %788 = vadd.xlane.f32.xlu2 %v787_v63 }
 0x96a   :  { %v2226_v58 = vpop.eup %2225 }
 0x96b   :  { %v627_v0 = vmul.f32 %v2226_v58, %v2218_v43  ;;  %739 = vrot.lane.b32.xlu1 %v2598_v57, %s3050_s10  ;;  %v686_v1 = vpop.permute.xlu2 %685 }
 0x96c   :  { %698 = vmatpush.bf16.msrb.mxu3 %v686_v1 }
 0x96d   :  { %v628_v2 = vpack.c.bf16 %v627_v0, %v627_v0  ;;  %v2184_v0 = vld [vmem:[%s2966_s19] ss:$0 sm:$0xff] }
 0x96f   :  { %1953 = vmatmul.msk.bf16.vlgmr.msrb.gmra.mxu0 %vm446_vm11, %v628_v2 }
 0x9bd   :  { %v681_v3 = vpop.xlane.xlu1 %680 }
 0x9be   :  { %2227 = vrcp.f32 %v681_v3 }
 0x9c4   :  { %v2228_v4 = vpop.eup %2227 }
 0x9c5   :  { %v683_v5 = vmul.f32 %v2228_v4, %v2220_v48  ;;  %v2143_v4 = vld [vmem:[%s2969_s22 + $0x18] sm:$0xff] }
 0x9c6   :  { %977 = vmatpush.bf16.msrb.mxu1 %v2143_v4 }
 0x9c7   :  { %v684_v6 = vpack.c.bf16 %v683_v5, %v683_v5  ;;  %v2142_v5 = vld [vmem:[%s2969_s22 + $0x10] sm:$0xff] }
 0x9c9   :  { %1955 = vmatmul.msk.bf16.vlgmr.msrb.gmra.mxu3 %vm446_vm11, %v684_v6  ;;  %v2141_v6 = vld [vmem:[%s2969_s22 + $0x8] sm:$0xff] }
 0x9ca   :  { %978 = vmatpush.bf16.msrb.mxu1 %v2142_v5 }
 0x9ce   :  { %979 = vmatpush.bf16.msrb.mxu1 %v2141_v6 }
 0x9d3   :  { %v735_v7 = vpop.xlane.xlu0 %734 }
 0x9d4   :  { %2229 = vrcp.f32 %v735_v7  ;;  %v896_v7 = vld [vmem:[%s2968_s21] sm:$0x1] }
 0x9d5   :  { %v794_v9 = vpop.permute.xlu1 %793 }
 0x9d6   :  { %806 = vmatpush.bf16.msra.mxu3 %v794_v9  ;;  %v2140_v9 = vld [vmem:[%s2969_s22] sm:$0xff] }
 0x9d7   :  { %980 = vmatpush.bf16.msrb.mxu1 %v2140_v9 }
 0x9da   :  { %v2230_v10 = vpop.eup %2229 }
 0x9db   :  { %v737_v11 = vmul.f32 %v2230_v10, %v2222_v56  ;;  %v789_v13 = vpop.xlane.xlu2 %788  ;;  %v897_v10 = vunpack.c.l.bf16 %v896_v7 }
 0x9dc   :  { %2231 = vrcp.f32 %v789_v13 }
 0x9dd   :  { %v740_v57 = vpop.permute.xlu1 %739  ;;  %v738_v14 = vpack.c.bf16 %v737_v11, %v737_v11  ;;  %v898_v11 = vperm.slane %v897_v10, 0 }
 0x9de   :  { %752 = vmatpush.bf16.msra.mxu0 %v740_v57 }
 0x9e1   :  { %1957 = vmatmul.msk.bf16.vlgmr.msra.gmra.mxu0 %vm446_vm11, %v738_v14 }
 0x9e2   :  { %v2232_v15 = vpop.eup %2231  ;;  %920 = vmatpush.bf16.msrb.mxu0 %v2139_v50 }
 0x9e3   :  { %v791_v16 = vmul.f32 %v2232_v15, %v2224_v62  ;;  %v2183_v62 = vld [vmem:[%s2965_s18] ss:$0 sm:$0xff]  ;;  %s3059_s18 = smov 40  }
 0x9e5   :  { %v792_v17 = vpack.c.bf16 %v791_v16, %v791_v16 }
 0x9e7   :  { %1959 = vmatmul.msk.bf16.vlgmr.msra.gmra.mxu3 %vm446_vm11, %v792_v17 }
 0x9ec   :  { %v645_v18 = vpop.f32.mrf.mxu0 }
 0x9f4   :  { %v647_v19 = vpop.f32.mrf.mxu0 }
 0xa4c   :  { %v700_v20 = vpop.f32.mrf.mxu3 }
 0xa4d   :  { %813 = vrot.lane.b32.xlu1 %v700_v20, %s3051_s1 }
 0xa54   :  { %v702_v21 = vpop.f32.mrf.mxu3 }
 0xa5e   :  { %v754_v22 = vpop.f32.mrf.mxu0 }
 0xa5f   :  { %817 = vrot.lane.b32.xlu2 %v754_v22, %s3052_s27 }
 0xa66   :  { %v756_v23 = vpop.f32.mrf.mxu0 }
 0xa6a   :  { %v808_v24 = vpop.f32.mrf.mxu3 }
 0xa6b   :  { %821 = vrot.lane.b32.xlu0 %v808_v24, %s3053_s30 }
 0xa72   :  { %v810_v25 = vpop.f32.mrf.mxu3 }
 0xa73   :  { %v987_v25 = vld [vmem:[%s2970_s23] sm:$0x1] }
 0xa74   :  { %v988_v26 = vunpack.c.l.bf16 %v987_v25 }
 0xa76   :  { %v989_v27 = vperm.slane %v988_v26, 0 }
 0xab9   :  { %v818_v31 = vpop.permute.xlu2 %817 }
 0xabf   :  { %v814_v29 = vpop.permute.xlu1 %813 }
 0xac0   :  { %v824_v30 = vsel %vm211_vm8, %v645_v18, %v814_v29 }
 0xac1   :  { %v825_v33 = vsel %vm446_vm11, %v824_v30, %v818_v31 }
 0xadd   :  { %v822_v32 = vpop.permute.xlu0 %821 }
 0xade   :  { %v826_v34 = vsel %vm448_vm12, %v825_v33, %v822_v32 }
 0xadf   :  { %v827_v36 = vpack.c.bf16 %v826_v34, %v826_v34 }
 0xae1   :  { %1968 = vmatmul.msk.bf16.vlgmr.msrb.gmra.mxu2 %vm88_vm0, %v827_v36 }
 0xb64   :  { %v854_v28 = vpop.f32.mrf.mxu2 }
 0xb65   :  { %v855_v41 = vadd.f32 %v854_v28, %v829_v39  ;;  %v2145_v28 = vld [vmem:[%s3038_s5 + $0x18] sm:$0xff] }
 0xb66   :  { %1056 = vmatpush.bf16.msrb.mxu3 %v2145_v28 }
 0xb67   :  { %v2665_v42 = vadd.f32 %v855_v41, %v2568_v35  ;;  %v2138_v35 = vld [vmem:[%s2967_s20] sm:$0xff]  ;;  %v2144_v41 = vld [vmem:[%s3038_s5 + $0x10] sm:$0xff] }
 0xb68   :  { %921 = vmatpush.bf16.msrb.mxu0 %v2138_v35  ;;  %v2185_v35 = vld [vmem:[%s3039_s3 + $0x1] ss:$0 sm:$0xff]  ;;  %s3054_s3 = smov 120  }
 0xb69   :  { %v861_v43 = vsel %vm88_vm0, %v2665_v42, 0.0 }
 0xb6a   :  { %862 = vadd.xlane.f32.xlu1 %v861_v43  ;;  %1057 = vmatpush.bf16.msrb.mxu3 %v2144_v41 }
 0xb6c   :  { %v856_v44 = vpop.f32.mrf.mxu2 }
 0xbdd   :  { %v863_v45 = vpop.xlane.xlu1 %862 }
 0xbde   :  { %v864_v46 = vmul.f32 %v863_v45, %v2461_v8 }
 0xbe0   :  { %v865_v47 = vsub.f32 %v2665_v42, %v864_v46 }
 0xbe2   :  { %v866_v48 = vmul.f32 %v865_v47, %v865_v47 }
 0xbe4   :  { %v867_v49 = vsel %vm88_vm0, %v866_v48, 0.0 }
 0xbe5   :  { %868 = vadd.xlane.f32.xlu2 %v867_v49 }
 0xc58   :  { %v869_v51 = vpop.xlane.xlu2 %868 }
 0xc59   :  { %v870_v52 = vmul.f32 %v869_v51, %v2461_v8 }
 0xc5b   :  { %v871_v53 = vadd.f32 1e-05, %v870_v52 }
 0xc5d   :  { %2233 = vrsqrt.f32 %v871_v53  ;;  %vm878_vm2 = vweird.f32 %v871_v53 }
 0xc63   :  { %v2234_v54 = vpop.eup %2233 }
 0xc64   :  { %v873_v55 = vmul.f32 %v2234_v54, %v871_v53  ;;  %vm879_vm1 = vweird.f32 %v2234_v54  ;;  %v2186_v53 = vld [vmem:[%s3040_s8 + $0x1] ss:$0 sm:$0xff]  ;;  %s3055_s8 = smov 112  }
 0xc65   :  { %vm880_vm3 = vmor %vm878_vm2, %vm879_vm1 }
 0xc66   :  { %v874_v56 = vmul.f32 %v2234_v54, %v873_v55 }
 0xc68   :  { %v875_v59 = vmul.f32 0.5, %v874_v56 }
 0xc6a   :  { %v876_v60 = vsub.f32 1.5, %v875_v59  ;;  %v2001_v59 = vld [vmem:[%s3041_s0 + $0x1] sm:$0x1]  ;;  %s3056_s0 = smov 64  }
 0xc6c   :  { %v877_v61 = vmul.f32 %v2234_v54, %v876_v60  ;;  %v1033_v60 = vunpack.c.l.bf16 %v2001_v59 }
 0xc6e   :  { %v881_v63 = vsel %vm880_vm3, %v2234_v54, %v877_v61  ;;  %v1034_v61 = vperm.slane %v1033_v60, 0 }
 0xc6f   :  { %v882_v58 = vmul.f32 %v881_v63, %v865_v47 }
 0xc71   :  { %v886_v1 = vmul.f32 %v2183_v62, %v882_v58 }
 0xc73   :  { %v890_v2 = vadd.f32 %v2184_v0, %v886_v1 }
 0xc75   :  { %v895_v3 = vpack.c.bf16 %v890_v2, %v890_v2 }
 0xc77   :  { %1977 = vmatmul.msk.bf16.vlgmr.msrb.gmra.mxu0 %vm88_vm0, %v895_v3 }
 0xcf4   :  { %v923_v13 = vpop.f32.mrf.mxu0 }
 0xcf5   :  { %v924_v57 = vadd.f32 %v923_v13, %v898_v11 }
 0xcf7   :  { %v927_v14 = vmul.f32 %v924_v57, %v924_v57 }
 0xcf9   :  { %v928_v15 = vmul.f32 %v927_v14, %v924_v57 }
 0xcfb   :  { %v929_v16 = vmul.f32 0.044715, %v928_v15 }
 0xcfc   :  { %v925_v17 = vpop.f32.mrf.mxu0 }
 0xcfd   :  { %v930_v18 = vadd.f32 %v929_v16, %v924_v57 }
 0xcff   :  { %v931_v19 = vmul.f32 0.7978846, %v930_v18 }
 0xd01   :  { %2235 = vtanh.f32 %v931_v19 }
 0xd07   :  { %v2236_v20 = vpop.eup %2235 }
 0xd08   :  { %v933_v21 = vadd.f32 1.0, %v2236_v20 }
 0xd0a   :  { %v934_v22 = vmul.f32 0.5, %v933_v21 }
 0xd0c   :  { %v935_v23 = vmul.f32 %v934_v22, %v924_v57 }
 0xd0e   :  { %v944_v24 = vpack.c.bf16 %v935_v23, %v935_v23 }
 0xd10   :  { %1994 = vmatmul.msk.bf16.vlgmr.msrb.gmra.mxu1 %vm969_vm4, %v944_v24 }
 0xd8d   :  { %v982_v29 = vpop.f32.mrf.mxu1 }
 0xd8e   :  { %v986_v30 = vadd.f32 %v982_v29, %v2665_v42 }
 0xd90   :  { %v2706_v31 = vadd.f32 %v989_v27, %v986_v30 }
 0xd92   :  { %v995_v32 = vsel %vm88_vm0, %v2706_v31, 0.0 }
 0xd93   :  { %996 = vadd.xlane.f32.xlu0 %v995_v32 }
 0xd95   :  { %v984_v33 = vpop.f32.mrf.mxu1 }
 0xe06   :  { %v997_v34 = vpop.xlane.xlu0 %996 }
 0xe07   :  { %v998_v36 = vmul.f32 %v997_v34, %v2461_v8 }
 0xe09   :  { %v999_v37 = vsub.f32 %v2706_v31, %v998_v36 }
 0xe0b   :  { %v1000_v38 = vmul.f32 %v999_v37, %v999_v37 }
 0xe0d   :  { %v1001_v39 = vsel %vm88_vm0, %v1000_v38, 0.0 }
 0xe0e   :  { %1002 = vadd.xlane.f32.xlu1 %v1001_v39 }
 0xe81   :  { %v1003_v42 = vpop.xlane.xlu1 %1002 }
 0xe82   :  { %v1004_v43 = vmul.f32 %v1003_v42, %v2461_v8 }
 0xe84   :  { %v1005_v44 = vadd.f32 1e-05, %v1004_v43 }
 0xe86   :  { %2237 = vrsqrt.f32 %v1005_v44  ;;  %vm1012_vm6 = vweird.f32 %v1005_v44 }
 0xe8c   :  { %v2238_v45 = vpop.eup %2237 }
 0xe8d   :  { %v1007_v46 = vmul.f32 %v2238_v45, %v1005_v44  ;;  %vm1013_vm5 = vweird.f32 %v2238_v45 }
 0xe8e   :  { %vm1014_vm7 = vmor %vm1012_vm6, %vm1013_vm5 }
 0xe8f   :  { %v1008_v47 = vmul.f32 %v2238_v45, %v1007_v46 }
 0xe91   :  { %v1009_v48 = vmul.f32 0.5, %v1008_v47 }
 0xe93   :  { %v1010_v49 = vsub.f32 1.5, %v1009_v48 }
 0xe95   :  { %v1011_v50 = vmul.f32 %v2238_v45, %v1010_v49 }
 0xe97   :  { %v1015_v51 = vsel %vm1014_vm7, %v2238_v45, %v1011_v50 }
 0xe98   :  { %v1016_v52 = vmul.f32 %v1015_v51, %v999_v37 }
 0xe9a   :  { %v1020_v54 = vmul.f32 %v2185_v35, %v1016_v52 }
 0xe9c   :  { %v1024_v55 = vadd.f32 %v2186_v53, %v1020_v54 }
 0xe9e   :  { %v1030_v56 = vpack.c.bf16 %v1024_v55, %v1024_v55 }
 0xea0   :  { %2010 = vmatmul.msk.bf16.vlgmr.msrb.gmra.mxu3 %vm88_vm0, %v1030_v56 }
 0xf23   :  { %v1059_v62 = vpop.f32.mrf.mxu3 }
 0xf24   :  { %v1060_v63 = vadd.f32 %v1059_v62, %v1034_v61 }
 0xf26   :  { %v2730_v58 = vpack.c.bf16 %v1060_v63, %v1060_v63 }
 0xf28   :  { %1126 = vrot.lane.b32.xlu0 %v2730_v58, %s3054_s3  ;;  %1128 = vrot.lane.b32.xlu2 %v2730_v58, %s3048_s6 }
 0xf29   :  { %1072 = vrot.lane.b32.xlu1 %v2730_v58, %s3047_s29 }
 0xf2b   :  { %v1061_v0 = vpop.f32.mrf.mxu3 }
 0xf30   :  { %1240 = vrot.lane.b32.xlu0 %v2730_v58, %s3049_s28  ;;  %1182 = vrot.lane.b32.xlu2 %v2730_v58, %s3055_s8 }
 0xf31   :  { %1184 = vrot.lane.b32.xlu1 %v2730_v58, %s3050_s10 }
 0xf39   :  { %1238 = vrot.lane.b32.xlu1 %v2730_v58, %s3046_s7 }
 0xf82   :  { %v1129_v1 = vpop.permute.xlu2 %1128 }
 0xf83   :  { %v1134_v2 = vsel %vm211_vm8, %v1129_v1, 0 }
 0xf84   :  { %1143 = vmatpush.bf16.xpose.msra.mxu1 %v1134_v2 }
 0xf8a   :  { %v1183_v13 = vpop.permute.xlu2 %1182 }
 0xf9a   :  { %v1127_v3 = vpop.permute.xlu0 %1126 }
 0xf9b   :  { %v1073_v4 = vpop.permute.xlu1 %1072  ;;  %2018 = vmatmul.msk.bf16.vlgmr.msra.gmra.mxu1 %vm211_vm8, %v1127_v3 }
 0xf9c   :  { %v1078_v5 = vsel %vm211_vm8, %v1073_v4, 0 }
 0xf9d   :  { %1087 = vmatpush.bf16.xpose.msra.mxu2 %v1078_v5 }
 0xfa2   :  { %v1241_v6 = vpop.permute.xlu0 %1240 }
 0xfa3   :  { %v1246_v7 = vsel %vm211_vm8, %v1241_v6, 0  ;;  %v1185_v9 = vpop.permute.xlu1 %1184 }
 0xfa4   :  { %v1190_v10 = vsel %vm211_vm8, %v1185_v9, 0  ;;  %2016 = vmatmul.msk.bf16.vlgmr.msra.gmra.mxu2 %vm211_vm8, %v2730_v58  ;;  %1255 = vmatpush.bf16.xpose.msrb.mxu1 %v1246_v7 }
 0xfa5   :  { %1199 = vmatpush.bf16.xpose.msrb.mxu2 %v1190_v10 }
 0xfab   :  { %v1239_v11 = vpop.permute.xlu1 %1238 }
 0xfac   :  { %2022 = vmatmul.msk.bf16.vlgmr.msrb.gmra.mxu1 %vm211_vm8, %v1239_v11 }
 0xfb4   :  { %2020 = vmatmul.msk.bf16.vlgmr.msrb.gmra.mxu2 %vm211_vm8, %v1183_v13 }
0x1018   :  { %v1145_v57 = vpop.f32.mrf.mxu1 }
0x1019   :  { %v1146_v14 = vadd.f32 %v1145_v57, %v2521_v12 }
0x101b   :  { %v1149_v15 = vsel %vm211_vm8, %v1146_v14, -inf }
0x101c   :  { %1150 = vmax.xlane.f32.xlu0 %v1149_v15 }
0x1020   :  { %v1147_v16 = vpop.f32.mrf.mxu1 }
0x1027   :  { %v1089_v17 = vpop.f32.mrf.mxu2 }
0x1028   :  { %v1090_v18 = vadd.f32 %v1089_v17, %v2521_v12 }
0x1029   :  { %v1257_v19 = vpop.f32.mrf.mxu1 }
0x102a   :  { %v1258_v20 = vadd.f32 %v1257_v19, %v2521_v12  ;;  %v1093_v21 = vsel %vm211_vm8, %v1090_v18, -inf }
0x102b   :  { %1094 = vmax.xlane.f32.xlu2 %v1093_v21  ;;  %v2146_v21 = vld [vmem:[%s3042_s9 + $0x10] sm:$0xff] }
0x102c   :  { %v1261_v22 = vsel %vm211_vm8, %v1258_v20, -inf }
0x102d   :  { %1262 = vmax.xlane.f32.xlu1 %v1261_v22 }
0x102f   :  { %v1091_v23 = vpop.f32.mrf.mxu2 }
0x1030   :  { %1105 = vrot.lane.b32.xlu0 %v2730_v58, %s3056_s0 }
0x1031   :  { %v1259_v24 = vpop.f32.mrf.mxu1 }
0x1037   :  { %v1201_v25 = vpop.f32.mrf.mxu2 }
0x1038   :  { %v1202_v26 = vadd.f32 %v1201_v25, %v2521_v12 }
0x103a   :  { %v1205_v27 = vsel %vm211_vm8, %v1202_v26, -inf }
0x103b   :  { %1206 = vmax.xlane.f32.xlu2 %v1205_v27 }
0x103f   :  { %v1203_v29 = vpop.f32.mrf.mxu2 }
0x1053   :  { %1161 = vrot.lane.b32.xlu2 %v2730_v58, %s3057_s16  ;;  %s3065_s16 = sld [smem:[#allocation20_spill]] }
0x108f   :  { %v1151_v30 = vpop.xlane.xlu0 %1150 }
0x1090   :  { %v1152_v32 = vsub.f32 %v1146_v14, %v1151_v30  ;;  %v2015_v30 = vld [vmem:[%s3043_s4 + $0x1] sm:$0x1] }
0x1092   :  { %v1153_v33 = vmul.f32 1.442695, %v1152_v32  ;;  %v1310_v32 = vunpack.c.l.bf16 %v2015_v30 }
0x1094   :  { %2239 = vpow2.f32 %v1153_v33  ;;  %v1311_v33 = vperm.slane %v1310_v32, 0 }
0x109a   :  { %v2240_v34 = vpop.eup %2239 }
0x109b   :  { %v1155_v36 = vsel %vm211_vm8, %v2240_v34, 0.0 }
0x109c   :  { %1156 = vadd.xlane.f32.xlu0 %v1155_v36 }
0x109e   :  { %v1095_v37 = vpop.xlane.xlu2 %1094 }
0x109f   :  { %v1096_v38 = vsub.f32 %v1090_v18, %v1095_v37 }
0x10a0   :  { %v1263_v39 = vpop.xlane.xlu1 %1262 }
0x10a1   :  { %v1097_v28 = vmul.f32 1.442695, %v1096_v38  ;;  %v1264_v12 = vsub.f32 %v1258_v20, %v1263_v39  ;;  %v2147_v20 = vld [vmem:[%s3042_s9 + $0x18] sm:$0xff]  ;;  %s3061_s9 = sld [smem:[#allocation17_spill]] }
0x10a2   :  { %v1106_v41 = vpop.permute.xlu0 %1105  ;;  %1333 = vmatpush.bf16.msra.mxu2 %v2147_v20 }
0x10a3   :  { %2241 = vpow2.f32 %v1097_v28  ;;  %v1111_v42 = vsel %vm248_vm10, %v1106_v41, 0  ;;  %v1265_v43 = vmul.f32 1.442695, %v1264_v12  ;;  %v2151_v28 = vld [vmem:[%s2961_s14 + $0x18] sm:$0xff]  ;;  %v2150_v12 = vld [vmem:[%s2961_s14 + $0x10] sm:$0xff] }
0x10a4   :  { %1120 = vmatpush.bf16.msra.mxu0 %v1111_v42  ;;  %1440 = vmatpush.bf16.msra.mxu1 %v2151_v28 }
0x10a5   :  { %2243 = vpow2.f32 %v1265_v43 }
0x10a6   :  { %1334 = vmatpush.bf16.msra.mxu2 %v2146_v21 }
0x10a8   :  { %1441 = vmatpush.bf16.msra.mxu1 %v2150_v12 }
0x10a9   :  { %v2242_v44 = vpop.eup %2241 }
0x10aa   :  { %v1099_v45 = vsel %vm211_vm8, %v2242_v44, 0.0 }
0x10ab   :  { %1100 = vadd.xlane.f32.xlu1 %v1099_v45  ;;  %v2244_v47 = vpop.eup %2243  ;;  %2062 = vmatmul.msk.bf16.vlgmr.msra.gmra.mxu1 %vm88_vm0, %v2581_v40  ;;  %v2149_v45 = vld [vmem:[%s2959_s12 + $0x18] sm:$0xff]  ;;  %v2053_v40 = vld [vmem:[%s2962_s15 + $0x1] sm:$0x1] }
0x10ac   :  { %v1267_v50 = vsel %vm211_vm8, %v2244_v47, 0.0 }
0x10ae   :  { %v1207_v46 = vpop.xlane.xlu2 %1206 }
0x10af   :  { %v1208_v48 = vsub.f32 %v1202_v26, %v1207_v46  ;;  %v2148_v46 = vld [vmem:[%s2959_s12 + $0x10] sm:$0xff] }
0x10b0   :  { %1217 = vrot.lane.b32.xlu0 %v2730_v58, %s3058_s17 }
0x10b1   :  { %v1209_v49 = vmul.f32 1.442695, %v1208_v48 }
0x10b3   :  { %2245 = vpow2.f32 %v1209_v49  ;;  %1268 = vadd.xlane.f32.xlu1 %v1267_v50  ;;  %v1420_v49 = vunpack.c.l.bf16 %v2053_v40 }
0x10b6   :  { %v1162_v35 = vpop.permute.xlu2 %1161 }
0x10b7   :  { %v1167_v51 = vsel %vm248_vm10, %v1162_v35, 0  ;;  %v1421_v35 = vperm.slane %v1420_v49, 0 }
0x10b8   :  { %1176 = vmatpush.bf16.msra.mxu3 %v1167_v51 }
0x10b9   :  { %v2246_v52 = vpop.eup %2245 }
0x10ba   :  { %v1211_v53 = vsel %vm211_vm8, %v2246_v52, 0.0 }
0x10bb   :  { %1212 = vadd.xlane.f32.xlu1 %v1211_v53 }
0x10d4   :  { %1273 = vrot.lane.b32.xlu1 %v2730_v58, %s3059_s18  ;;  %s3066_s18 = sld [smem:[#allocation21_spill]] }
0x110f   :  { %v1157_v54 = vpop.xlane.xlu0 %1156 }
0x1110   :  { %2247 = vrcp.f32 %v1157_v54 }
0x1116   :  { %v2248_v55 = vpop.eup %2247 }
0x1117   :  { %v1159_v56 = vmul.f32 %v2248_v55, %v2240_v34 }
0x1119   :  { %v1160_v59 = vpack.c.bf16 %v1159_v56, %v1159_v56 }
0x111b   :  { %2019 = vmatmul.msk.bf16.vlgmr.msra.gmra.mxu3 %vm211_vm8, %v1160_v59 }
0x111e   :  { %v1101_v60 = vpop.xlane.xlu1 %1100 }
0x111f   :  { %2249 = vrcp.f32 %v1101_v60 }
0x1122   :  { %v1218_v61 = vpop.permute.xlu0 %1217 }
0x1123   :  { %v1223_v62 = vsel %vm248_vm10, %v1218_v61, 0 }
0x1124   :  { %1232 = vmatpush.bf16.msrb.mxu0 %v1223_v62 }
0x1125   :  { %v2250_v63 = vpop.eup %2249 }
0x1126   :  { %v1103_v0 = vmul.f32 %v2250_v63, %v2242_v44  ;;  %v1269_v1 = vpop.xlane.xlu1 %1268 }
0x1128   :  { %v1104_v2 = vpack.c.bf16 %v1103_v0, %v1103_v0 }
0x112a   :  { %2017 = vmatmul.msk.bf16.vlgmr.msra.gmra.mxu0 %vm211_vm8, %v1104_v2 }
0x112b   :  { %1406 = vmatpush.bf16.msra.mxu0 %v2149_v45 }
0x112e   :  { %v1213_v58 = vpop.xlane.xlu1 %1212 }
0x112f   :  { %2251 = vrcp.f32 %v1213_v58  ;;  %1407 = vmatpush.bf16.msra.mxu0 %v2148_v46 }
0x1130   :  { %2253 = vrcp.f32 %v1269_v1  ;;  %v2187_v1 = vld [vmem:[%s3045_s2 + $0x1] ss:$0 sm:$0xff] }
0x1135   :  { %v2252_v3 = vpop.eup %2251 }
0x1136   :  { %v1215_v4 = vmul.f32 %v2252_v3, %v2246_v52  ;;  %v2254_v6 = vpop.eup %2253  ;;  %v2188_v3 = vld [vmem:[%s3060_s24 + $0x1] ss:$0 sm:$0xff] }
0x1137   :  { %v1271_v7 = vmul.f32 %v2254_v6, %v2244_v47  ;;  %v1443_v47 = vpop.f32.mrf.mxu1 }
0x1138   :  { %v1216_v5 = vpack.c.bf16 %v1215_v4, %v1215_v4  ;;  %v1444_v52 = vadd.f32 %v1443_v47, %v1421_v35 }
0x1139   :  { %v1272_v11 = vpack.c.bf16 %v1271_v7, %v1271_v7 }
0x113a   :  { %2021 = vmatmul.msk.bf16.vlgmr.msrb.gmra.mxu0 %vm211_vm8, %v1216_v5 }
0x113f   :  { %v1445_v53 = vpop.f32.mrf.mxu1 }
0x1140   :  { %v1446_v54 = vadd.f32 %v1445_v53, %v1421_v35 }
0x1142   :  { %v2825_v55 = vpack.c.bf16 %v1446_v54, %v1444_v52 }
0x1144   :  { %1511 = vrot.lane.b32.xlu1 %v2825_v55, %s3054_s3  ;;  %v1461_v60 = vsel %vm211_vm8, %v2825_v55, 0 }
0x1146   :  { %v1274_v9 = vpop.permute.xlu1 %1273 }
0x1147   :  { %v1279_v10 = vsel %vm248_vm10, %v1274_v9, 0  ;;  %v2039_v9 = vld [vmem:[%s3061_s9 + $0x1] sm:$0x1] }
0x1148   :  { %1288 = vmatpush.bf16.msrb.mxu3 %v1279_v10 }
0x114b   :  { %2023 = vmatmul.msk.bf16.vlgmr.msrb.gmra.mxu3 %vm211_vm8, %v1272_v11  ;;  %v1383_v11 = vunpack.c.l.bf16 %v2039_v9 }
0x114c   :  { %1470 = vmatpush.bf16.xpose.msra.mxu3 %v1461_v60  ;;  %1565 = vrot.lane.b32.xlu1 %v2825_v55, %s3055_s8 }
0x119e   :  { %v1178_v13 = vpop.f32.mrf.mxu3 }
0x119f   :  { %1295 = vrot.lane.b32.xlu2 %v1178_v13, %s3051_s1  ;;  %v1384_v13 = vperm.slane %v1383_v11, 0 }
0x11a6   :  { %v1180_v57 = vpop.f32.mrf.mxu3 }
0x11a7   :  { %v1122_v14 = vpop.f32.mrf.mxu0 }
0x11af   :  { %v1124_v15 = vpop.f32.mrf.mxu0 }
0x11b6   :  { %v1512_v7 = vpop.permute.xlu1 %1511 }
0x11b7   :  { %v1234_v16 = vpop.f32.mrf.mxu0  ;;  %v1517_v10 = vsel %vm211_vm8, %v1512_v7, 0 }
0x11b8   :  { %1299 = vrot.lane.b32.xlu0 %v1234_v16, %s3052_s27  ;;  %1526 = vmatpush.bf16.xpose.msrb.mxu0 %v1517_v10 }
0x11be   :  { %v1566_v57 = vpop.permute.xlu1 %1565 }
0x11bf   :  { %v1236_v17 = vpop.f32.mrf.mxu0 }
0x11ce   :  { %v1290_v18 = vpop.f32.mrf.mxu3 }
0x11cf   :  { %1303 = vrot.lane.b32.xlu2 %v1290_v18, %s3053_s30 }
0x11d6   :  { %v1292_v19 = vpop.f32.mrf.mxu3 }
0x11f9   :  { %v1296_v22 = vpop.permute.xlu2 %1295 }
0x11fa   :  { %v1306_v23 = vsel %vm211_vm8, %v1122_v14, %v1296_v22  ;;  %v1571_v14 = vsel %vm211_vm8, %v1566_v57, 0 }
0x11fb   :  { %1580 = vmatpush.bf16.xpose.msrb.mxu3 %v1571_v14 }
0x1229   :  { %v1304_v25 = vpop.permute.xlu2 %1303 }
0x122a   :  { %v1300_v24 = vpop.permute.xlu0 %1299 }
0x122b   :  { %v1307_v26 = vsel %vm446_vm11, %v1306_v23, %v1300_v24 }
0x122c   :  { %v1308_v27 = vsel %vm448_vm12, %v1307_v26, %v1304_v25 }
0x122d   :  { %v1309_v29 = vpack.c.bf16 %v1308_v27, %v1308_v27 }
0x122f   :  { %2032 = vmatmul.msk.bf16.vlgmr.msra.gmra.mxu2 %vm88_vm0, %v1309_v29 }
0x12b2   :  { %v1336_v34 = vpop.f32.mrf.mxu2 }
0x12b3   :  { %v1337_v36 = vadd.f32 %v1336_v34, %v1311_v33 }
0x12b5   :  { %v2800_v37 = vadd.f32 %v1337_v36, %v2706_v31 }
0x12b7   :  { %v1345_v38 = vsel %vm88_vm0, %v2800_v37, 0.0 }
0x12b8   :  { %1346 = vadd.xlane.f32.xlu0 %v1345_v38 }
0x12ba   :  { %v1338_v39 = vpop.f32.mrf.mxu2 }
0x132b   :  { %v1347_v31 = vpop.xlane.xlu0 %1346 }
0x132c   :  { %v1348_v41 = vmul.f32 %v1347_v31, %v2461_v8 }
0x132e   :  { %v1349_v42 = vsub.f32 %v2800_v37, %v1348_v41 }
0x1330   :  { %v1350_v43 = vmul.f32 %v1349_v42, %v1349_v42 }
0x1332   :  { %v1351_v44 = vsel %vm88_vm0, %v1350_v43, 0.0 }
0x1333   :  { %1352 = vadd.xlane.f32.xlu2 %v1351_v44 }
0x13a6   :  { %v1353_v48 = vpop.xlane.xlu2 %1352 }
0x13a7   :  { %v1354_v50 = vmul.f32 %v1353_v48, %v2461_v8 }
0x13a9   :  { %v1355_v51 = vadd.f32 1e-05, %v1354_v50 }
0x13ab   :  { %2255 = vrsqrt.f32 %v1355_v51  ;;  %vm1362_vm10 = vweird.f32 %v1355_v51 }
0x13b1   :  { %v2256_v56 = vpop.eup %2255 }
0x13b2   :  { %v1357_v59 = vmul.f32 %v2256_v56, %v1355_v51  ;;  %vm1363_vm9 = vweird.f32 %v2256_v56 }
0x13b3   :  { %vm1364_vm13 = vmor %vm1362_vm10, %vm1363_vm9 }
0x13b4   :  { %v1358_v61 = vmul.f32 %v2256_v56, %v1357_v59 }
0x13b6   :  { %v1359_v62 = vmul.f32 0.5, %v1358_v61 }
0x13b8   :  { %v1360_v63 = vsub.f32 1.5, %v1359_v62 }
0x13ba   :  { %v1361_v0 = vmul.f32 %v2256_v56, %v1360_v63 }
0x13bc   :  { %v1365_v2 = vsel %vm1364_vm13, %v2256_v56, %v1361_v0 }
0x13bd   :  { %v1366_v58 = vmul.f32 %v1365_v2, %v1349_v42 }
0x13bf   :  { %v1370_v4 = vmul.f32 %v2187_v1, %v1366_v58 }
0x13c1   :  { %v1374_v5 = vadd.f32 %v2188_v3, %v1370_v4 }
0x13c3   :  { %v1380_v6 = vpack.c.bf16 %v1374_v5, %v1374_v5 }
0x13c5   :  { %2048 = vmatmul.msk.bf16.vlgmr.msra.gmra.mxu0 %vm88_vm0, %v1380_v6 }
0x1442   :  { %v1409_v15 = vpop.f32.mrf.mxu0 }
0x1443   :  { %v1410_v16 = vadd.f32 %v1409_v15, %v1384_v13 }
0x1445   :  { %v1455_v17 = vpack.c.bf16 %v1410_v16, %v1410_v16 }
0x1447   :  { %1617 = vrot.lane.b32.xlu0 %v1455_v17, %s3046_s7  ;;  %1509 = vrot.lane.b32.xlu1 %v1455_v17, %s3054_s3 }
0x1448   :  { %2068 = vmatmul.msk.bf16.vlgmr.msra.gmra.mxu3 %vm211_vm8, %v1455_v17 }
0x144a   :  { %v1411_v18 = vpop.f32.mrf.mxu0 }
0x144f   :  { %1563 = vrot.lane.b32.xlu1 %v1455_v17, %s3055_s8  ;;  %s3064_s8 = sld [smem:[#allocation22_spill]] }
0x1457   :  { %1619 = vrot.lane.b32.xlu1 %v2825_v55, %s3046_s7 }
0x14b9   :  { %v1510_v19 = vpop.permute.xlu1 %1509  ;;  %v1618_v25 = vpop.permute.xlu0 %1617 }
0x14ba   :  { %2070 = vmatmul.msk.bf16.vlgmr.msrb.gmra.mxu0 %vm211_vm8, %v1510_v19 }
0x14c1   :  { %v1564_v20 = vpop.permute.xlu1 %1563 }
0x14c2   :  { %2072 = vmatmul.msk.bf16.vlgmr.msrb.gmra.mxu3 %vm211_vm8, %v1564_v20 }
0x14c9   :  { %v1620_v21 = vpop.permute.xlu1 %1619 }
0x14ca   :  { %v1625_v22 = vsel %vm211_vm8, %v1620_v21, 0 }
0x14cb   :  { %v1472_v23 = vpop.f32.mrf.mxu3  ;;  %1634 = vmatpush.bf16.xpose.msra.mxu0 %v1625_v22 }
0x14cc   :  { %v1476_v24 = vsel %vm446_vm11, %v1472_v23, -inf }
0x14cd   :  { %1477 = vmax.xlane.f32.xlu2 %v1476_v24 }
0x14d2   :  { %2074 = vmatmul.msk.bf16.vlgmr.msra.gmra.mxu0 %vm211_vm8, %v1618_v25 }
0x14d3   :  { %v1474_v26 = vpop.f32.mrf.mxu3 }
0x1537   :  { %v1528_v27 = vpop.f32.mrf.mxu0 }
0x1538   :  { %v1532_v29 = vsel %vm446_vm11, %v1528_v27, -inf }
0x1539   :  { %1533 = vmax.xlane.f32.xlu1 %v1532_v29 }
0x153f   :  { %v1530_v30 = vpop.f32.mrf.mxu0 }
0x1540   :  { %v1478_v32 = vpop.xlane.xlu2 %1477 }
0x1541   :  { %v1479_v33 = vsub.f32 %v1472_v23, %v1478_v32 }
0x1543   :  { %v1480_v34 = vmul.f32 1.442695, %v1479_v33 }
0x1545   :  { %2257 = vpow2.f32 %v1480_v34  ;;  %v1582_v36 = vpop.f32.mrf.mxu3 }
0x1546   :  { %v1586_v38 = vsel %vm446_vm11, %v1582_v36, -inf }
0x1547   :  { %1587 = vmax.xlane.f32.xlu2 %v1586_v38 }
0x154b   :  { %v2258_v39 = vpop.eup %2257 }
0x154c   :  { %v1482_v28 = vsel %vm446_vm11, %v2258_v39, 0.0 }
0x154d   :  { %1483 = vadd.xlane.f32.xlu0 %v1482_v28  ;;  %v1584_v12 = vpop.f32.mrf.mxu3 }
0x154f   :  { %v1636_v31 = vpop.f32.mrf.mxu0 }
0x1550   :  { %v1640_v41 = vsel %vm446_vm11, %v1636_v31, -inf }
0x1551   :  { %1641 = vmax.xlane.f32.xlu2 %v1640_v41 }
0x1552   :  { %1544 = vrot.lane.b32.xlu1 %v2825_v55, %s3048_s6 }
0x1557   :  { %v1638_v42 = vpop.f32.mrf.mxu0 }
0x155a   :  { %1652 = vrot.lane.b32.xlu1 %v2825_v55, %s3049_s28 }
0x15ac   :  { %v1534_v43 = vpop.xlane.xlu1 %1533 }
0x15ad   :  { %v1535_v44 = vsub.f32 %v1528_v27, %v1534_v43 }
0x15af   :  { %v1536_v45 = vmul.f32 1.442695, %v1535_v44 }
0x15b1   :  { %2259 = vpow2.f32 %v1536_v45 }
0x15b7   :  { %v2260_v46 = vpop.eup %2259 }
0x15b8   :  { %v1538_v40 = vsel %vm446_vm11, %v2260_v46, 0.0 }
0x15b9   :  { %1539 = vadd.xlane.f32.xlu2 %v1538_v40 }
0x15ba   :  { %v1588_v47 = vpop.xlane.xlu2 %1587 }
0x15bb   :  { %v1589_v54 = vsub.f32 %v1582_v36, %v1588_v47 }
0x15bd   :  { %v1590_v56 = vmul.f32 1.442695, %v1589_v54  ;;  %v2189_v54 = vld [vmem:[%s3065_s16 + $0x1] ss:$0 sm:$0xff] }
0x15c0   :  { %v1484_v61 = vpop.xlane.xlu0 %1483 }
0x15c4   :  { %v1545_v48 = vpop.permute.xlu1 %1544  ;;  %v1642_v49 = vpop.xlane.xlu2 %1641 }
0x15c5   :  { %v1643_v50 = vsub.f32 %v1636_v31, %v1642_v49  ;;  %1557 = vmatpush.bf16.msrb.mxu1 %v1545_v48 }
0x15c7   :  { %v1644_v35 = vmul.f32 1.442695, %v1643_v50 }
0x15c9   :  { %2261 = vpow2.f32 %v1644_v35 }
0x15ca   :  { %2263 = vpow2.f32 %v1590_v56 }
0x15cb   :  { %2265 = vrcp.f32 %v1484_v61 }
0x15cc   :  { %v1653_v51 = vpop.permute.xlu1 %1652 }
0x15cd   :  { %1665 = vmatpush.bf16.msra.mxu1 %v1653_v51 }
0x15cf   :  { %v2262_v52 = vpop.eup %2261 }
0x15d0   :  { %v1646_v53 = vsel %vm446_vm11, %v2262_v52, 0.0  ;;  %v2264_v59 = vpop.eup %2263 }
0x15d1   :  { %1489 = vrot.lane.b32.xlu2 %v2825_v55, %s3047_s29  ;;  %1647 = vadd.xlane.f32.xlu0 %v1646_v53  ;;  %v1592_v60 = vsel %vm446_vm11, %v2264_v59, 0.0  ;;  %v2266_v63 = vpop.eup %2265  ;;  %s3062_s29 = sld [smem:[#allocation18_spill]] }
0x15d2   :  { %v1486_v0 = vmul.f32 %v2266_v63, %v2258_v39 }
0x15d4   :  { %v1487_v3 = vpack.c.bf16 %v1486_v0, %v1486_v0  ;;  %v2159_v0 = vld [vmem:[%s2969_s22 + $0x38] sm:$0xff] }
0x15d5   :  { %1840 = vmatpush.bf16.msrb.mxu0 %v2159_v0 }
0x15d7   :  { %v2153_v22 = vld [vmem:[%s3062_s29 + $0x18] sm:$0xff]  ;;  %v2152_v23 = vld [vmem:[%s3062_s29 + $0x10] sm:$0xff]  ;;  %s3067_s29 = sld [smem:[#allocation23_spill]] }
0x15d8   :  { %1710 = vmatpush.bf16.msra.mxu3 %v2153_v22 }
0x15dc   :  { %1711 = vmatpush.bf16.msra.mxu3 %v2152_v23 }
0x15e5   :  { %1598 = vrot.lane.b32.xlu0 %v2825_v55, %s3050_s10  ;;  %s3063_s10 = sld [smem:[#allocation19_spill]] }
0x15eb   :  { %v2067_v33 = vld [vmem:[%s3063_s10 + $0x1] sm:$0x1] }
0x15ec   :  { %v1687_v34 = vunpack.c.l.bf16 %v2067_v33 }
0x15ee   :  { %v1688_v36 = vperm.slane %v1687_v34, 0 }
0x15fa   :  { %1593 = vadd.xlane.f32.xlu2 %v1592_v60  ;;  %v2190_v60 = vld [vmem:[%s3066_s18 + $0x1] ss:$0 sm:$0xff] }
0x162c   :  { %v1540_v62 = vpop.xlane.xlu2 %1539 }
0x162d   :  { %2267 = vrcp.f32 %v1540_v62 }
0x1633   :  { %v2268_v1 = vpop.eup %2267 }
0x1634   :  { %v1542_v2 = vmul.f32 %v2268_v1, %v2260_v46  ;;  %v1490_v58 = vpop.permute.xlu2 %1489  ;;  %v2155_v46 = vld [vmem:[%s3064_s8 + $0x18] sm:$0xff]  ;;  %v2158_v1 = vld [vmem:[%s2969_s22 + $0x30] sm:$0xff] }
0x1635   :  { %1502 = vmatpush.bf16.msrb.mxu2 %v1490_v58  ;;  %1841 = vmatpush.bf16.msrb.mxu0 %v2158_v1  ;;  %v2091_v58 = vld [vmem:[%s2968_s21 + $0x1] sm:$0x1] }
0x1636   :  { %v1543_v4 = vpack.c.bf16 %v1542_v2, %v1542_v2  ;;  %v2157_v2 = vld [vmem:[%s2969_s22 + $0x28] sm:$0xff] }
0x1638   :  { %2069 = vmatmul.msk.bf16.vlgmr.msrb.gmra.mxu2 %vm446_vm11, %v1487_v3  ;;  %2071 = vmatmul.msk.bf16.vlgmr.msrb.gmra.mxu1 %vm446_vm11, %v1543_v4  ;;  %v2156_v3 = vld [vmem:[%s2969_s22 + $0x20] sm:$0xff]  ;;  %v1760_v4 = vunpack.c.l.bf16 %v2091_v58 }
0x1639   :  { %1842 = vmatpush.bf16.msrb.mxu0 %v2157_v2 }
0x163d   :  { %1843 = vmatpush.bf16.msrb.mxu0 %v2156_v3 }
0x1644   :  { %v1648_v55 = vpop.xlane.xlu0 %1647 }
0x1645   :  { %2269 = vrcp.f32 %v1648_v55  ;;  %v1761_v55 = vperm.slane %v1760_v4, 0 }
0x164b   :  { %v2270_v5 = vpop.eup %2269 }
0x164c   :  { %v1650_v6 = vmul.f32 %v2270_v5, %v2262_v52 }
0x164e   :  { %v1651_v7 = vpack.c.bf16 %v1650_v6, %v1650_v6 }
0x1650   :  { %2075 = vmatmul.msk.bf16.vlgmr.msra.gmra.mxu1 %vm446_vm11, %v1651_v7 }
0x1657   :  { %v1599_v9 = vpop.permute.xlu0 %1598 }
0x1658   :  { %1611 = vmatpush.bf16.msra.mxu2 %v1599_v9 }
0x165c   :  { %1783 = vmatpush.bf16.msrb.mxu2 %v2155_v46 }
0x166d   :  { %v1594_v10 = vpop.xlane.xlu2 %1593 }
0x166e   :  { %2271 = vrcp.f32 %v1594_v10 }
0x1674   :  { %v2272_v11 = vpop.eup %2271 }
0x1675   :  { %v1596_v13 = vmul.f32 %v2272_v11, %v2264_v59 }
0x1677   :  { %v1597_v57 = vpack.c.bf16 %v1596_v13, %v1596_v13 }
0x1679   :  { %2073 = vmatmul.msk.bf16.vlgmr.msra.gmra.mxu2 %vm446_vm11, %v1597_v57 }
0x16b5   :  { %v1559_v14 = vpop.f32.mrf.mxu1 }
0x16b6   :  { %1672 = vrot.lane.b32.xlu1 %v1559_v14, %s3051_s1 }
0x16bb   :  { %v1504_v15 = vpop.f32.mrf.mxu2 }
0x16bd   :  { %v1561_v16 = vpop.f32.mrf.mxu1 }
0x16c3   :  { %v1506_v17 = vpop.f32.mrf.mxu2 }
0x16cd   :  { %v1667_v18 = vpop.f32.mrf.mxu1 }
0x16ce   :  { %1680 = vrot.lane.b32.xlu0 %v1667_v18, %s3053_s30  ;;  %s3068_s30 = sld [smem:[#allocation24_spill]] }
0x16d5   :  { %v1669_v19 = vpop.f32.mrf.mxu1 }
0x16d6   :  { %v2126_v19 = vld [vmem:[%s2970_s23 + $0x1] sm:$0x1] }
0x16fc   :  { %v1613_v20 = vpop.f32.mrf.mxu2 }
0x16fd   :  { %1676 = vrot.lane.b32.xlu1 %v1613_v20, %s3052_s27  ;;  %v1852_v20 = vunpack.c.l.bf16 %v2126_v19  ;;  %s2321_s27 = smov [#allocation2]  }
0x16fe   :  { %s1893_s10 = sshll.u32 %s2321_s27, 4  ;;  %s1894_s10 = int_to_ptr.vmem [resolvable:$true] %s1893_s10 }
0x1704   :  { %v1615_v21 = vpop.f32.mrf.mxu2 }
0x1705   :  { %v1853_v21 = vperm.slane %v1852_v20, 0 }
0x1728   :  { %v1673_v24 = vpop.permute.xlu1 %1672 }
0x1729   :  { %v1683_v25 = vsel %vm211_vm8, %v1504_v15, %v1673_v24 }
0x1740   :  { %v1681_v27 = vpop.permute.xlu0 %1680 }
0x176f   :  { %v1677_v26 = vpop.permute.xlu1 %1676 }
0x1770   :  { %v1684_v29 = vsel %vm446_vm11, %v1683_v25, %v1677_v26 }
0x1771   :  { %v1685_v30 = vsel %vm448_vm12, %v1684_v29, %v1681_v27 }
0x1772   :  { %v1686_v32 = vpack.c.bf16 %v1685_v30, %v1685_v30 }
0x1774   :  { %2084 = vmatmul.msk.bf16.vlgmr.msra.gmra.mxu3 %vm88_vm0, %v1686_v32 }
0x17f7   :  { %v1713_v38 = vpop.f32.mrf.mxu3 }
0x17f8   :  { %v1714_v39 = vadd.f32 %v1713_v38, %v1688_v36 }
0x17fa   :  { %v2892_v28 = vadd.f32 %v1714_v39, %v2800_v37  ;;  %v2154_v37 = vld [vmem:[%s3064_s8 + $0x10] sm:$0xff]  ;;  %s3069_s8 = sld [smem:[#allocation25_spill]] }
0x17fb   :  { %1784 = vmatpush.bf16.msrb.mxu2 %v2154_v37 }
0x17fc   :  { %v1722_v12 = vsel %vm88_vm0, %v2892_v28, 0.0 }
0x17fd   :  { %1723 = vadd.xlane.f32.xlu1 %v1722_v12 }
0x17ff   :  { %v1715_v31 = vpop.f32.mrf.mxu3 }
0x1800   :  { %s1895_s26 = sshll.u32 %s3069_s8, 4  ;;  %s1896_s26 = int_to_ptr.hbm [resolvable:$true] %s1895_s26 }
0x1870   :  { %v1724_v41 = vpop.xlane.xlu1 %1723 }
0x1871   :  { %v1725_v42 = vmul.f32 %v1724_v41, %v2461_v8 }
0x1873   :  { %v1726_v43 = vsub.f32 %v2892_v28, %v1725_v42 }
0x1875   :  { %v1727_v44 = vmul.f32 %v1726_v43, %v1726_v43 }
0x1877   :  { %v1728_v45 = vsel %vm88_vm0, %v1727_v44, 0.0 }
0x1878   :  { %1729 = vadd.xlane.f32.xlu0 %v1728_v45 }
0x18eb   :  { %v1730_v40 = vpop.xlane.xlu0 %1729 }
0x18ec   :  { %v1731_v47 = vmul.f32 %v1730_v40, %v2461_v8 }
0x18ee   :  { %v1732_v48 = vadd.f32 1e-05, %v1731_v47 }
0x18f0   :  { %2273 = vrsqrt.f32 %v1732_v48  ;;  %vm1739_vm11 = vweird.f32 %v1732_v48 }
0x18f6   :  { %v2274_v49 = vpop.eup %2273 }
0x18f7   :  { %v1734_v50 = vmul.f32 %v2274_v49, %v1732_v48  ;;  %vm1740_vm8 = vweird.f32 %v2274_v49 }
0x18f8   :  { %vm1741_vm12 = vmor %vm1739_vm11, %vm1740_vm8 }
0x18f9   :  { %v1735_v35 = vmul.f32 %v2274_v49, %v1734_v50 }
0x18fb   :  { %v1736_v51 = vmul.f32 0.5, %v1735_v35 }
0x18fd   :  { %v1737_v52 = vsub.f32 1.5, %v1736_v51 }
0x18ff   :  { %v1738_v53 = vmul.f32 %v2274_v49, %v1737_v52 }
0x1901   :  { %v1742_v56 = vsel %vm1741_vm12, %v2274_v49, %v1738_v53 }
0x1902   :  { %v1743_v59 = vmul.f32 %v1742_v56, %v1726_v43  ;;  %v2191_v43 = vld [vmem:[%s3067_s29] ss:$0 sm:$0xff] }
0x1904   :  { %v1747_v61 = vmul.f32 %v2189_v54, %v1743_v59 }
0x1906   :  { %v1751_v62 = vadd.f32 %v2190_v60, %v1747_v61 }
0x1908   :  { %v1757_v63 = vpack.c.bf16 %v1751_v62, %v1751_v62 }
0x190a   :  { %2100 = vmatmul.msk.bf16.vlgmr.msrb.gmra.mxu2 %vm88_vm0, %v1757_v63 }
0x198d   :  { %v1786_v5 = vpop.f32.mrf.mxu2 }
0x198e   :  { %v1787_v6 = vadd.f32 %v1786_v5, %v1761_v55 }
0x1990   :  { %v1790_v7 = vmul.f32 %v1787_v6, %v1787_v6 }
0x1992   :  { %v1791_v9 = vmul.f32 %v1790_v7, %v1787_v6 }
0x1994   :  { %v1792_v10 = vmul.f32 0.044715, %v1791_v9 }
0x1995   :  { %v1788_v11 = vpop.f32.mrf.mxu2 }
0x1996   :  { %v1793_v13 = vadd.f32 %v1792_v10, %v1787_v6 }
0x1998   :  { %v1794_v57 = vmul.f32 0.7978846, %v1793_v13 }
0x199a   :  { %2275 = vtanh.f32 %v1794_v57 }
0x19a0   :  { %v2276_v14 = vpop.eup %2275 }
0x19a1   :  { %v1796_v15 = vadd.f32 1.0, %v2276_v14 }
0x19a3   :  { %v1797_v16 = vmul.f32 0.5, %v1796_v15 }
0x19a5   :  { %v1798_v17 = vmul.f32 %v1797_v16, %v1787_v6 }
0x19a7   :  { %v1808_v18 = vpack.c.bf16 %v1798_v17, %v1798_v17 }
0x19a9   :  { %2125 = vmatmul.msk.bf16.vlgmr.msrb.gmra.mxu0 %vm969_vm4, %v1808_v18 }
0x1a26   :  { %v1845_v22 = vpop.f32.mrf.mxu0 }
0x1a27   :  { %v1849_v23 = vadd.f32 %v1845_v22, %v2892_v28 }
0x1a29   :  { %v1854_v24 = vadd.f32 %v1853_v21, %v1849_v23 }
0x1a2b   :  { %v1857_v25 = vsel %vm88_vm0, %v1854_v24, 0.0 }
0x1a2c   :  { %1858 = vadd.xlane.f32.xlu2 %v1857_v25 }
0x1a2e   :  { %v1847_v26 = vpop.f32.mrf.mxu0 }
0x1a9f   :  { %v1859_v27 = vpop.xlane.xlu2 %1858 }
0x1aa0   :  { %v1860_v29 = vmul.f32 %v1859_v27, %v2461_v8 }
0x1aa2   :  { %v1861_v30 = vsub.f32 %v1854_v24, %v1860_v29 }
0x1aa4   :  { %v1862_v32 = vmul.f32 %v1861_v30, %v1861_v30 }
0x1aa6   :  { %v1863_v33 = vsel %vm88_vm0, %v1862_v32, 0.0 }
0x1aa7   :  { %1864 = vadd.xlane.f32.xlu2 %v1863_v33 }
0x1b1a   :  { %v1865_v34 = vpop.xlane.xlu2 %1864 }
0x1b1b   :  { %v1866_v36 = vmul.f32 %v1865_v34, %v2461_v8  ;;  %v2192_v8 = vld [vmem:[%s3068_s30] ss:$0 sm:$0xff] }
0x1b1d   :  { %v1867_v38 = vadd.f32 1e-05, %v1866_v36 }
0x1b1f   :  { %2277 = vrsqrt.f32 %v1867_v38  ;;  %vm1874_vm15 = vweird.f32 %v1867_v38 }
0x1b25   :  { %v2278_v39 = vpop.eup %2277 }
0x1b26   :  { %v1869_v28 = vmul.f32 %v2278_v39, %v1867_v38  ;;  %vm1875_vm14 = vweird.f32 %v2278_v39 }
0x1b27   :  { %vm1876_vm1 = vmor %vm1874_vm15, %vm1875_vm14 }
0x1b28   :  { %v1870_v12 = vmul.f32 %v2278_v39, %v1869_v28 }
0x1b2a   :  { %v1871_v31 = vmul.f32 0.5, %v1870_v12 }
0x1b2c   :  { %v1872_v41 = vsub.f32 1.5, %v1871_v31 }
0x1b2e   :  { %v1873_v42 = vmul.f32 %v2278_v39, %v1872_v41 }
0x1b30   :  { %v1877_v44 = vsel %vm1876_vm1, %v2278_v39, %v1873_v42 }
0x1b31   :  { %v1878_v45 = vmul.f32 %v1877_v44, %v1861_v30 }
0x1b33   :  { %v1882_v46 = vmul.f32 %v2191_v43, %v1878_v45 }
0x1b35   :  { %v1886_v37 = vadd.f32 %v2192_v8, %v1882_v46 }
0x1b37   :  { %1887 = vst.msk [vmem:[#allocation2] sm:$0xff] %vm88_vm0, %v1886_v37 }
0x1b38   :  { %1898 = dma.vmem_to_hbm [thread:$0]  %s1894_s10, 128, %s1896_s26, [#allocation3]  }
0x1b39   :  { %2303 = dma.done.wait [#allocation3], 128  }
0x1b3a   :  { %2304 = vsyncadd [#allocation3], 4294967168 }
0x1b3b   :  { %1903 = vsyncpa [#allocation3], 1 }

</bundles_post_ra>
